<compile_context>
chip_gen: v7x
topology: tpu7x:2x2x1
jax: 0.10.0
libtpu: 0.0.40
codegen_flags: <defaults>
</compile_context>

<pallas_src>
import math
import functools

import jax
import jax.numpy as jnp
from jax.experimental import pallas as pl
from jax.experimental.pallas import tpu as pltpu

H = W = 16
HW = H * W                     # 256 -> lane-dense spatial axis
C_LAT = 4                      # latent channels
C_IMG = 3                      # RGB
D_TXT = 128                    # pooled text-embedding dim (synthetic, lane-aligned)
N_SCAL = 4                     # per-step scalar columns in the SMEM table


# ----------------------------------------------------------------------------
# Fused pipeline kernel (single invocation; sampling loop unrolled in-kernel)
# ----------------------------------------------------------------------------
def _fused_pipeline_kernel(
        scal_ref,                           # (num_steps*N_SCAL,) f32 in SMEM
        img_ref, z0_ref, noise_ref,         # (3,HW), (4,HW), (steps,4,HW) f32 VMEM
        temb_ref,                           # (2, D_TXT): row0 prompt, row1 null token
        w1_ref, b1_ref, w2_ref, b2_ref,     # denoiser weights (W1/W2 bf16, VMEM-resident)
        wc_ref, wt_ref,                     # (4, 8) channel mix, (D_TXT, HW) bf16 text proj
        we_ref, be_ref, wd_ref, bd_ref,     # synthetic VAE encode / decode (1x1 convs)
        img_out_ref, diff_ref,              # outputs: (3,HW) f32, (steps,HW) f32
        hin_scr,                            # (2*C_LAT, HW) f32 VMEM scratch (MXU staging)
        *, num_steps, text_cfg_scale, image_cfg_scale):
    f32 = jnp.float32
    bf16 = jnp.bfloat16
    tcfg = float(text_cfg_scale)
    icfg = float(image_cfg_scale)

    # ------------------ step-invariant init (executed once) ------------------
    b1 = b1_ref[...]                         # (1, HW)
    b2 = b2_ref[...]                         # (1, HW)
    wc = wc_ref[...]                         # (C_LAT, 2*C_LAT)

    # encode_first_stage (synthetic 1x1-conv VAE) as VPU broadcast-MACs (K=3, off the MXU)
    img = img_ref[...]
    we = we_ref[...]
    cond_concat = be_ref[...] + we[:, 0:1] * img[0:1, :]
    for k in range(1, C_IMG):
        cond_concat = cond_concat + we[:, k:k + 1] * img[k:k + 1, :]

    # cond_concat @ W1 and the pooled text conditioning are reused by every step
    cw1 = jnp.dot(cond_concat.astype(bf16), w1_ref[...],
                  preferred_element_type=f32)                          # (4, HW)
    pre = b1 + jnp.dot(temb_ref[...].astype(bf16), wt_ref[...],
                       preferred_element_type=f32)                     # (2, HW)
    pre_p = pre[0:1, :]
    pre_n = pre[1:2, :]

    # step-invariant second-layer products: cond-image rows (prompt / null text) and the
    # zero-latent row of the image-uncond branch, all through W2 exactly once.
    hin_scr[0:C_LAT, :] = cw1 + pre_p
    hin_scr[C_LAT:2 * C_LAT, :] = cw1 + pre_n
    g_b = jnp.dot(jnp.tanh(hin_scr[...]).astype(bf16), w2_ref[...],
                  preferred_element_type=f32)                          # rows 0-3: g_bp, 4-7: g_bn
    g_zp = jnp.dot(jnp.tanh(pre_p).astype(bf16), w2_ref[...],
                   preferred_element_type=f32)                         # (1, HW)

    # Fold the cond-rows of wc + the b2 bias into per-branch constants C_c / C_i / C_t and
    # collapse the (constant-scale) CFG combination into const_mix / const_ci.
    b2_term = jnp.sum(wc, axis=1, keepdims=True) * b2                  # rowsum(wc) (x) b2
    c_cond = b2_term
    c_imgc = b2_term
    for k in range(C_LAT):
        wbk = wc[:, C_LAT + k:C_LAT + k + 1]                           # (4, 1)
        c_cond = c_cond + wbk * g_b[k:k + 1, :]
        c_imgc = c_imgc + wbk * g_b[C_LAT + k:C_LAT + k + 1, :]
    c_txtc = b2_term + jnp.sum(wc[:, C_LAT:], axis=1, keepdims=True) * g_zp
    const_mix = ((tcfg + icfg) * c_cond + (0.5 - tcfg) * c_imgc
                 + (0.5 - icfg) * c_txtc)                              # (4, HW)
    const_ci = c_cond - c_imgc                                         # (4, HW)

    cp = 0.5 + tcfg    # coefficient of the prompt-branch varying eps part
    cn = 0.5 - tcfg    # coefficient of the null-branch varying eps part

    # ------------------ sampling loop (fully unrolled, static indices) -------
    z = z0_ref[...]
    for step in range(num_steps):
        base = step * N_SCAL
        c_in = scal_ref[base + 0]
        step_coef = scal_ref[base + 1]      # dt * (-c_out / sigma)
        noise_coef = scal_ref[base + 2]     # (sigma_next > 0) * s_noise * sigma_up
        diff_scale = scal_ref[base + 3]     # |c_out| (maps eps-space diff back to out-space)

        # Only the latent rows change per step -> one (4,HW)@W1 matmul.
        aw1 = jnp.dot((c_in * z).astype(bf16), w1_ref[...],
                      preferred_element_type=f32)                      # (4, HW)

        # One sublane-aligned (8,HW) block through W2 per step (two static sublane stores).
        hin_scr[0:C_LAT, :] = aw1 + pre_p
        hin_scr[C_LAT:2 * C_LAT, :] = aw1 + pre_n
        g8 = jnp.dot(jnp.tanh(hin_scr[...]).astype(bf16), w2_ref[...],
                     preferred_element_type=f32)                       # (8, HW)

        # wc channel mix + CFG combination as VPU broadcast-MACs (no K=8 MXU dots).
        eps_var = None
        dif_var = None
        for k in range(C_LAT):
            wak = wc[:, k:k + 1]                      # (4,1) column of wc_a
            ga = g8[k:k + 1, :]                       # prompt-branch row
            gn = g8[C_LAT + k:C_LAT + k + 1, :]       # null-branch row
            e = wak * (cp * ga + cn * gn)
            d = wak * (ga - gn)
            eps_var = e if eps_var is None else eps_var + e
            dif_var = d if dif_var is None else dif_var + d

        # CFG + ancestral Euler collapsed:  z' = z + step_coef*eps_mix + noise_coef*noise
        eps_mix = eps_var + const_mix
        z = z + step_coef * eps_mix + noise_coef * noise_ref[step]

        # get_noise_diff hot path: |out_cond - out_img_cond| summed over channels.
        diff_row = diff_scale * jnp.sum(jnp.abs(dif_var + const_ci),
                                        axis=0, keepdims=True)         # (1, HW)
        diff_ref[step:step + 1, :] = diff_row

    # ------------------ decode_first_stage + postprocess (once) --------------
    wd = wd_ref[...]
    x = bd_ref[...] + wd[:, 0:1] * z[0:1, :]
    for k in range(1, C_LAT):
        x = x + wd[:, k:k + 1] * z[k:k + 1, :]
    img_out_ref[...] = jnp.clip((x + 1.0) * 0.5, 0.0, 1.0) * 255.0


def run_fused_pipeline(scal, img, z0, noise, temb, params, *,
                       num_steps, text_cfg_scale, image_cfg_scale):
    kernel = functools.partial(_fused_pipeline_kernel,
                               num_steps=num_steps,
                               text_cfg_scale=text_cfg_scale,
                               image_cfg_scale=image_cfg_scale)
    vmem = lambda: pl.BlockSpec(memory_space=pltpu.MemorySpace.VMEM)
    smem = lambda: pl.BlockSpec(memory_space=pltpu.MemorySpace.SMEM)
    return pl.pallas_call(
        kernel,
        in_specs=[smem()] + [vmem() for _ in range(14)],
        out_specs=(vmem(), vmem()),
        out_shape=(jax.ShapeDtypeStruct((C_IMG, HW), jnp.float32),
                   jax.ShapeDtypeStruct((num_steps, HW), jnp.float32)),
        scratch_shapes=[pltpu.VMEM((2 * C_LAT, HW), jnp.float32)],
    )(scal, img, z0, noise, temb,
      params["W1"], params["b1"], params["W2"], params["b2"],
      params["wc"], params["Wt"], params["We"], params["be"],
      params["Wd"], params["bd"])


# ----------------------------------------------------------------------------
# Deterministic synthetic parameters and schedules
# ----------------------------------------------------------------------------
def init_params(key):
    ks = jax.random.split(key, 12)

    def nrm(k, shape, scale):
        return (scale * jax.random.normal(k, shape)).astype(jnp.float32)

    return dict(
        # MXU-facing weights in bf16 (f32 accumulation inside the kernel);
        # all elementwise math stays f32 (v5e has no bf16 VPU/EUP).
        W1=nrm(ks[0], (HW, HW), 1.0 / math.sqrt(HW)).astype(jnp.bfloat16),
        b1=nrm(ks[1], (1, HW), 0.02),
        W2=nrm(ks[2], (HW, HW), 1.0 / math.sqrt(HW)).astype(jnp.bfloat16),
        b2=nrm(ks[3], (1, HW), 0.02),
        # per-branch channel mix; equivalent to the block-diagonal Wc = kron(I3, wc)
        wc=nrm(ks[4], (C_LAT, 2 * C_LAT), 1.0 / math.sqrt(2 * C_LAT)),
        Wt=nrm(ks[5], (D_TXT, HW), 1.0 / math.sqrt(D_TXT)).astype(jnp.bfloat16),
        We=nrm(ks[6], (C_LAT, C_IMG), 0.5),
        be=nrm(ks[7], (C_LAT, 1), 0.02),
        Wd=nrm(ks[8], (C_IMG, C_LAT), 0.5),
        bd=nrm(ks[9], (C_IMG, 1), 0.02),
        # synthetic get_learned_conditioning([prompt]) / null_token (pooled)
        text_emb=nrm(ks[10], (D_TXT,), 1.0),
        null_emb=nrm(ks[11], (D_TXT,), 1.0),
    )


def get_sigmas(n, sigma_min=0.0292, sigma_max=14.6116):
    # TODO(synk): CompVisDenoiser.get_sigmas interpolates the trained DDPM sigma table;
    # substituted with a deterministic log-linear schedule + trailing 0.
    sig = jnp.exp(jnp.linspace(math.log(sigma_max), math.log(sigma_min), n))
    return jnp.concatenate([sig, jnp.zeros((1,))]).astype(jnp.float32)


def get_ancestral_step(sigma_from, sigma_to, eta=1.0):
    sigma_up = jnp.minimum(
        sigma_to,
        eta * jnp.sqrt(sigma_to ** 2 * (sigma_from ** 2 - sigma_to ** 2)
                       / (sigma_from ** 2)))
    sigma_down = jnp.sqrt(jnp.maximum(sigma_to ** 2 - sigma_up ** 2, 0.0))
    return sigma_down, sigma_up


# ----------------------------------------------------------------------------
# forward() of InstructDiffusionEnsemblePipeline
# ----------------------------------------------------------------------------
def instruct_diffusion_forward(params, input_image_hwc, *,
                               prompt_pooled, null_pooled,
                               num_inference_steps=6,
                               text_cfg_scale=7.5, image_cfg_scale=1.5,
                               seed=0, s_noise=1.0, eta=1.0):
    # TODO(synk): PIL ImageOps.fit / LANCZOS resize has no Pallas equivalent; the input is
    # assumed to already be at the working (64-multiple) resolution.

    # image: 'h w c -> 1 c h w', then 2*x/255 - 1  (tiny; done in the XLA wrapper)
    img = jnp.transpose(input_image_hwc.astype(jnp.float32), (2, 0, 1)).reshape(C_IMG, HW)
    img = 2.0 * img / 255.0 - 1.0

    n = num_inference_steps
    sigmas = get_sigmas(n)
    sig_i, sig_n = sigmas[:-1], sigmas[1:]
    sigma_down, sigma_up = get_ancestral_step(sig_i, sig_n, eta=eta)

    # Collapsed per-step scalars (CFG + ancestral Euler algebra folded host-side):
    #   out_x = z + c_out*eps_x  =>  d = -(c_out/sigma)*eps_mix, z' = z + dt*d + gate*noise
    c_in = 1.0 / jnp.sqrt(sig_i ** 2 + 1.0)
    c_out = -sig_i
    dt = sigma_down - sig_i
    step_coef = dt * (-c_out) / sig_i                       # == dt for CompVis c_out=-sigma
    noise_coef = (sig_n > 0).astype(jnp.float32) * s_noise * sigma_up
    diff_scale = jnp.abs(c_out)                             # back to out_cond - out_img_cond space
    scal = jnp.stack([c_in, step_coef, noise_coef, diff_scale],
                     axis=1).reshape(-1).astype(jnp.float32)   # flat 1-D SMEM table

    key = jax.random.PRNGKey(seed)
    kz, kn = jax.random.split(key)
    z0 = jax.random.normal(kz, (C_LAT, HW), jnp.float32) * sigmas[0]
    noise = jax.random.normal(kn, (n, C_LAT, HW), jnp.float32)   # all steps at once

    temb = jnp.stack([prompt_pooled.reshape(D_TXT),
                      null_pooled.reshape(D_TXT)]).astype(jnp.float32)   # (2, D_TXT)

    img255, eps_diff = run_fused_pipeline(
        scal, img, z0, noise, temb, params,
        num_steps=n, text_cfg_scale=text_cfg_scale, image_cfg_scale=image_cfg_scale)

    # '1 c h w -> h w c'
    edited_image = jnp.transpose(img255.reshape(C_IMG, H, W), (1, 2, 0)).astype(jnp.uint8)
    # TODO(synk): final PIL ImageOps.fit back to the original resolution is omitted.
    # TODO(synk): get_noise_diff's numpy percentile/IQR outlier clip + min-max normalize and
    # accumulate_relevance_map are host-side numpy in the reference and are omitted here;
    # eps_diff is the raw per-step |out_cond - out_img_cond| channel-sum they consume.
    return {"output": edited_image, "eps_diff": eps_diff.reshape(n, H, W)}


if __name__ == "__main__":
    root = jax.random.PRNGKey(0)
    kp, ki = jax.random.split(root)
    params = init_params(kp)

    input_image = (jax.random.uniform(ki, (H, W, C_IMG)) * 255.0).astype(jnp.float32)

    STEPS = 6
    fwd = jax.jit(functools.partial(
        instruct_diffusion_forward,
        num_inference_steps=STEPS,
        text_cfg_scale=7.5,
        image_cfg_scale=1.5,
        seed=0, s_noise=1.0, eta=1.0))

    res = fwd(params, input_image,
              prompt_pooled=params["text_emb"],
              null_pooled=params["null_emb"])
    jax.block_until_ready(res["output"])
    assert res["output"].shape == (H, W, C_IMG) and res["output"].dtype == jnp.uint8
    assert res["eps_diff"].shape == (STEPS, H, W)
    print("KERNEL_OK")
</pallas_src>

<mosaic_0001>
module attributes {stable_mosaic.version = 11 : i64} {
  func.func @_fused_pipeline_kernel(%arg0: memref<24xf32, #tpu.memory_space<smem>>, %arg1: memref<3x256xf32, #tpu.memory_space<vmem>>, %arg2: memref<4x256xf32, #tpu.memory_space<vmem>>, %arg3: memref<6x4x256xf32, #tpu.memory_space<vmem>>, %arg4: memref<2x128xf32, #tpu.memory_space<vmem>>, %arg5: memref<256x256xbf16, #tpu.memory_space<vmem>>, %arg6: memref<1x256xf32, #tpu.memory_space<vmem>>, %arg7: memref<256x256xbf16, #tpu.memory_space<vmem>>, %arg8: memref<1x256xf32, #tpu.memory_space<vmem>>, %arg9: memref<4x8xf32, #tpu.memory_space<vmem>>, %arg10: memref<128x256xbf16, #tpu.memory_space<vmem>>, %arg11: memref<4x3xf32, #tpu.memory_space<vmem>>, %arg12: memref<4x1xf32, #tpu.memory_space<vmem>>, %arg13: memref<3x4xf32, #tpu.memory_space<vmem>>, %arg14: memref<3x1xf32, #tpu.memory_space<vmem>>, %arg15: memref<3x256xf32, #tpu.memory_space<vmem>>, %arg16: memref<6x256xf32, #tpu.memory_space<vmem>>, %arg17: memref<8x256xf32, #tpu.memory_space<vmem>>) attributes {dimension_semantics = [], scalar_prefetch = 0 : i64, scratch_operands = 1 : i64, tpu.core_type = #tpu.core_type<tc>} {
    %c0 = arith.constant 0 : index
    %c0_0 = arith.constant 0 : index
    %0 = vector.load %arg6[%c0, %c0_0] : memref<1x256xf32, #tpu.memory_space<vmem>>, vector<1x256xf32>
    %c0_1 = arith.constant 0 : index
    %c0_2 = arith.constant 0 : index
    %1 = vector.load %arg8[%c0_1, %c0_2] : memref<1x256xf32, #tpu.memory_space<vmem>>, vector<1x256xf32>
    %c0_3 = arith.constant 0 : index
    %c0_4 = arith.constant 0 : index
    %2 = vector.load %arg9[%c0_3, %c0_4] : memref<4x8xf32, #tpu.memory_space<vmem>>, vector<4x8xf32>
    %c0_5 = arith.constant 0 : index
    %c0_6 = arith.constant 0 : index
    %3 = vector.load %arg1[%c0_5, %c0_6] : memref<3x256xf32, #tpu.memory_space<vmem>>, vector<3x256xf32>
    %c0_7 = arith.constant 0 : index
    %c0_8 = arith.constant 0 : index
    %4 = vector.load %arg11[%c0_7, %c0_8] : memref<4x3xf32, #tpu.memory_space<vmem>>, vector<4x3xf32>
    %c0_9 = arith.constant 0 : index
    %c0_10 = arith.constant 0 : index
    %5 = vector.load %arg12[%c0_9, %c0_10] : memref<4x1xf32, #tpu.memory_space<vmem>>, vector<4x1xf32>
    %6 = vector.extract_strided_slice %4 {offsets = [0, 0], sizes = [4, 1], strides = [1, 1]} : vector<4x3xf32> to vector<4x1xf32>
    %7 = vector.extract_strided_slice %3 {offsets = [0, 0], sizes = [1, 256], strides = [1, 1]} : vector<3x256xf32> to vector<1x256xf32>
    %8 = vector.broadcast %6 : vector<4x1xf32> to vector<4x256xf32>
    %9 = vector.broadcast %7 : vector<1x256xf32> to vector<4x256xf32>
    %10 = arith.mulf %8, %9 : vector<4x256xf32>
    %11 = vector.broadcast %5 : vector<4x1xf32> to vector<4x256xf32>
    %12 = arith.addf %11, %10 : vector<4x256xf32>
    %13 = vector.extract_strided_slice %4 {offsets = [0, 1], sizes = [4, 1], strides = [1, 1]} : vector<4x3xf32> to vector<4x1xf32>
    %14 = vector.extract_strided_slice %3 {offsets = [1, 0], sizes = [1, 256], strides = [1, 1]} : vector<3x256xf32> to vector<1x256xf32>
    %15 = vector.broadcast %13 : vector<4x1xf32> to vector<4x256xf32>
    %16 = vector.broadcast %14 : vector<1x256xf32> to vector<4x256xf32>
    %17 = arith.mulf %15, %16 : vector<4x256xf32>
    %18 = arith.addf %12, %17 : vector<4x256xf32>
    %19 = vector.extract_strided_slice %4 {offsets = [0, 2], sizes = [4, 1], strides = [1, 1]} : vector<4x3xf32> to vector<4x1xf32>
    %20 = vector.extract_strided_slice %3 {offsets = [2, 0], sizes = [1, 256], strides = [1, 1]} : vector<3x256xf32> to vector<1x256xf32>
    %21 = vector.broadcast %19 : vector<4x1xf32> to vector<4x256xf32>
    %22 = vector.broadcast %20 : vector<1x256xf32> to vector<4x256xf32>
    %23 = arith.mulf %21, %22 : vector<4x256xf32>
    %24 = arith.addf %18, %23 : vector<4x256xf32>
    %25 = arith.truncf %24 : vector<4x256xf32> to vector<4x256xbf16>
    %c0_11 = arith.constant 0 : index
    %c0_12 = arith.constant 0 : index
    %26 = vector.load %arg5[%c0_11, %c0_12] : memref<256x256xbf16, #tpu.memory_space<vmem>>, vector<256x256xbf16>
    %cst = arith.constant dense<0.000000e+00> : vector<4x256xf32>
    %27 = tpu.matmul %25, %26, %cst {dimension_numbers = #tpu.dot_dimension_numbers<[1], [0], [0], [1], [0, 0, 1, 1], [], []>} : vector<4x256xbf16>, vector<256x256xbf16>, vector<4x256xf32> -> vector<4x256xf32>
    %c0_13 = arith.constant 0 : index
    %c0_14 = arith.constant 0 : index
    %28 = vector.load %arg4[%c0_13, %c0_14] : memref<2x128xf32, #tpu.memory_space<vmem>>, vector<2x128xf32>
    %29 = arith.truncf %28 : vector<2x128xf32> to vector<2x128xbf16>
    %c0_15 = arith.constant 0 : index
    %c0_16 = arith.constant 0 : index
    %30 = vector.load %arg10[%c0_15, %c0_16] : memref<128x256xbf16, #tpu.memory_space<vmem>>, vector<128x256xbf16>
    %cst_17 = arith.constant dense<0.000000e+00> : vector<2x256xf32>
    %31 = tpu.matmul %29, %30, %cst_17 {dimension_numbers = #tpu.dot_dimension_numbers<[1], [0], [0], [1], [0, 0, 1, 1], [], []>} : vector<2x128xbf16>, vector<128x256xbf16>, vector<2x256xf32> -> vector<2x256xf32>
    %32 = vector.broadcast %0 : vector<1x256xf32> to vector<2x256xf32>
    %33 = arith.addf %32, %31 : vector<2x256xf32>
    %34 = vector.extract_strided_slice %33 {offsets = [0, 0], sizes = [1, 256], strides = [1, 1]} : vector<2x256xf32> to vector<1x256xf32>
    %35 = vector.extract_strided_slice %33 {offsets = [1, 0], sizes = [1, 256], strides = [1, 1]} : vector<2x256xf32> to vector<1x256xf32>
    %36 = vector.broadcast %34 : vector<1x256xf32> to vector<4x256xf32>
    %37 = arith.addf %27, %36 : vector<4x256xf32>
    %c0_18 = arith.constant 0 : index
    %c0_19 = arith.constant 0 : index
    %38 = vector.load %arg17[%c0_18, %c0_19] : memref<8x256xf32, #tpu.memory_space<vmem>>, vector<4x256xf32>
    tpu.vector_store %arg17[%c0_18, %c0_19], %37 {strides = array<i32>} : memref<8x256xf32, #tpu.memory_space<vmem>>, vector<4x256xf32>,
    %39 = vector.broadcast %35 : vector<1x256xf32> to vector<4x256xf32>
    %40 = arith.addf %27, %39 : vector<4x256xf32>
    %c4 = arith.constant 4 : index
    %c0_20 = arith.constant 0 : index
    %41 = vector.load %arg17[%c4, %c0_20] : memref<8x256xf32, #tpu.memory_space<vmem>>, vector<4x256xf32>
    tpu.vector_store %arg17[%c4, %c0_20], %40 {strides = array<i32>} : memref<8x256xf32, #tpu.memory_space<vmem>>, vector<4x256xf32>,
    %c0_21 = arith.constant 0 : index
    %c0_22 = arith.constant 0 : index
    %42 = vector.load %arg17[%c0_21, %c0_22] : memref<8x256xf32, #tpu.memory_space<vmem>>, vector<8x256xf32>
    %43 = math.tanh %42 : vector<8x256xf32>
    %44 = arith.truncf %43 : vector<8x256xf32> to vector<8x256xbf16>
    %c0_23 = arith.constant 0 : index
    %c0_24 = arith.constant 0 : index
    %45 = vector.load %arg7[%c0_23, %c0_24] : memref<256x256xbf16, #tpu.memory_space<vmem>>, vector<256x256xbf16>
    %cst_25 = arith.constant dense<0.000000e+00> : vector<8x256xf32>
    %46 = tpu.matmul %44, %45, %cst_25 {dimension_numbers = #tpu.dot_dimension_numbers<[1], [0], [0], [1], [0, 0, 1, 1], [], []>} : vector<8x256xbf16>, vector<256x256xbf16>, vector<8x256xf32> -> vector<8x256xf32>
    %47 = math.tanh %34 : vector<1x256xf32>
    %48 = arith.truncf %47 : vector<1x256xf32> to vector<1x256xbf16>
    %c0_26 = arith.constant 0 : index
    %c0_27 = arith.constant 0 : index
    %49 = vector.load %arg7[%c0_26, %c0_27] : memref<256x256xbf16, #tpu.memory_space<vmem>>, vector<256x256xbf16>
    %cst_28 = arith.constant dense<0.000000e+00> : vector<1x256xf32>
    %50 = tpu.matmul %48, %49, %cst_28 {dimension_numbers = #tpu.dot_dimension_numbers<[1], [0], [0], [1], [0, 0, 1, 1], [], []>} : vector<1x256xbf16>, vector<256x256xbf16>, vector<1x256xf32> -> vector<1x256xf32>
    %cst_29 = arith.constant dense<0.000000e+00> : vector<4xf32>
    %51 = vector.multi_reduction <add>, %2, %cst_29 [1] : vector<4x8xf32> to vector<4xf32>
    %52 = vector.shape_cast %51 : vector<4xf32> to vector<4x1xf32>
    %53 = vector.broadcast %52 : vector<4x1xf32> to vector<4x256xf32>
    %54 = vector.broadcast %1 : vector<1x256xf32> to vector<4x256xf32>
    %55 = arith.mulf %53, %54 : vector<4x256xf32>
    %56 = vector.extract_strided_slice %2 {offsets = [0, 4], sizes = [4, 1], strides = [1, 1]} : vector<4x8xf32> to vector<4x1xf32>
    %57 = vector.extract_strided_slice %46 {offsets = [0, 0], sizes = [1, 256], strides = [1, 1]} : vector<8x256xf32> to vector<1x256xf32>
    %58 = vector.broadcast %56 : vector<4x1xf32> to vector<4x256xf32>
    %59 = vector.broadcast %57 : vector<1x256xf32> to vector<4x256xf32>
    %60 = arith.mulf %58, %59 : vector<4x256xf32>
    %61 = arith.addf %55, %60 : vector<4x256xf32>
    %62 = vector.extract_strided_slice %46 {offsets = [4, 0], sizes = [1, 256], strides = [1, 1]} : vector<8x256xf32> to vector<1x256xf32>
    %63 = vector.broadcast %56 : vector<4x1xf32> to vector<4x256xf32>
    %64 = vector.broadcast %62 : vector<1x256xf32> to vector<4x256xf32>
    %65 = arith.mulf %63, %64 : vector<4x256xf32>
    %66 = arith.addf %55, %65 : vector<4x256xf32>
    %67 = vector.extract_strided_slice %2 {offsets = [0, 5], sizes = [4, 1], strides = [1, 1]} : vector<4x8xf32> to vector<4x1xf32>
    %68 = vector.extract_strided_slice %46 {offsets = [1, 0], sizes = [1, 256], strides = [1, 1]} : vector<8x256xf32> to vector<1x256xf32>
    %69 = vector.broadcast %67 : vector<4x1xf32> to vector<4x256xf32>
    %70 = vector.broadcast %68 : vector<1x256xf32> to vector<4x256xf32>
    %71 = arith.mulf %69, %70 : vector<4x256xf32>
    %72 = arith.addf %61, %71 : vector<4x256xf32>
    %73 = vector.extract_strided_slice %46 {offsets = [5, 0], sizes = [1, 256], strides = [1, 1]} : vector<8x256xf32> to vector<1x256xf32>
    %74 = vector.broadcast %67 : vector<4x1xf32> to vector<4x256xf32>
    %75 = vector.broadcast %73 : vector<1x256xf32> to vector<4x256xf32>
    %76 = arith.mulf %74, %75 : vector<4x256xf32>
    %77 = arith.addf %66, %76 : vector<4x256xf32>
    %78 = vector.extract_strided_slice %2 {offsets = [0, 6], sizes = [4, 1], strides = [1, 1]} : vector<4x8xf32> to vector<4x1xf32>
    %79 = vector.extract_strided_slice %46 {offsets = [2, 0], sizes = [1, 256], strides = [1, 1]} : vector<8x256xf32> to vector<1x256xf32>
    %80 = vector.broadcast %78 : vector<4x1xf32> to vector<4x256xf32>
    %81 = vector.broadcast %79 : vector<1x256xf32> to vector<4x256xf32>
    %82 = arith.mulf %80, %81 : vector<4x256xf32>
    %83 = arith.addf %72, %82 : vector<4x256xf32>
    %84 = vector.extract_strided_slice %46 {offsets = [6, 0], sizes = [1, 256], strides = [1, 1]} : vector<8x256xf32> to vector<1x256xf32>
    %85 = vector.broadcast %78 : vector<4x1xf32> to vector<4x256xf32>
    %86 = vector.broadcast %84 : vector<1x256xf32> to vector<4x256xf32>
    %87 = arith.mulf %85, %86 : vector<4x256xf32>
    %88 = arith.addf %77, %87 : vector<4x256xf32>
    %89 = vector.extract_strided_slice %2 {offsets = [0, 7], sizes = [4, 1], strides = [1, 1]} : vector<4x8xf32> to vector<4x1xf32>
    %90 = vector.extract_strided_slice %46 {offsets = [3, 0], sizes = [1, 256], strides = [1, 1]} : vector<8x256xf32> to vector<1x256xf32>
    %91 = vector.broadcast %89 : vector<4x1xf32> to vector<4x256xf32>
    %92 = vector.broadcast %90 : vector<1x256xf32> to vector<4x256xf32>
    %93 = arith.mulf %91, %92 : vector<4x256xf32>
    %94 = arith.addf %83, %93 : vector<4x256xf32>
    %95 = vector.extract_strided_slice %46 {offsets = [7, 0], sizes = [1, 256], strides = [1, 1]} : vector<8x256xf32> to vector<1x256xf32>
    %96 = vector.broadcast %89 : vector<4x1xf32> to vector<4x256xf32>
    %97 = vector.broadcast %95 : vector<1x256xf32> to vector<4x256xf32>
    %98 = arith.mulf %96, %97 : vector<4x256xf32>
    %99 = arith.addf %88, %98 : vector<4x256xf32>
    %100 = vector.extract_strided_slice %2 {offsets = [0, 4], sizes = [4, 4], strides = [1, 1]} : vector<4x8xf32> to vector<4x4xf32>
    %cst_30 = arith.constant dense<0.000000e+00> : vector<4xf32>
    %101 = vector.multi_reduction <add>, %100, %cst_30 [1] : vector<4x4xf32> to vector<4xf32>
    %102 = vector.shape_cast %101 : vector<4xf32> to vector<4x1xf32>
    %103 = vector.broadcast %102 : vector<4x1xf32> to vector<4x256xf32>
    %104 = vector.broadcast %50 : vector<1x256xf32> to vector<4x256xf32>
    %105 = arith.mulf %103, %104 : vector<4x256xf32>
    %106 = arith.addf %55, %105 : vector<4x256xf32>
    %cst_31 = arith.constant 9.000000e+00 : f32
    %107 = vector.broadcast %cst_31 : f32 to vector<4x256xf32>
    %108 = arith.mulf %107, %94 : vector<4x256xf32>
    %cst_32 = arith.constant -7.000000e+00 : f32
    %109 = vector.broadcast %cst_32 : f32 to vector<4x256xf32>
    %110 = arith.mulf %109, %99 : vector<4x256xf32>
    %111 = arith.addf %108, %110 : vector<4x256xf32>
    %cst_33 = arith.constant -1.000000e+00 : f32
    %112 = vector.broadcast %cst_33 : f32 to vector<4x256xf32>
    %113 = arith.mulf %112, %106 : vector<4x256xf32>
    %114 = arith.addf %111, %113 : vector<4x256xf32>
    %115 = arith.subf %94, %99 : vector<4x256xf32>
    %c0_34 = arith.constant 0 : index
    %c0_35 = arith.constant 0 : index
    %116 = vector.load %arg2[%c0_34, %c0_35] : memref<4x256xf32, #tpu.memory_space<vmem>>, vector<4x256xf32>
    %c0_36 = arith.constant 0 : index
    %117 = memref.load %arg0[%c0_36] : memref<24xf32, #tpu.memory_space<smem>>
    %c1 = arith.constant 1 : index
    %118 = memref.load %arg0[%c1] : memref<24xf32, #tpu.memory_space<smem>>
    %c2 = arith.constant 2 : index
    %119 = memref.load %arg0[%c2] : memref<24xf32, #tpu.memory_space<smem>>
    %c3 = arith.constant 3 : index
    %120 = memref.load %arg0[%c3] : memref<24xf32, #tpu.memory_space<smem>>
    %121 = vector.broadcast %117 : f32 to vector<4x256xf32>
    %122 = arith.mulf %121, %116 : vector<4x256xf32>
    %123 = arith.truncf %122 : vector<4x256xf32> to vector<4x256xbf16>
    %c0_37 = arith.constant 0 : index
    %c0_38 = arith.constant 0 : index
    %124 = vector.load %arg5[%c0_37, %c0_38] : memref<256x256xbf16, #tpu.memory_space<vmem>>, vector<256x256xbf16>
    %cst_39 = arith.constant dense<0.000000e+00> : vector<4x256xf32>
    %125 = tpu.matmul %123, %124, %cst_39 {dimension_numbers = #tpu.dot_dimension_numbers<[1], [0], [0], [1], [0, 0, 1, 1], [], []>} : vector<4x256xbf16>, vector<256x256xbf16>, vector<4x256xf32> -> vector<4x256xf32>
    %126 = vector.broadcast %34 : vector<1x256xf32> to vector<4x256xf32>
    %127 = arith.addf %125, %126 : vector<4x256xf32>
    %c0_40 = arith.constant 0 : index
    %c0_41 = arith.constant 0 : index
    %128 = vector.load %arg17[%c0_40, %c0_41] : memref<8x256xf32, #tpu.memory_space<vmem>>, vector<4x256xf32>
    tpu.vector_store %arg17[%c0_40, %c0_41], %127 {strides = array<i32>} : memref<8x256xf32, #tpu.memory_space<vmem>>, vector<4x256xf32>,
    %129 = vector.broadcast %35 : vector<1x256xf32> to vector<4x256xf32>
    %130 = arith.addf %125, %129 : vector<4x256xf32>
    %c4_42 = arith.constant 4 : index
    %c0_43 = arith.constant 0 : index
    %131 = vector.load %arg17[%c4_42, %c0_43] : memref<8x256xf32, #tpu.memory_space<vmem>>, vector<4x256xf32>
    tpu.vector_store %arg17[%c4_42, %c0_43], %130 {strides = array<i32>} : memref<8x256xf32, #tpu.memory_space<vmem>>, vector<4x256xf32>,
    %c0_44 = arith.constant 0 : index
    %c0_45 = arith.constant 0 : index
    %132 = vector.load %arg17[%c0_44, %c0_45] : memref<8x256xf32, #tpu.memory_space<vmem>>, vector<8x256xf32>
    %133 = math.tanh %132 : vector<8x256xf32>
    %134 = arith.truncf %133 : vector<8x256xf32> to vector<8x256xbf16>
    %c0_46 = arith.constant 0 : index
    %c0_47 = arith.constant 0 : index
    %135 = vector.load %arg7[%c0_46, %c0_47] : memref<256x256xbf16, #tpu.memory_space<vmem>>, vector<256x256xbf16>
    %cst_48 = arith.constant dense<0.000000e+00> : vector<8x256xf32>
    %136 = tpu.matmul %134, %135, %cst_48 {dimension_numbers = #tpu.dot_dimension_numbers<[1], [0], [0], [1], [0, 0, 1, 1], [], []>} : vector<8x256xbf16>, vector<256x256xbf16>, vector<8x256xf32> -> vector<8x256xf32>
    %137 = vector.extract_strided_slice %2 {offsets = [0, 0], sizes = [4, 1], strides = [1, 1]} : vector<4x8xf32> to vector<4x1xf32>
    %138 = vector.extract_strided_slice %136 {offsets = [0, 0], sizes = [1, 256], strides = [1, 1]} : vector<8x256xf32> to vector<1x256xf32>
    %139 = vector.extract_strided_slice %136 {offsets = [4, 0], sizes = [1, 256], strides = [1, 1]} : vector<8x256xf32> to vector<1x256xf32>
    %cst_49 = arith.constant 8.000000e+00 : f32
    %140 = vector.broadcast %cst_49 : f32 to vector<1x256xf32>
    %141 = arith.mulf %140, %138 : vector<1x256xf32>
    %cst_50 = arith.constant -7.000000e+00 : f32
    %142 = vector.broadcast %cst_50 : f32 to vector<1x256xf32>
    %143 = arith.mulf %142, %139 : vector<1x256xf32>
    %144 = arith.addf %141, %143 : vector<1x256xf32>
    %145 = vector.broadcast %137 : vector<4x1xf32> to vector<4x256xf32>
    %146 = vector.broadcast %144 : vector<1x256xf32> to vector<4x256xf32>
    %147 = arith.mulf %145, %146 : vector<4x256xf32>
    %148 = arith.subf %138, %139 : vector<1x256xf32>
    %149 = vector.broadcast %137 : vector<4x1xf32> to vector<4x256xf32>
    %150 = vector.broadcast %148 : vector<1x256xf32> to vector<4x256xf32>
    %151 = arith.mulf %149, %150 : vector<4x256xf32>
    %152 = vector.extract_strided_slice %2 {offsets = [0, 1], sizes = [4, 1], strides = [1, 1]} : vector<4x8xf32> to vector<4x1xf32>
    %153 = vector.extract_strided_slice %136 {offsets = [1, 0], sizes = [1, 256], strides = [1, 1]} : vector<8x256xf32> to vector<1x256xf32>
    %154 = vector.extract_strided_slice %136 {offsets = [5, 0], sizes = [1, 256], strides = [1, 1]} : vector<8x256xf32> to vector<1x256xf32>
    %cst_51 = arith.constant 8.000000e+00 : f32
    %155 = vector.broadcast %cst_51 : f32 to vector<1x256xf32>
    %156 = arith.mulf %155, %153 : vector<1x256xf32>
    %cst_52 = arith.constant -7.000000e+00 : f32
    %157 = vector.broadcast %cst_52 : f32 to vector<1x256xf32>
    %158 = arith.mulf %157, %154 : vector<1x256xf32>
    %159 = arith.addf %156, %158 : vector<1x256xf32>
    %160 = vector.broadcast %152 : vector<4x1xf32> to vector<4x256xf32>
    %161 = vector.broadcast %159 : vector<1x256xf32> to vector<4x256xf32>
    %162 = arith.mulf %160, %161 : vector<4x256xf32>
    %163 = arith.subf %153, %154 : vector<1x256xf32>
    %164 = vector.broadcast %152 : vector<4x1xf32> to vector<4x256xf32>
    %165 = vector.broadcast %163 : vector<1x256xf32> to vector<4x256xf32>
    %166 = arith.mulf %164, %165 : vector<4x256xf32>
    %167 = arith.addf %147, %162 : vector<4x256xf32>
    %168 = arith.addf %151, %166 : vector<4x256xf32>
    %169 = vector.extract_strided_slice %2 {offsets = [0, 2], sizes = [4, 1], strides = [1, 1]} : vector<4x8xf32> to vector<4x1xf32>
    %170 = vector.extract_strided_slice %136 {offsets = [2, 0], sizes = [1, 256], strides = [1, 1]} : vector<8x256xf32> to vector<1x256xf32>
    %171 = vector.extract_strided_slice %136 {offsets = [6, 0], sizes = [1, 256], strides = [1, 1]} : vector<8x256xf32> to vector<1x256xf32>
    %cst_53 = arith.constant 8.000000e+00 : f32
    %172 = vector.broadcast %cst_53 : f32 to vector<1x256xf32>
    %173 = arith.mulf %172, %170 : vector<1x256xf32>
    %cst_54 = arith.constant -7.000000e+00 : f32
    %174 = vector.broadcast %cst_54 : f32 to vector<1x256xf32>
    %175 = arith.mulf %174, %171 : vector<1x256xf32>
    %176 = arith.addf %173, %175 : vector<1x256xf32>
    %177 = vector.broadcast %169 : vector<4x1xf32> to vector<4x256xf32>
    %178 = vector.broadcast %176 : vector<1x256xf32> to vector<4x256xf32>
    %179 = arith.mulf %177, %178 : vector<4x256xf32>
    %180 = arith.subf %170, %171 : vector<1x256xf32>
    %181 = vector.broadcast %169 : vector<4x1xf32> to vector<4x256xf32>
    %182 = vector.broadcast %180 : vector<1x256xf32> to vector<4x256xf32>
    %183 = arith.mulf %181, %182 : vector<4x256xf32>
    %184 = arith.addf %167, %179 : vector<4x256xf32>
    %185 = arith.addf %168, %183 : vector<4x256xf32>
    %186 = vector.extract_strided_slice %2 {offsets = [0, 3], sizes = [4, 1], strides = [1, 1]} : vector<4x8xf32> to vector<4x1xf32>
    %187 = vector.extract_strided_slice %136 {offsets = [3, 0], sizes = [1, 256], strides = [1, 1]} : vector<8x256xf32> to vector<1x256xf32>
    %188 = vector.extract_strided_slice %136 {offsets = [7, 0], sizes = [1, 256], strides = [1, 1]} : vector<8x256xf32> to vector<1x256xf32>
    %cst_55 = arith.constant 8.000000e+00 : f32
    %189 = vector.broadcast %cst_55 : f32 to vector<1x256xf32>
    %190 = arith.mulf %189, %187 : vector<1x256xf32>
    %cst_56 = arith.constant -7.000000e+00 : f32
    %191 = vector.broadcast %cst_56 : f32 to vector<1x256xf32>
    %192 = arith.mulf %191, %188 : vector<1x256xf32>
    %193 = arith.addf %190, %192 : vector<1x256xf32>
    %194 = vector.broadcast %186 : vector<4x1xf32> to vector<4x256xf32>
    %195 = vector.broadcast %193 : vector<1x256xf32> to vector<4x256xf32>
    %196 = arith.mulf %194, %195 : vector<4x256xf32>
    %197 = arith.subf %187, %188 : vector<1x256xf32>
    %198 = vector.broadcast %186 : vector<4x1xf32> to vector<4x256xf32>
    %199 = vector.broadcast %197 : vector<1x256xf32> to vector<4x256xf32>
    %200 = arith.mulf %198, %199 : vector<4x256xf32>
    %201 = arith.addf %184, %196 : vector<4x256xf32>
    %202 = arith.addf %185, %200 : vector<4x256xf32>
    %203 = arith.addf %201, %114 : vector<4x256xf32>
    %204 = vector.broadcast %118 : f32 to vector<4x256xf32>
    %205 = arith.mulf %204, %203 : vector<4x256xf32>
    %206 = arith.addf %116, %205 : vector<4x256xf32>
    %c0_57 = arith.constant 0 : index
    %c0_58 = arith.constant 0 : index
    %c0_59 = arith.constant 0 : index
    %207 = vector.load %arg3[%c0_57, %c0_58, %c0_59] : memref<6x4x256xf32, #tpu.memory_space<vmem>>, vector<1x4x256xf32>
    %208 = vector.shape_cast %207 : vector<1x4x256xf32> to vector<4x256xf32>
    %209 = vector.broadcast %119 : f32 to vector<4x256xf32>
    %210 = arith.mulf %209, %208 : vector<4x256xf32>
    %211 = arith.addf %206, %210 : vector<4x256xf32>
    %212 = arith.addf %202, %115 : vector<4x256xf32>
    %213 = math.absf %212 : vector<4x256xf32>
    %cst_60 = arith.constant dense<0.000000e+00> : vector<256xf32>
    %214 = vector.multi_reduction <add>, %213, %cst_60 [0] : vector<4x256xf32> to vector<256xf32>
    %215 = vector.shape_cast %214 : vector<256xf32> to vector<1x256xf32>
    %216 = vector.broadcast %120 : f32 to vector<1x256xf32>
    %217 = arith.mulf %216, %215 : vector<1x256xf32>
    %c0_61 = arith.constant 0 : index
    %c0_62 = arith.constant 0 : index
    %218 = vector.load %arg16[%c0_61, %c0_62] : memref<6x256xf32, #tpu.memory_space<vmem>>, vector<1x256xf32>
    tpu.vector_store %arg16[%c0_61, %c0_62], %217 {strides = array<i32>} : memref<6x256xf32, #tpu.memory_space<vmem>>, vector<1x256xf32>,
    %c4_63 = arith.constant 4 : index
    %219 = memref.load %arg0[%c4_63] : memref<24xf32, #tpu.memory_space<smem>>
    %c5 = arith.constant 5 : index
    %220 = memref.load %arg0[%c5] : memref<24xf32, #tpu.memory_space<smem>>
    %c6 = arith.constant 6 : index
    %221 = memref.load %arg0[%c6] : memref<24xf32, #tpu.memory_space<smem>>
    %c7 = arith.constant 7 : index
    %222 = memref.load %arg0[%c7] : memref<24xf32, #tpu.memory_space<smem>>
    %223 = vector.broadcast %219 : f32 to vector<4x256xf32>
    %224 = arith.mulf %223, %211 : vector<4x256xf32>
    %225 = arith.truncf %224 : vector<4x256xf32> to vector<4x256xbf16>
    %c0_64 = arith.constant 0 : index
    %c0_65 = arith.constant 0 : index
    %226 = vector.load %arg5[%c0_64, %c0_65] : memref<256x256xbf16, #tpu.memory_space<vmem>>, vector<256x256xbf16>
    %cst_66 = arith.constant dense<0.000000e+00> : vector<4x256xf32>
    %227 = tpu.matmul %225, %226, %cst_66 {dimension_numbers = #tpu.dot_dimension_numbers<[1], [0], [0], [1], [0, 0, 1, 1], [], []>} : vector<4x256xbf16>, vector<256x256xbf16>, vector<4x256xf32> -> vector<4x256xf32>
    %228 = vector.broadcast %34 : vector<1x256xf32> to vector<4x256xf32>
    %229 = arith.addf %227, %228 : vector<4x256xf32>
    %c0_67 = arith.constant 0 : index
    %c0_68 = arith.constant 0 : index
    %230 = vector.load %arg17[%c0_67, %c0_68] : memref<8x256xf32, #tpu.memory_space<vmem>>, vector<4x256xf32>
    tpu.vector_store %arg17[%c0_67, %c0_68], %229 {strides = array<i32>} : memref<8x256xf32, #tpu.memory_space<vmem>>, vector<4x256xf32>,
    %231 = vector.broadcast %35 : vector<1x256xf32> to vector<4x256xf32>
    %232 = arith.addf %227, %231 : vector<4x256xf32>
    %c4_69 = arith.constant 4 : index
    %c0_70 = arith.constant 0 : index
    %233 = vector.load %arg17[%c4_69, %c0_70] : memref<8x256xf32, #tpu.memory_space<vmem>>, vector<4x256xf32>
    tpu.vector_store %arg17[%c4_69, %c0_70], %232 {strides = array<i32>} : memref<8x256xf32, #tpu.memory_space<vmem>>, vector<4x256xf32>,
    %c0_71 = arith.constant 0 : index
    %c0_72 = arith.constant 0 : index
    %234 = vector.load %arg17[%c0_71, %c0_72] : memref<8x256xf32, #tpu.memory_space<vmem>>, vector<8x256xf32>
    %235 = math.tanh %234 : vector<8x256xf32>
    %236 = arith.truncf %235 : vector<8x256xf32> to vector<8x256xbf16>
    %c0_73 = arith.constant 0 : index
    %c0_74 = arith.constant 0 : index
    %237 = vector.load %arg7[%c0_73, %c0_74] : memref<256x256xbf16, #tpu.memory_space<vmem>>, vector<256x256xbf16>
    %cst_75 = arith.constant dense<0.000000e+00> : vector<8x256xf32>
    %238 = tpu.matmul %236, %237, %cst_75 {dimension_numbers = #tpu.dot_dimension_numbers<[1], [0], [0], [1], [0, 0, 1, 1], [], []>} : vector<8x256xbf16>, vector<256x256xbf16>, vector<8x256xf32> -> vector<8x256xf32>
    %239 = vector.extract_strided_slice %2 {offsets = [0, 0], sizes = [4, 1], strides = [1, 1]} : vector<4x8xf32> to vector<4x1xf32>
    %240 = vector.extract_strided_slice %238 {offsets = [0, 0], sizes = [1, 256], strides = [1, 1]} : vector<8x256xf32> to vector<1x256xf32>
    %241 = vector.extract_strided_slice %238 {offsets = [4, 0], sizes = [1, 256], strides = [1, 1]} : vector<8x256xf32> to vector<1x256xf32>
    %cst_76 = arith.constant 8.000000e+00 : f32
    %242 = vector.broadcast %cst_76 : f32 to vector<1x256xf32>
    %243 = arith.mulf %242, %240 : vector<1x256xf32>
    %cst_77 = arith.constant -7.000000e+00 : f32
    %244 = vector.broadcast %cst_77 : f32 to vector<1x256xf32>
    %245 = arith.mulf %244, %241 : vector<1x256xf32>
    %246 = arith.addf %243, %245 : vector<1x256xf32>
    %247 = vector.broadcast %239 : vector<4x1xf32> to vector<4x256xf32>
    %248 = vector.broadcast %246 : vector<1x256xf32> to vector<4x256xf32>
    %249 = arith.mulf %247, %248 : vector<4x256xf32>
    %250 = arith.subf %240, %241 : vector<1x256xf32>
    %251 = vector.broadcast %239 : vector<4x1xf32> to vector<4x256xf32>
    %252 = vector.broadcast %250 : vector<1x256xf32> to vector<4x256xf32>
    %253 = arith.mulf %251, %252 : vector<4x256xf32>
    %254 = vector.extract_strided_slice %2 {offsets = [0, 1], sizes = [4, 1], strides = [1, 1]} : vector<4x8xf32> to vector<4x1xf32>
    %255 = vector.extract_strided_slice %238 {offsets = [1, 0], sizes = [1, 256], strides = [1, 1]} : vector<8x256xf32> to vector<1x256xf32>
    %256 = vector.extract_strided_slice %238 {offsets = [5, 0], sizes = [1, 256], strides = [1, 1]} : vector<8x256xf32> to vector<1x256xf32>
    %cst_78 = arith.constant 8.000000e+00 : f32
    %257 = vector.broadcast %cst_78 : f32 to vector<1x256xf32>
    %258 = arith.mulf %257, %255 : vector<1x256xf32>
    %cst_79 = arith.constant -7.000000e+00 : f32
    %259 = vector.broadcast %cst_79 : f32 to vector<1x256xf32>
    %260 = arith.mulf %259, %256 : vector<1x256xf32>
    %261 = arith.addf %258, %260 : vector<1x256xf32>
    %262 = vector.broadcast %254 : vector<4x1xf32> to vector<4x256xf32>
    %263 = vector.broadcast %261 : vector<1x256xf32> to vector<4x256xf32>
    %264 = arith.mulf %262, %263 : vector<4x256xf32>
    %265 = arith.subf %255, %256 : vector<1x256xf32>
    %266 = vector.broadcast %254 : vector<4x1xf32> to vector<4x256xf32>
    %267 = vector.broadcast %265 : vector<1x256xf32> to vector<4x256xf32>
    %268 = arith.mulf %266, %267 : vector<4x256xf32>
    %269 = arith.addf %249, %264 : vector<4x256xf32>
    %270 = arith.addf %253, %268 : vector<4x256xf32>
    %271 = vector.extract_strided_slice %2 {offsets = [0, 2], sizes = [4, 1], strides = [1, 1]} : vector<4x8xf32> to vector<4x1xf32>
    %272 = vector.extract_strided_slice %238 {offsets = [2, 0], sizes = [1, 256], strides = [1, 1]} : vector<8x256xf32> to vector<1x256xf32>
    %273 = vector.extract_strided_slice %238 {offsets = [6, 0], sizes = [1, 256], strides = [1, 1]} : vector<8x256xf32> to vector<1x256xf32>
    %cst_80 = arith.constant 8.000000e+00 : f32
    %274 = vector.broadcast %cst_80 : f32 to vector<1x256xf32>
    %275 = arith.mulf %274, %272 : vector<1x256xf32>
    %cst_81 = arith.constant -7.000000e+00 : f32
    %276 = vector.broadcast %cst_81 : f32 to vector<1x256xf32>
    %277 = arith.mulf %276, %273 : vector<1x256xf32>
    %278 = arith.addf %275, %277 : vector<1x256xf32>
    %279 = vector.broadcast %271 : vector<4x1xf32> to vector<4x256xf32>
    %280 = vector.broadcast %278 : vector<1x256xf32> to vector<4x256xf32>
    %281 = arith.mulf %279, %280 : vector<4x256xf32>
    %282 = arith.subf %272, %273 : vector<1x256xf32>
    %283 = vector.broadcast %271 : vector<4x1xf32> to vector<4x256xf32>
    %284 = vector.broadcast %282 : vector<1x256xf32> to vector<4x256xf32>
    %285 = arith.mulf %283, %284 : vector<4x256xf32>
    %286 = arith.addf %269, %281 : vector<4x256xf32>
    %287 = arith.addf %270, %285 : vector<4x256xf32>
    %288 = vector.extract_strided_slice %2 {offsets = [0, 3], sizes = [4, 1], strides = [1, 1]} : vector<4x8xf32> to vector<4x1xf32>
    %289 = vector.extract_strided_slice %238 {offsets = [3, 0], sizes = [1, 256], strides = [1, 1]} : vector<8x256xf32> to vector<1x256xf32>
    %290 = vector.extract_strided_slice %238 {offsets = [7, 0], sizes = [1, 256], strides = [1, 1]} : vector<8x256xf32> to vector<1x256xf32>
    %cst_82 = arith.constant 8.000000e+00 : f32
    %291 = vector.broadcast %cst_82 : f32 to vector<1x256xf32>
    %292 = arith.mulf %291, %289 : vector<1x256xf32>
    %cst_83 = arith.constant -7.000000e+00 : f32
    %293 = vector.broadcast %cst_83 : f32 to vector<1x256xf32>
    %294 = arith.mulf %293, %290 : vector<1x256xf32>
    %295 = arith.addf %292, %294 : vector<1x256xf32>
    %296 = vector.broadcast %288 : vector<4x1xf32> to vector<4x256xf32>
    %297 = vector.broadcast %295 : vector<1x256xf32> to vector<4x256xf32>
    %298 = arith.mulf %296, %297 : vector<4x256xf32>
    %299 = arith.subf %289, %290 : vector<1x256xf32>
    %300 = vector.broadcast %288 : vector<4x1xf32> to vector<4x256xf32>
    %301 = vector.broadcast %299 : vector<1x256xf32> to vector<4x256xf32>
    %302 = arith.mulf %300, %301 : vector<4x256xf32>
    %303 = arith.addf %286, %298 : vector<4x256xf32>
    %304 = arith.addf %287, %302 : vector<4x256xf32>
    %305 = arith.addf %303, %114 : vector<4x256xf32>
    %306 = vector.broadcast %220 : f32 to vector<4x256xf32>
    %307 = arith.mulf %306, %305 : vector<4x256xf32>
    %308 = arith.addf %211, %307 : vector<4x256xf32>
    %c1_84 = arith.constant 1 : index
    %c0_85 = arith.constant 0 : index
    %c0_86 = arith.constant 0 : index
    %309 = vector.load %arg3[%c1_84, %c0_85, %c0_86] : memref<6x4x256xf32, #tpu.memory_space<vmem>>, vector<1x4x256xf32>
    %310 = vector.shape_cast %309 : vector<1x4x256xf32> to vector<4x256xf32>
    %311 = vector.broadcast %221 : f32 to vector<4x256xf32>
    %312 = arith.mulf %311, %310 : vector<4x256xf32>
    %313 = arith.addf %308, %312 : vector<4x256xf32>
    %314 = arith.addf %304, %115 : vector<4x256xf32>
    %315 = math.absf %314 : vector<4x256xf32>
    %cst_87 = arith.constant dense<0.000000e+00> : vector<256xf32>
    %316 = vector.multi_reduction <add>, %315, %cst_87 [0] : vector<4x256xf32> to vector<256xf32>
    %317 = vector.shape_cast %316 : vector<256xf32> to vector<1x256xf32>
    %318 = vector.broadcast %222 : f32 to vector<1x256xf32>
    %319 = arith.mulf %318, %317 : vector<1x256xf32>
    %c1_88 = arith.constant 1 : index
    %c0_89 = arith.constant 0 : index
    %320 = vector.load %arg16[%c1_88, %c0_89] : memref<6x256xf32, #tpu.memory_space<vmem>>, vector<1x256xf32>
    tpu.vector_store %arg16[%c1_88, %c0_89], %319 {strides = array<i32>} : memref<6x256xf32, #tpu.memory_space<vmem>>, vector<1x256xf32>,
    %c8 = arith.constant 8 : index
    %321 = memref.load %arg0[%c8] : memref<24xf32, #tpu.memory_space<smem>>
    %c9 = arith.constant 9 : index
    %322 = memref.load %arg0[%c9] : memref<24xf32, #tpu.memory_space<smem>>
    %c10 = arith.constant 10 : index
    %323 = memref.load %arg0[%c10] : memref<24xf32, #tpu.memory_space<smem>>
    %c11 = arith.constant 11 : index
    %324 = memref.load %arg0[%c11] : memref<24xf32, #tpu.memory_space<smem>>
    %325 = vector.broadcast %321 : f32 to vector<4x256xf32>
    %326 = arith.mulf %325, %313 : vector<4x256xf32>
    %327 = arith.truncf %326 : vector<4x256xf32> to vector<4x256xbf16>
    %c0_90 = arith.constant 0 : index
    %c0_91 = arith.constant 0 : index
    %328 = vector.load %arg5[%c0_90, %c0_91] : memref<256x256xbf16, #tpu.memory_space<vmem>>, vector<256x256xbf16>
    %cst_92 = arith.constant dense<0.000000e+00> : vector<4x256xf32>
    %329 = tpu.matmul %327, %328, %cst_92 {dimension_numbers = #tpu.dot_dimension_numbers<[1], [0], [0], [1], [0, 0, 1, 1], [], []>} : vector<4x256xbf16>, vector<256x256xbf16>, vector<4x256xf32> -> vector<4x256xf32>
    %330 = vector.broadcast %34 : vector<1x256xf32> to vector<4x256xf32>
    %331 = arith.addf %329, %330 : vector<4x256xf32>
    %c0_93 = arith.constant 0 : index
    %c0_94 = arith.constant 0 : index
    %332 = vector.load %arg17[%c0_93, %c0_94] : memref<8x256xf32, #tpu.memory_space<vmem>>, vector<4x256xf32>
    tpu.vector_store %arg17[%c0_93, %c0_94], %331 {strides = array<i32>} : memref<8x256xf32, #tpu.memory_space<vmem>>, vector<4x256xf32>,
    %333 = vector.broadcast %35 : vector<1x256xf32> to vector<4x256xf32>
    %334 = arith.addf %329, %333 : vector<4x256xf32>
    %c4_95 = arith.constant 4 : index
    %c0_96 = arith.constant 0 : index
    %335 = vector.load %arg17[%c4_95, %c0_96] : memref<8x256xf32, #tpu.memory_space<vmem>>, vector<4x256xf32>
    tpu.vector_store %arg17[%c4_95, %c0_96], %334 {strides = array<i32>} : memref<8x256xf32, #tpu.memory_space<vmem>>, vector<4x256xf32>,
    %c0_97 = arith.constant 0 : index
    %c0_98 = arith.constant 0 : index
    %336 = vector.load %arg17[%c0_97, %c0_98] : memref<8x256xf32, #tpu.memory_space<vmem>>, vector<8x256xf32>
    %337 = math.tanh %336 : vector<8x256xf32>
    %338 = arith.truncf %337 : vector<8x256xf32> to vector<8x256xbf16>
    %c0_99 = arith.constant 0 : index
    %c0_100 = arith.constant 0 : index
    %339 = vector.load %arg7[%c0_99, %c0_100] : memref<256x256xbf16, #tpu.memory_space<vmem>>, vector<256x256xbf16>
    %cst_101 = arith.constant dense<0.000000e+00> : vector<8x256xf32>
    %340 = tpu.matmul %338, %339, %cst_101 {dimension_numbers = #tpu.dot_dimension_numbers<[1], [0], [0], [1], [0, 0, 1, 1], [], []>} : vector<8x256xbf16>, vector<256x256xbf16>, vector<8x256xf32> -> vector<8x256xf32>
    %341 = vector.extract_strided_slice %2 {offsets = [0, 0], sizes = [4, 1], strides = [1, 1]} : vector<4x8xf32> to vector<4x1xf32>
    %342 = vector.extract_strided_slice %340 {offsets = [0, 0], sizes = [1, 256], strides = [1, 1]} : vector<8x256xf32> to vector<1x256xf32>
    %343 = vector.extract_strided_slice %340 {offsets = [4, 0], sizes = [1, 256], strides = [1, 1]} : vector<8x256xf32> to vector<1x256xf32>
    %cst_102 = arith.constant 8.000000e+00 : f32
    %344 = vector.broadcast %cst_102 : f32 to vector<1x256xf32>
    %345 = arith.mulf %344, %342 : vector<1x256xf32>
    %cst_103 = arith.constant -7.000000e+00 : f32
    %346 = vector.broadcast %cst_103 : f32 to vector<1x256xf32>
    %347 = arith.mulf %346, %343 : vector<1x256xf32>
    %348 = arith.addf %345, %347 : vector<1x256xf32>
    %349 = vector.broadcast %341 : vector<4x1xf32> to vector<4x256xf32>
    %350 = vector.broadcast %348 : vector<1x256xf32> to vector<4x256xf32>
    %351 = arith.mulf %349, %350 : vector<4x256xf32>
    %352 = arith.subf %342, %343 : vector<1x256xf32>
    %353 = vector.broadcast %341 : vector<4x1xf32> to vector<4x256xf32>
    %354 = vector.broadcast %352 : vector<1x256xf32> to vector<4x256xf32>
    %355 = arith.mulf %353, %354 : vector<4x256xf32>
    %356 = vector.extract_strided_slice %2 {offsets = [0, 1], sizes = [4, 1], strides = [1, 1]} : vector<4x8xf32> to vector<4x1xf32>
    %357 = vector.extract_strided_slice %340 {offsets = [1, 0], sizes = [1, 256], strides = [1, 1]} : vector<8x256xf32> to vector<1x256xf32>
    %358 = vector.extract_strided_slice %340 {offsets = [5, 0], sizes = [1, 256], strides = [1, 1]} : vector<8x256xf32> to vector<1x256xf32>
    %cst_104 = arith.constant 8.000000e+00 : f32
    %359 = vector.broadcast %cst_104 : f32 to vector<1x256xf32>
    %360 = arith.mulf %359, %357 : vector<1x256xf32>
    %cst_105 = arith.constant -7.000000e+00 : f32
    %361 = vector.broadcast %cst_105 : f32 to vector<1x256xf32>
    %362 = arith.mulf %361, %358 : vector<1x256xf32>
    %363 = arith.addf %360, %362 : vector<1x256xf32>
    %364 = vector.broadcast %356 : vector<4x1xf32> to vector<4x256xf32>
    %365 = vector.broadcast %363 : vector<1x256xf32> to vector<4x256xf32>
    %366 = arith.mulf %364, %365 : vector<4x256xf32>
    %367 = arith.subf %357, %358 : vector<1x256xf32>
    %368 = vector.broadcast %356 : vector<4x1xf32> to vector<4x256xf32>
    %369 = vector.broadcast %367 : vector<1x256xf32> to vector<4x256xf32>
    %370 = arith.mulf %368, %369 : vector<4x256xf32>
    %371 = arith.addf %351, %366 : vector<4x256xf32>
    %372 = arith.addf %355, %370 : vector<4x256xf32>
    %373 = vector.extract_strided_slice %2 {offsets = [0, 2], sizes = [4, 1], strides = [1, 1]} : vector<4x8xf32> to vector<4x1xf32>
    %374 = vector.extract_strided_slice %340 {offsets = [2, 0], sizes = [1, 256], strides = [1, 1]} : vector<8x256xf32> to vector<1x256xf32>
    %375 = vector.extract_strided_slice %340 {offsets = [6, 0], sizes = [1, 256], strides = [1, 1]} : vector<8x256xf32> to vector<1x256xf32>
    %cst_106 = arith.constant 8.000000e+00 : f32
    %376 = vector.broadcast %cst_106 : f32 to vector<1x256xf32>
    %377 = arith.mulf %376, %374 : vector<1x256xf32>
    %cst_107 = arith.constant -7.000000e+00 : f32
    %378 = vector.broadcast %cst_107 : f32 to vector<1x256xf32>
    %379 = arith.mulf %378, %375 : vector<1x256xf32>
    %380 = arith.addf %377, %379 : vector<1x256xf32>
    %381 = vector.broadcast %373 : vector<4x1xf32> to vector<4x256xf32>
    %382 = vector.broadcast %380 : vector<1x256xf32> to vector<4x256xf32>
    %383 = arith.mulf %381, %382 : vector<4x256xf32>
    %384 = arith.subf %374, %375 : vector<1x256xf32>
    %385 = vector.broadcast %373 : vector<4x1xf32> to vector<4x256xf32>
    %386 = vector.broadcast %384 : vector<1x256xf32> to vector<4x256xf32>
    %387 = arith.mulf %385, %386 : vector<4x256xf32>
    %388 = arith.addf %371, %383 : vector<4x256xf32>
    %389 = arith.addf %372, %387 : vector<4x256xf32>
    %390 = vector.extract_strided_slice %2 {offsets = [0, 3], sizes = [4, 1], strides = [1, 1]} : vector<4x8xf32> to vector<4x1xf32>
    %391 = vector.extract_strided_slice %340 {offsets = [3, 0], sizes = [1, 256], strides = [1, 1]} : vector<8x256xf32> to vector<1x256xf32>
    %392 = vector.extract_strided_slice %340 {offsets = [7, 0], sizes = [1, 256], strides = [1, 1]} : vector<8x256xf32> to vector<1x256xf32>
    %cst_108 = arith.constant 8.000000e+00 : f32
    %393 = vector.broadcast %cst_108 : f32 to vector<1x256xf32>
    %394 = arith.mulf %393, %391 : vector<1x256xf32>
    %cst_109 = arith.constant -7.000000e+00 : f32
    %395 = vector.broadcast %cst_109 : f32 to vector<1x256xf32>
    %396 = arith.mulf %395, %392 : vector<1x256xf32>
    %397 = arith.addf %394, %396 : vector<1x256xf32>
    %398 = vector.broadcast %390 : vector<4x1xf32> to vector<4x256xf32>
    %399 = vector.broadcast %397 : vector<1x256xf32> to vector<4x256xf32>
    %400 = arith.mulf %398, %399 : vector<4x256xf32>
    %401 = arith.subf %391, %392 : vector<1x256xf32>
    %402 = vector.broadcast %390 : vector<4x1xf32> to vector<4x256xf32>
    %403 = vector.broadcast %401 : vector<1x256xf32> to vector<4x256xf32>
    %404 = arith.mulf %402, %403 : vector<4x256xf32>
    %405 = arith.addf %388, %400 : vector<4x256xf32>
    %406 = arith.addf %389, %404 : vector<4x256xf32>
    %407 = arith.addf %405, %114 : vector<4x256xf32>
    %408 = vector.broadcast %322 : f32 to vector<4x256xf32>
    %409 = arith.mulf %408, %407 : vector<4x256xf32>
    %410 = arith.addf %313, %409 : vector<4x256xf32>
    %c2_110 = arith.constant 2 : index
    %c0_111 = arith.constant 0 : index
    %c0_112 = arith.constant 0 : index
    %411 = vector.load %arg3[%c2_110, %c0_111, %c0_112] : memref<6x4x256xf32, #tpu.memory_space<vmem>>, vector<1x4x256xf32>
    %412 = vector.shape_cast %411 : vector<1x4x256xf32> to vector<4x256xf32>
    %413 = vector.broadcast %323 : f32 to vector<4x256xf32>
    %414 = arith.mulf %413, %412 : vector<4x256xf32>
    %415 = arith.addf %410, %414 : vector<4x256xf32>
    %416 = arith.addf %406, %115 : vector<4x256xf32>
    %417 = math.absf %416 : vector<4x256xf32>
    %cst_113 = arith.constant dense<0.000000e+00> : vector<256xf32>
    %418 = vector.multi_reduction <add>, %417, %cst_113 [0] : vector<4x256xf32> to vector<256xf32>
    %419 = vector.shape_cast %418 : vector<256xf32> to vector<1x256xf32>
    %420 = vector.broadcast %324 : f32 to vector<1x256xf32>
    %421 = arith.mulf %420, %419 : vector<1x256xf32>
    %c2_114 = arith.constant 2 : index
    %c0_115 = arith.constant 0 : index
    %422 = vector.load %arg16[%c2_114, %c0_115] : memref<6x256xf32, #tpu.memory_space<vmem>>, vector<1x256xf32>
    tpu.vector_store %arg16[%c2_114, %c0_115], %421 {strides = array<i32>} : memref<6x256xf32, #tpu.memory_space<vmem>>, vector<1x256xf32>,
    %c12 = arith.constant 12 : index
    %423 = memref.load %arg0[%c12] : memref<24xf32, #tpu.memory_space<smem>>
    %c13 = arith.constant 13 : index
    %424 = memref.load %arg0[%c13] : memref<24xf32, #tpu.memory_space<smem>>
    %c14 = arith.constant 14 : index
    %425 = memref.load %arg0[%c14] : memref<24xf32, #tpu.memory_space<smem>>
    %c15 = arith.constant 15 : index
    %426 = memref.load %arg0[%c15] : memref<24xf32, #tpu.memory_space<smem>>
    %427 = vector.broadcast %423 : f32 to vector<4x256xf32>
    %428 = arith.mulf %427, %415 : vector<4x256xf32>
    %429 = arith.truncf %428 : vector<4x256xf32> to vector<4x256xbf16>
    %c0_116 = arith.constant 0 : index
    %c0_117 = arith.constant 0 : index
    %430 = vector.load %arg5[%c0_116, %c0_117] : memref<256x256xbf16, #tpu.memory_space<vmem>>, vector<256x256xbf16>
    %cst_118 = arith.constant dense<0.000000e+00> : vector<4x256xf32>
    %431 = tpu.matmul %429, %430, %cst_118 {dimension_numbers = #tpu.dot_dimension_numbers<[1], [0], [0], [1], [0, 0, 1, 1], [], []>} : vector<4x256xbf16>, vector<256x256xbf16>, vector<4x256xf32> -> vector<4x256xf32>
    %432 = vector.broadcast %34 : vector<1x256xf32> to vector<4x256xf32>
    %433 = arith.addf %431, %432 : vector<4x256xf32>
    %c0_119 = arith.constant 0 : index
    %c0_120 = arith.constant 0 : index
    %434 = vector.load %arg17[%c0_119, %c0_120] : memref<8x256xf32, #tpu.memory_space<vmem>>, vector<4x256xf32>
    tpu.vector_store %arg17[%c0_119, %c0_120], %433 {strides = array<i32>} : memref<8x256xf32, #tpu.memory_space<vmem>>, vector<4x256xf32>,
    %435 = vector.broadcast %35 : vector<1x256xf32> to vector<4x256xf32>
    %436 = arith.addf %431, %435 : vector<4x256xf32>
    %c4_121 = arith.constant 4 : index
    %c0_122 = arith.constant 0 : index
    %437 = vector.load %arg17[%c4_121, %c0_122] : memref<8x256xf32, #tpu.memory_space<vmem>>, vector<4x256xf32>
    tpu.vector_store %arg17[%c4_121, %c0_122], %436 {strides = array<i32>} : memref<8x256xf32, #tpu.memory_space<vmem>>, vector<4x256xf32>,
    %c0_123 = arith.constant 0 : index
    %c0_124 = arith.constant 0 : index
    %438 = vector.load %arg17[%c0_123, %c0_124] : memref<8x256xf32, #tpu.memory_space<vmem>>, vector<8x256xf32>
    %439 = math.tanh %438 : vector<8x256xf32>
    %440 = arith.truncf %439 : vector<8x256xf32> to vector<8x256xbf16>
    %c0_125 = arith.constant 0 : index
    %c0_126 = arith.constant 0 : index
    %441 = vector.load %arg7[%c0_125, %c0_126] : memref<256x256xbf16, #tpu.memory_space<vmem>>, vector<256x256xbf16>
    %cst_127 = arith.constant dense<0.000000e+00> : vector<8x256xf32>
    %442 = tpu.matmul %440, %441, %cst_127 {dimension_numbers = #tpu.dot_dimension_numbers<[1], [0], [0], [1], [0, 0, 1, 1], [], []>} : vector<8x256xbf16>, vector<256x256xbf16>, vector<8x256xf32> -> vector<8x256xf32>
    %443 = vector.extract_strided_slice %2 {offsets = [0, 0], sizes = [4, 1], strides = [1, 1]} : vector<4x8xf32> to vector<4x1xf32>
    %444 = vector.extract_strided_slice %442 {offsets = [0, 0], sizes = [1, 256], strides = [1, 1]} : vector<8x256xf32> to vector<1x256xf32>
    %445 = vector.extract_strided_slice %442 {offsets = [4, 0], sizes = [1, 256], strides = [1, 1]} : vector<8x256xf32> to vector<1x256xf32>
    %cst_128 = arith.constant 8.000000e+00 : f32
    %446 = vector.broadcast %cst_128 : f32 to vector<1x256xf32>
    %447 = arith.mulf %446, %444 : vector<1x256xf32>
    %cst_129 = arith.constant -7.000000e+00 : f32
    %448 = vector.broadcast %cst_129 : f32 to vector<1x256xf32>
    %449 = arith.mulf %448, %445 : vector<1x256xf32>
    %450 = arith.addf %447, %449 : vector<1x256xf32>
    %451 = vector.broadcast %443 : vector<4x1xf32> to vector<4x256xf32>
    %452 = vector.broadcast %450 : vector<1x256xf32> to vector<4x256xf32>
    %453 = arith.mulf %451, %452 : vector<4x256xf32>
    %454 = arith.subf %444, %445 : vector<1x256xf32>
    %455 = vector.broadcast %443 : vector<4x1xf32> to vector<4x256xf32>
    %456 = vector.broadcast %454 : vector<1x256xf32> to vector<4x256xf32>
    %457 = arith.mulf %455, %456 : vector<4x256xf32>
    %458 = vector.extract_strided_slice %2 {offsets = [0, 1], sizes = [4, 1], strides = [1, 1]} : vector<4x8xf32> to vector<4x1xf32>
    %459 = vector.extract_strided_slice %442 {offsets = [1, 0], sizes = [1, 256], strides = [1, 1]} : vector<8x256xf32> to vector<1x256xf32>
    %460 = vector.extract_strided_slice %442 {offsets = [5, 0], sizes = [1, 256], strides = [1, 1]} : vector<8x256xf32> to vector<1x256xf32>
    %cst_130 = arith.constant 8.000000e+00 : f32
    %461 = vector.broadcast %cst_130 : f32 to vector<1x256xf32>
    %462 = arith.mulf %461, %459 : vector<1x256xf32>
    %cst_131 = arith.constant -7.000000e+00 : f32
    %463 = vector.broadcast %cst_131 : f32 to vector<1x256xf32>
    %464 = arith.mulf %463, %460 : vector<1x256xf32>
    %465 = arith.addf %462, %464 : vector<1x256xf32>
    %466 = vector.broadcast %458 : vector<4x1xf32> to vector<4x256xf32>
    %467 = vector.broadcast %465 : vector<1x256xf32> to vector<4x256xf32>
    %468 = arith.mulf %466, %467 : vector<4x256xf32>
    %469 = arith.subf %459, %460 : vector<1x256xf32>
    %470 = vector.broadcast %458 : vector<4x1xf32> to vector<4x256xf32>
    %471 = vector.broadcast %469 : vector<1x256xf32> to vector<4x256xf32>
    %472 = arith.mulf %470, %471 : vector<4x256xf32>
    %473 = arith.addf %453, %468 : vector<4x256xf32>
    %474 = arith.addf %457, %472 : vector<4x256xf32>
    %475 = vector.extract_strided_slice %2 {offsets = [0, 2], sizes = [4, 1], strides = [1, 1]} : vector<4x8xf32> to vector<4x1xf32>
    %476 = vector.extract_strided_slice %442 {offsets = [2, 0], sizes = [1, 256], strides = [1, 1]} : vector<8x256xf32> to vector<1x256xf32>
    %477 = vector.extract_strided_slice %442 {offsets = [6, 0], sizes = [1, 256], strides = [1, 1]} : vector<8x256xf32> to vector<1x256xf32>
    %cst_132 = arith.constant 8.000000e+00 : f32
    %478 = vector.broadcast %cst_132 : f32 to vector<1x256xf32>
    %479 = arith.mulf %478, %476 : vector<1x256xf32>
    %cst_133 = arith.constant -7.000000e+00 : f32
    %480 = vector.broadcast %cst_133 : f32 to vector<1x256xf32>
    %481 = arith.mulf %480, %477 : vector<1x256xf32>
    %482 = arith.addf %479, %481 : vector<1x256xf32>
    %483 = vector.broadcast %475 : vector<4x1xf32> to vector<4x256xf32>
    %484 = vector.broadcast %482 : vector<1x256xf32> to vector<4x256xf32>
    %485 = arith.mulf %483, %484 : vector<4x256xf32>
    %486 = arith.subf %476, %477 : vector<1x256xf32>
    %487 = vector.broadcast %475 : vector<4x1xf32> to vector<4x256xf32>
    %488 = vector.broadcast %486 : vector<1x256xf32> to vector<4x256xf32>
    %489 = arith.mulf %487, %488 : vector<4x256xf32>
    %490 = arith.addf %473, %485 : vector<4x256xf32>
    %491 = arith.addf %474, %489 : vector<4x256xf32>
    %492 = vector.extract_strided_slice %2 {offsets = [0, 3], sizes = [4, 1], strides = [1, 1]} : vector<4x8xf32> to vector<4x1xf32>
    %493 = vector.extract_strided_slice %442 {offsets = [3, 0], sizes = [1, 256], strides = [1, 1]} : vector<8x256xf32> to vector<1x256xf32>
    %494 = vector.extract_strided_slice %442 {offsets = [7, 0], sizes = [1, 256], strides = [1, 1]} : vector<8x256xf32> to vector<1x256xf32>
    %cst_134 = arith.constant 8.000000e+00 : f32
    %495 = vector.broadcast %cst_134 : f32 to vector<1x256xf32>
    %496 = arith.mulf %495, %493 : vector<1x256xf32>
    %cst_135 = arith.constant -7.000000e+00 : f32
    %497 = vector.broadcast %cst_135 : f32 to vector<1x256xf32>
    %498 = arith.mulf %497, %494 : vector<1x256xf32>
    %499 = arith.addf %496, %498 : vector<1x256xf32>
    %500 = vector.broadcast %492 : vector<4x1xf32> to vector<4x256xf32>
    %501 = vector.broadcast %499 : vector<1x256xf32> to vector<4x256xf32>
    %502 = arith.mulf %500, %501 : vector<4x256xf32>
    %503 = arith.subf %493, %494 : vector<1x256xf32>
    %504 = vector.broadcast %492 : vector<4x1xf32> to vector<4x256xf32>
    %505 = vector.broadcast %503 : vector<1x256xf32> to vector<4x256xf32>
    %506 = arith.mulf %504, %505 : vector<4x256xf32>
    %507 = arith.addf %490, %502 : vector<4x256xf32>
    %508 = arith.addf %491, %506 : vector<4x256xf32>
    %509 = arith.addf %507, %114 : vector<4x256xf32>
    %510 = vector.broadcast %424 : f32 to vector<4x256xf32>
    %511 = arith.mulf %510, %509 : vector<4x256xf32>
    %512 = arith.addf %415, %511 : vector<4x256xf32>
    %c3_136 = arith.constant 3 : index
    %c0_137 = arith.constant 0 : index
    %c0_138 = arith.constant 0 : index
    %513 = vector.load %arg3[%c3_136, %c0_137, %c0_138] : memref<6x4x256xf32, #tpu.memory_space<vmem>>, vector<1x4x256xf32>
    %514 = vector.shape_cast %513 : vector<1x4x256xf32> to vector<4x256xf32>
    %515 = vector.broadcast %425 : f32 to vector<4x256xf32>
    %516 = arith.mulf %515, %514 : vector<4x256xf32>
    %517 = arith.addf %512, %516 : vector<4x256xf32>
    %518 = arith.addf %508, %115 : vector<4x256xf32>
    %519 = math.absf %518 : vector<4x256xf32>
    %cst_139 = arith.constant dense<0.000000e+00> : vector<256xf32>
    %520 = vector.multi_reduction <add>, %519, %cst_139 [0] : vector<4x256xf32> to vector<256xf32>
    %521 = vector.shape_cast %520 : vector<256xf32> to vector<1x256xf32>
    %522 = vector.broadcast %426 : f32 to vector<1x256xf32>
    %523 = arith.mulf %522, %521 : vector<1x256xf32>
    %c3_140 = arith.constant 3 : index
    %c0_141 = arith.constant 0 : index
    %524 = vector.load %arg16[%c3_140, %c0_141] : memref<6x256xf32, #tpu.memory_space<vmem>>, vector<1x256xf32>
    tpu.vector_store %arg16[%c3_140, %c0_141], %523 {strides = array<i32>} : memref<6x256xf32, #tpu.memory_space<vmem>>, vector<1x256xf32>,
    %c16 = arith.constant 16 : index
    %525 = memref.load %arg0[%c16] : memref<24xf32, #tpu.memory_space<smem>>
    %c17 = arith.constant 17 : index
    %526 = memref.load %arg0[%c17] : memref<24xf32, #tpu.memory_space<smem>>
    %c18 = arith.constant 18 : index
    %527 = memref.load %arg0[%c18] : memref<24xf32, #tpu.memory_space<smem>>
    %c19 = arith.constant 19 : index
    %528 = memref.load %arg0[%c19] : memref<24xf32, #tpu.memory_space<smem>>
    %529 = vector.broadcast %525 : f32 to vector<4x256xf32>
    %530 = arith.mulf %529, %517 : vector<4x256xf32>
    %531 = arith.truncf %530 : vector<4x256xf32> to vector<4x256xbf16>
    %c0_142 = arith.constant 0 : index
    %c0_143 = arith.constant 0 : index
    %532 = vector.load %arg5[%c0_142, %c0_143] : memref<256x256xbf16, #tpu.memory_space<vmem>>, vector<256x256xbf16>
    %cst_144 = arith.constant dense<0.000000e+00> : vector<4x256xf32>
    %533 = tpu.matmul %531, %532, %cst_144 {dimension_numbers = #tpu.dot_dimension_numbers<[1], [0], [0], [1], [0, 0, 1, 1], [], []>} : vector<4x256xbf16>, vector<256x256xbf16>, vector<4x256xf32> -> vector<4x256xf32>
    %534 = vector.broadcast %34 : vector<1x256xf32> to vector<4x256xf32>
    %535 = arith.addf %533, %534 : vector<4x256xf32>
    %c0_145 = arith.constant 0 : index
    %c0_146 = arith.constant 0 : index
    %536 = vector.load %arg17[%c0_145, %c0_146] : memref<8x256xf32, #tpu.memory_space<vmem>>, vector<4x256xf32>
    tpu.vector_store %arg17[%c0_145, %c0_146], %535 {strides = array<i32>} : memref<8x256xf32, #tpu.memory_space<vmem>>, vector<4x256xf32>,
    %537 = vector.broadcast %35 : vector<1x256xf32> to vector<4x256xf32>
    %538 = arith.addf %533, %537 : vector<4x256xf32>
    %c4_147 = arith.constant 4 : index
    %c0_148 = arith.constant 0 : index
    %539 = vector.load %arg17[%c4_147, %c0_148] : memref<8x256xf32, #tpu.memory_space<vmem>>, vector<4x256xf32>
    tpu.vector_store %arg17[%c4_147, %c0_148], %538 {strides = array<i32>} : memref<8x256xf32, #tpu.memory_space<vmem>>, vector<4x256xf32>,
    %c0_149 = arith.constant 0 : index
    %c0_150 = arith.constant 0 : index
    %540 = vector.load %arg17[%c0_149, %c0_150] : memref<8x256xf32, #tpu.memory_space<vmem>>, vector<8x256xf32>
    %541 = math.tanh %540 : vector<8x256xf32>
    %542 = arith.truncf %541 : vector<8x256xf32> to vector<8x256xbf16>
    %c0_151 = arith.constant 0 : index
    %c0_152 = arith.constant 0 : index
    %543 = vector.load %arg7[%c0_151, %c0_152] : memref<256x256xbf16, #tpu.memory_space<vmem>>, vector<256x256xbf16>
    %cst_153 = arith.constant dense<0.000000e+00> : vector<8x256xf32>
    %544 = tpu.matmul %542, %543, %cst_153 {dimension_numbers = #tpu.dot_dimension_numbers<[1], [0], [0], [1], [0, 0, 1, 1], [], []>} : vector<8x256xbf16>, vector<256x256xbf16>, vector<8x256xf32> -> vector<8x256xf32>
    %545 = vector.extract_strided_slice %2 {offsets = [0, 0], sizes = [4, 1], strides = [1, 1]} : vector<4x8xf32> to vector<4x1xf32>
    %546 = vector.extract_strided_slice %544 {offsets = [0, 0], sizes = [1, 256], strides = [1, 1]} : vector<8x256xf32> to vector<1x256xf32>
    %547 = vector.extract_strided_slice %544 {offsets = [4, 0], sizes = [1, 256], strides = [1, 1]} : vector<8x256xf32> to vector<1x256xf32>
    %cst_154 = arith.constant 8.000000e+00 : f32
    %548 = vector.broadcast %cst_154 : f32 to vector<1x256xf32>
    %549 = arith.mulf %548, %546 : vector<1x256xf32>
    %cst_155 = arith.constant -7.000000e+00 : f32
    %550 = vector.broadcast %cst_155 : f32 to vector<1x256xf32>
    %551 = arith.mulf %550, %547 : vector<1x256xf32>
    %552 = arith.addf %549, %551 : vector<1x256xf32>
    %553 = vector.broadcast %545 : vector<4x1xf32> to vector<4x256xf32>
    %554 = vector.broadcast %552 : vector<1x256xf32> to vector<4x256xf32>
    %555 = arith.mulf %553, %554 : vector<4x256xf32>
    %556 = arith.subf %546, %547 : vector<1x256xf32>
    %557 = vector.broadcast %545 : vector<4x1xf32> to vector<4x256xf32>
    %558 = vector.broadcast %556 : vector<1x256xf32> to vector<4x256xf32>
    %559 = arith.mulf %557, %558 : vector<4x256xf32>
    %560 = vector.extract_strided_slice %2 {offsets = [0, 1], sizes = [4, 1], strides = [1, 1]} : vector<4x8xf32> to vector<4x1xf32>
    %561 = vector.extract_strided_slice %544 {offsets = [1, 0], sizes = [1, 256], strides = [1, 1]} : vector<8x256xf32> to vector<1x256xf32>
    %562 = vector.extract_strided_slice %544 {offsets = [5, 0], sizes = [1, 256], strides = [1, 1]} : vector<8x256xf32> to vector<1x256xf32>
    %cst_156 = arith.constant 8.000000e+00 : f32
    %563 = vector.broadcast %cst_156 : f32 to vector<1x256xf32>
    %564 = arith.mulf %563, %561 : vector<1x256xf32>
    %cst_157 = arith.constant -7.000000e+00 : f32
    %565 = vector.broadcast %cst_157 : f32 to vector<1x256xf32>
    %566 = arith.mulf %565, %562 : vector<1x256xf32>
    %567 = arith.addf %564, %566 : vector<1x256xf32>
    %568 = vector.broadcast %560 : vector<4x1xf32> to vector<4x256xf32>
    %569 = vector.broadcast %567 : vector<1x256xf32> to vector<4x256xf32>
    %570 = arith.mulf %568, %569 : vector<4x256xf32>
    %571 = arith.subf %561, %562 : vector<1x256xf32>
    %572 = vector.broadcast %560 : vector<4x1xf32> to vector<4x256xf32>
    %573 = vector.broadcast %571 : vector<1x256xf32> to vector<4x256xf32>
    %574 = arith.mulf %572, %573 : vector<4x256xf32>
    %575 = arith.addf %555, %570 : vector<4x256xf32>
    %576 = arith.addf %559, %574 : vector<4x256xf32>
    %577 = vector.extract_strided_slice %2 {offsets = [0, 2], sizes = [4, 1], strides = [1, 1]} : vector<4x8xf32> to vector<4x1xf32>
    %578 = vector.extract_strided_slice %544 {offsets = [2, 0], sizes = [1, 256], strides = [1, 1]} : vector<8x256xf32> to vector<1x256xf32>
    %579 = vector.extract_strided_slice %544 {offsets = [6, 0], sizes = [1, 256], strides = [1, 1]} : vector<8x256xf32> to vector<1x256xf32>
    %cst_158 = arith.constant 8.000000e+00 : f32
    %580 = vector.broadcast %cst_158 : f32 to vector<1x256xf32>
    %581 = arith.mulf %580, %578 : vector<1x256xf32>
    %cst_159 = arith.constant -7.000000e+00 : f32
    %582 = vector.broadcast %cst_159 : f32 to vector<1x256xf32>
    %583 = arith.mulf %582, %579 : vector<1x256xf32>
    %584 = arith.addf %581, %583 : vector<1x256xf32>
    %585 = vector.broadcast %577 : vector<4x1xf32> to vector<4x256xf32>
    %586 = vector.broadcast %584 : vector<1x256xf32> to vector<4x256xf32>
    %587 = arith.mulf %585, %586 : vector<4x256xf32>
    %588 = arith.subf %578, %579 : vector<1x256xf32>
    %589 = vector.broadcast %577 : vector<4x1xf32> to vector<4x256xf32>
    %590 = vector.broadcast %588 : vector<1x256xf32> to vector<4x256xf32>
    %591 = arith.mulf %589, %590 : vector<4x256xf32>
    %592 = arith.addf %575, %587 : vector<4x256xf32>
    %593 = arith.addf %576, %591 : vector<4x256xf32>
    %594 = vector.extract_strided_slice %2 {offsets = [0, 3], sizes = [4, 1], strides = [1, 1]} : vector<4x8xf32> to vector<4x1xf32>
    %595 = vector.extract_strided_slice %544 {offsets = [3, 0], sizes = [1, 256], strides = [1, 1]} : vector<8x256xf32> to vector<1x256xf32>
    %596 = vector.extract_strided_slice %544 {offsets = [7, 0], sizes = [1, 256], strides = [1, 1]} : vector<8x256xf32> to vector<1x256xf32>
    %cst_160 = arith.constant 8.000000e+00 : f32
    %597 = vector.broadcast %cst_160 : f32 to vector<1x256xf32>
    %598 = arith.mulf %597, %595 : vector<1x256xf32>
    %cst_161 = arith.constant -7.000000e+00 : f32
    %599 = vector.broadcast %cst_161 : f32 to vector<1x256xf32>
    %600 = arith.mulf %599, %596 : vector<1x256xf32>
    %601 = arith.addf %598, %600 : vector<1x256xf32>
    %602 = vector.broadcast %594 : vector<4x1xf32> to vector<4x256xf32>
    %603 = vector.broadcast %601 : vector<1x256xf32> to vector<4x256xf32>
    %604 = arith.mulf %602, %603 : vector<4x256xf32>
    %605 = arith.subf %595, %596 : vector<1x256xf32>
    %606 = vector.broadcast %594 : vector<4x1xf32> to vector<4x256xf32>
    %607 = vector.broadcast %605 : vector<1x256xf32> to vector<4x256xf32>
    %608 = arith.mulf %606, %607 : vector<4x256xf32>
    %609 = arith.addf %592, %604 : vector<4x256xf32>
    %610 = arith.addf %593, %608 : vector<4x256xf32>
    %611 = arith.addf %609, %114 : vector<4x256xf32>
    %612 = vector.broadcast %526 : f32 to vector<4x256xf32>
    %613 = arith.mulf %612, %611 : vector<4x256xf32>
    %614 = arith.addf %517, %613 : vector<4x256xf32>
    %c4_162 = arith.constant 4 : index
    %c0_163 = arith.constant 0 : index
    %c0_164 = arith.constant 0 : index
    %615 = vector.load %arg3[%c4_162, %c0_163, %c0_164] : memref<6x4x256xf32, #tpu.memory_space<vmem>>, vector<1x4x256xf32>
    %616 = vector.shape_cast %615 : vector<1x4x256xf32> to vector<4x256xf32>
    %617 = vector.broadcast %527 : f32 to vector<4x256xf32>
    %618 = arith.mulf %617, %616 : vector<4x256xf32>
    %619 = arith.addf %614, %618 : vector<4x256xf32>
    %620 = arith.addf %610, %115 : vector<4x256xf32>
    %621 = math.absf %620 : vector<4x256xf32>
    %cst_165 = arith.constant dense<0.000000e+00> : vector<256xf32>
    %622 = vector.multi_reduction <add>, %621, %cst_165 [0] : vector<4x256xf32> to vector<256xf32>
    %623 = vector.shape_cast %622 : vector<256xf32> to vector<1x256xf32>
    %624 = vector.broadcast %528 : f32 to vector<1x256xf32>
    %625 = arith.mulf %624, %623 : vector<1x256xf32>
    %c4_166 = arith.constant 4 : index
    %c0_167 = arith.constant 0 : index
    %626 = vector.load %arg16[%c4_166, %c0_167] : memref<6x256xf32, #tpu.memory_space<vmem>>, vector<1x256xf32>
    tpu.vector_store %arg16[%c4_166, %c0_167], %625 {strides = array<i32>} : memref<6x256xf32, #tpu.memory_space<vmem>>, vector<1x256xf32>,
    %c20 = arith.constant 20 : index
    %627 = memref.load %arg0[%c20] : memref<24xf32, #tpu.memory_space<smem>>
    %c21 = arith.constant 21 : index
    %628 = memref.load %arg0[%c21] : memref<24xf32, #tpu.memory_space<smem>>
    %c22 = arith.constant 22 : index
    %629 = memref.load %arg0[%c22] : memref<24xf32, #tpu.memory_space<smem>>
    %c23 = arith.constant 23 : index
    %630 = memref.load %arg0[%c23] : memref<24xf32, #tpu.memory_space<smem>>
    %631 = vector.broadcast %627 : f32 to vector<4x256xf32>
    %632 = arith.mulf %631, %619 : vector<4x256xf32>
    %633 = arith.truncf %632 : vector<4x256xf32> to vector<4x256xbf16>
    %c0_168 = arith.constant 0 : index
    %c0_169 = arith.constant 0 : index
    %634 = vector.load %arg5[%c0_168, %c0_169] : memref<256x256xbf16, #tpu.memory_space<vmem>>, vector<256x256xbf16>
    %cst_170 = arith.constant dense<0.000000e+00> : vector<4x256xf32>
    %635 = tpu.matmul %633, %634, %cst_170 {dimension_numbers = #tpu.dot_dimension_numbers<[1], [0], [0], [1], [0, 0, 1, 1], [], []>} : vector<4x256xbf16>, vector<256x256xbf16>, vector<4x256xf32> -> vector<4x256xf32>
    %636 = vector.broadcast %34 : vector<1x256xf32> to vector<4x256xf32>
    %637 = arith.addf %635, %636 : vector<4x256xf32>
    %c0_171 = arith.constant 0 : index
    %c0_172 = arith.constant 0 : index
    %638 = vector.load %arg17[%c0_171, %c0_172] : memref<8x256xf32, #tpu.memory_space<vmem>>, vector<4x256xf32>
    tpu.vector_store %arg17[%c0_171, %c0_172], %637 {strides = array<i32>} : memref<8x256xf32, #tpu.memory_space<vmem>>, vector<4x256xf32>,
    %639 = vector.broadcast %35 : vector<1x256xf32> to vector<4x256xf32>
    %640 = arith.addf %635, %639 : vector<4x256xf32>
    %c4_173 = arith.constant 4 : index
    %c0_174 = arith.constant 0 : index
    %641 = vector.load %arg17[%c4_173, %c0_174] : memref<8x256xf32, #tpu.memory_space<vmem>>, vector<4x256xf32>
    tpu.vector_store %arg17[%c4_173, %c0_174], %640 {strides = array<i32>} : memref<8x256xf32, #tpu.memory_space<vmem>>, vector<4x256xf32>,
    %c0_175 = arith.constant 0 : index
    %c0_176 = arith.constant 0 : index
    %642 = vector.load %arg17[%c0_175, %c0_176] : memref<8x256xf32, #tpu.memory_space<vmem>>, vector<8x256xf32>
    %643 = math.tanh %642 : vector<8x256xf32>
    %644 = arith.truncf %643 : vector<8x256xf32> to vector<8x256xbf16>
    %c0_177 = arith.constant 0 : index
    %c0_178 = arith.constant 0 : index
    %645 = vector.load %arg7[%c0_177, %c0_178] : memref<256x256xbf16, #tpu.memory_space<vmem>>, vector<256x256xbf16>
    %cst_179 = arith.constant dense<0.000000e+00> : vector<8x256xf32>
    %646 = tpu.matmul %644, %645, %cst_179 {dimension_numbers = #tpu.dot_dimension_numbers<[1], [0], [0], [1], [0, 0, 1, 1], [], []>} : vector<8x256xbf16>, vector<256x256xbf16>, vector<8x256xf32> -> vector<8x256xf32>
    %647 = vector.extract_strided_slice %2 {offsets = [0, 0], sizes = [4, 1], strides = [1, 1]} : vector<4x8xf32> to vector<4x1xf32>
    %648 = vector.extract_strided_slice %646 {offsets = [0, 0], sizes = [1, 256], strides = [1, 1]} : vector<8x256xf32> to vector<1x256xf32>
    %649 = vector.extract_strided_slice %646 {offsets = [4, 0], sizes = [1, 256], strides = [1, 1]} : vector<8x256xf32> to vector<1x256xf32>
    %cst_180 = arith.constant 8.000000e+00 : f32
    %650 = vector.broadcast %cst_180 : f32 to vector<1x256xf32>
    %651 = arith.mulf %650, %648 : vector<1x256xf32>
    %cst_181 = arith.constant -7.000000e+00 : f32
    %652 = vector.broadcast %cst_181 : f32 to vector<1x256xf32>
    %653 = arith.mulf %652, %649 : vector<1x256xf32>
    %654 = arith.addf %651, %653 : vector<1x256xf32>
    %655 = vector.broadcast %647 : vector<4x1xf32> to vector<4x256xf32>
    %656 = vector.broadcast %654 : vector<1x256xf32> to vector<4x256xf32>
    %657 = arith.mulf %655, %656 : vector<4x256xf32>
    %658 = arith.subf %648, %649 : vector<1x256xf32>
    %659 = vector.broadcast %647 : vector<4x1xf32> to vector<4x256xf32>
    %660 = vector.broadcast %658 : vector<1x256xf32> to vector<4x256xf32>
    %661 = arith.mulf %659, %660 : vector<4x256xf32>
    %662 = vector.extract_strided_slice %2 {offsets = [0, 1], sizes = [4, 1], strides = [1, 1]} : vector<4x8xf32> to vector<4x1xf32>
    %663 = vector.extract_strided_slice %646 {offsets = [1, 0], sizes = [1, 256], strides = [1, 1]} : vector<8x256xf32> to vector<1x256xf32>
    %664 = vector.extract_strided_slice %646 {offsets = [5, 0], sizes = [1, 256], strides = [1, 1]} : vector<8x256xf32> to vector<1x256xf32>
    %cst_182 = arith.constant 8.000000e+00 : f32
    %665 = vector.broadcast %cst_182 : f32 to vector<1x256xf32>
    %666 = arith.mulf %665, %663 : vector<1x256xf32>
    %cst_183 = arith.constant -7.000000e+00 : f32
    %667 = vector.broadcast %cst_183 : f32 to vector<1x256xf32>
    %668 = arith.mulf %667, %664 : vector<1x256xf32>
    %669 = arith.addf %666, %668 : vector<1x256xf32>
    %670 = vector.broadcast %662 : vector<4x1xf32> to vector<4x256xf32>
    %671 = vector.broadcast %669 : vector<1x256xf32> to vector<4x256xf32>
    %672 = arith.mulf %670, %671 : vector<4x256xf32>
    %673 = arith.subf %663, %664 : vector<1x256xf32>
    %674 = vector.broadcast %662 : vector<4x1xf32> to vector<4x256xf32>
    %675 = vector.broadcast %673 : vector<1x256xf32> to vector<4x256xf32>
    %676 = arith.mulf %674, %675 : vector<4x256xf32>
    %677 = arith.addf %657, %672 : vector<4x256xf32>
    %678 = arith.addf %661, %676 : vector<4x256xf32>
    %679 = vector.extract_strided_slice %2 {offsets = [0, 2], sizes = [4, 1], strides = [1, 1]} : vector<4x8xf32> to vector<4x1xf32>
    %680 = vector.extract_strided_slice %646 {offsets = [2, 0], sizes = [1, 256], strides = [1, 1]} : vector<8x256xf32> to vector<1x256xf32>
    %681 = vector.extract_strided_slice %646 {offsets = [6, 0], sizes = [1, 256], strides = [1, 1]} : vector<8x256xf32> to vector<1x256xf32>
    %cst_184 = arith.constant 8.000000e+00 : f32
    %682 = vector.broadcast %cst_184 : f32 to vector<1x256xf32>
    %683 = arith.mulf %682, %680 : vector<1x256xf32>
    %cst_185 = arith.constant -7.000000e+00 : f32
    %684 = vector.broadcast %cst_185 : f32 to vector<1x256xf32>
    %685 = arith.mulf %684, %681 : vector<1x256xf32>
    %686 = arith.addf %683, %685 : vector<1x256xf32>
    %687 = vector.broadcast %679 : vector<4x1xf32> to vector<4x256xf32>
    %688 = vector.broadcast %686 : vector<1x256xf32> to vector<4x256xf32>
    %689 = arith.mulf %687, %688 : vector<4x256xf32>
    %690 = arith.subf %680, %681 : vector<1x256xf32>
    %691 = vector.broadcast %679 : vector<4x1xf32> to vector<4x256xf32>
    %692 = vector.broadcast %690 : vector<1x256xf32> to vector<4x256xf32>
    %693 = arith.mulf %691, %692 : vector<4x256xf32>
    %694 = arith.addf %677, %689 : vector<4x256xf32>
    %695 = arith.addf %678, %693 : vector<4x256xf32>
    %696 = vector.extract_strided_slice %2 {offsets = [0, 3], sizes = [4, 1], strides = [1, 1]} : vector<4x8xf32> to vector<4x1xf32>
    %697 = vector.extract_strided_slice %646 {offsets = [3, 0], sizes = [1, 256], strides = [1, 1]} : vector<8x256xf32> to vector<1x256xf32>
    %698 = vector.extract_strided_slice %646 {offsets = [7, 0], sizes = [1, 256], strides = [1, 1]} : vector<8x256xf32> to vector<1x256xf32>
    %cst_186 = arith.constant 8.000000e+00 : f32
    %699 = vector.broadcast %cst_186 : f32 to vector<1x256xf32>
    %700 = arith.mulf %699, %697 : vector<1x256xf32>
    %cst_187 = arith.constant -7.000000e+00 : f32
    %701 = vector.broadcast %cst_187 : f32 to vector<1x256xf32>
    %702 = arith.mulf %701, %698 : vector<1x256xf32>
    %703 = arith.addf %700, %702 : vector<1x256xf32>
    %704 = vector.broadcast %696 : vector<4x1xf32> to vector<4x256xf32>
    %705 = vector.broadcast %703 : vector<1x256xf32> to vector<4x256xf32>
    %706 = arith.mulf %704, %705 : vector<4x256xf32>
    %707 = arith.subf %697, %698 : vector<1x256xf32>
    %708 = vector.broadcast %696 : vector<4x1xf32> to vector<4x256xf32>
    %709 = vector.broadcast %707 : vector<1x256xf32> to vector<4x256xf32>
    %710 = arith.mulf %708, %709 : vector<4x256xf32>
    %711 = arith.addf %694, %706 : vector<4x256xf32>
    %712 = arith.addf %695, %710 : vector<4x256xf32>
    %713 = arith.addf %711, %114 : vector<4x256xf32>
    %714 = vector.broadcast %628 : f32 to vector<4x256xf32>
    %715 = arith.mulf %714, %713 : vector<4x256xf32>
    %716 = arith.addf %619, %715 : vector<4x256xf32>
    %c5_188 = arith.constant 5 : index
    %c0_189 = arith.constant 0 : index
    %c0_190 = arith.constant 0 : index
    %717 = vector.load %arg3[%c5_188, %c0_189, %c0_190] : memref<6x4x256xf32, #tpu.memory_space<vmem>>, vector<1x4x256xf32>
    %718 = vector.shape_cast %717 : vector<1x4x256xf32> to vector<4x256xf32>
    %719 = vector.broadcast %629 : f32 to vector<4x256xf32>
    %720 = arith.mulf %719, %718 : vector<4x256xf32>
    %721 = arith.addf %716, %720 : vector<4x256xf32>
    %722 = arith.addf %712, %115 : vector<4x256xf32>
    %723 = math.absf %722 : vector<4x256xf32>
    %cst_191 = arith.constant dense<0.000000e+00> : vector<256xf32>
    %724 = vector.multi_reduction <add>, %723, %cst_191 [0] : vector<4x256xf32> to vector<256xf32>
    %725 = vector.shape_cast %724 : vector<256xf32> to vector<1x256xf32>
    %726 = vector.broadcast %630 : f32 to vector<1x256xf32>
    %727 = arith.mulf %726, %725 : vector<1x256xf32>
    %c5_192 = arith.constant 5 : index
    %c0_193 = arith.constant 0 : index
    %728 = vector.load %arg16[%c5_192, %c0_193] : memref<6x256xf32, #tpu.memory_space<vmem>>, vector<1x256xf32>
    tpu.vector_store %arg16[%c5_192, %c0_193], %727 {strides = array<i32>} : memref<6x256xf32, #tpu.memory_space<vmem>>, vector<1x256xf32>,
    %c0_194 = arith.constant 0 : index
    %c0_195 = arith.constant 0 : index
    %729 = vector.load %arg13[%c0_194, %c0_195] : memref<3x4xf32, #tpu.memory_space<vmem>>, vector<3x4xf32>
    %c0_196 = arith.constant 0 : index
    %c0_197 = arith.constant 0 : index
    %730 = vector.load %arg14[%c0_196, %c0_197] : memref<3x1xf32, #tpu.memory_space<vmem>>, vector<3x1xf32>
    %731 = vector.extract_strided_slice %729 {offsets = [0, 0], sizes = [3, 1], strides = [1, 1]} : vector<3x4xf32> to vector<3x1xf32>
    %732 = vector.extract_strided_slice %721 {offsets = [0, 0], sizes = [1, 256], strides = [1, 1]} : vector<4x256xf32> to vector<1x256xf32>
    %733 = vector.broadcast %731 : vector<3x1xf32> to vector<3x256xf32>
    %734 = vector.broadcast %732 : vector<1x256xf32> to vector<3x256xf32>
    %735 = arith.mulf %733, %734 : vector<3x256xf32>
    %736 = vector.broadcast %730 : vector<3x1xf32> to vector<3x256xf32>
    %737 = arith.addf %736, %735 : vector<3x256xf32>
    %738 = vector.extract_strided_slice %729 {offsets = [0, 1], sizes = [3, 1], strides = [1, 1]} : vector<3x4xf32> to vector<3x1xf32>
    %739 = vector.extract_strided_slice %721 {offsets = [1, 0], sizes = [1, 256], strides = [1, 1]} : vector<4x256xf32> to vector<1x256xf32>
    %740 = vector.broadcast %738 : vector<3x1xf32> to vector<3x256xf32>
    %741 = vector.broadcast %739 : vector<1x256xf32> to vector<3x256xf32>
    %742 = arith.mulf %740, %741 : vector<3x256xf32>
    %743 = arith.addf %737, %742 : vector<3x256xf32>
    %744 = vector.extract_strided_slice %729 {offsets = [0, 2], sizes = [3, 1], strides = [1, 1]} : vector<3x4xf32> to vector<3x1xf32>
    %745 = vector.extract_strided_slice %721 {offsets = [2, 0], sizes = [1, 256], strides = [1, 1]} : vector<4x256xf32> to vector<1x256xf32>
    %746 = vector.broadcast %744 : vector<3x1xf32> to vector<3x256xf32>
    %747 = vector.broadcast %745 : vector<1x256xf32> to vector<3x256xf32>
    %748 = arith.mulf %746, %747 : vector<3x256xf32>
    %749 = arith.addf %743, %748 : vector<3x256xf32>
    %750 = vector.extract_strided_slice %729 {offsets = [0, 3], sizes = [3, 1], strides = [1, 1]} : vector<3x4xf32> to vector<3x1xf32>
    %751 = vector.extract_strided_slice %721 {offsets = [3, 0], sizes = [1, 256], strides = [1, 1]} : vector<4x256xf32> to vector<1x256xf32>
    %752 = vector.broadcast %750 : vector<3x1xf32> to vector<3x256xf32>
    %753 = vector.broadcast %751 : vector<1x256xf32> to vector<3x256xf32>
    %754 = arith.mulf %752, %753 : vector<3x256xf32>
    %755 = arith.addf %749, %754 : vector<3x256xf32>
    %cst_198 = arith.constant 1.000000e+00 : f32
    %756 = vector.broadcast %cst_198 : f32 to vector<3x256xf32>
    %757 = arith.addf %755, %756 : vector<3x256xf32>
    %cst_199 = arith.constant 5.000000e-01 : f32
    %758 = vector.broadcast %cst_199 : f32 to vector<3x256xf32>
    %759 = arith.mulf %757, %758 : vector<3x256xf32>
    %cst_200 = arith.constant 0.000000e+00 : f32
    %cst_201 = arith.constant 1.000000e+00 : f32
    %760 = vector.broadcast %cst_200 : f32 to vector<3x256xf32>
    %761 = arith.maximumf %760, %759 : vector<3x256xf32>
    %762 = vector.broadcast %cst_201 : f32 to vector<3x256xf32>
    %763 = arith.minimumf %762, %761 : vector<3x256xf32>
    %cst_202 = arith.constant 2.550000e+02 : f32
    %764 = vector.broadcast %cst_202 : f32 to vector<3x256xf32>
    %765 = arith.mulf %763, %764 : vector<3x256xf32>
    %c0_203 = arith.constant 0 : index
    %c0_204 = arith.constant 0 : index
    %766 = vector.load %arg15[%c0_203, %c0_204] : memref<3x256xf32, #tpu.memory_space<vmem>>, vector<3x256xf32>
    tpu.vector_store %arg15[%c0_203, %c0_204], %765 {strides = array<i32>} : memref<3x256xf32, #tpu.memory_space<vmem>>, vector<3x256xf32>,
    return
  }
}

</mosaic_0001>

<bundles_post_ra>
// kernel: instruct_diffusion_forward.3
= control target key start
LH: loop header
LB: loop body
LE: loop exit
PB: predicated region body
PF: predicated region fallthrough
CT: control target
= control target key end

     0   :  { %s8059_s0 = inlined_call_operand.vmem [shape: f32[24], index: 0, kind: input, shape index: {}]   ;;  %s8060_s1 = inlined_call_operand.vmem [shape: f32[3,256], index: 1, kind: input, shape index: {}]   ;;  %s8061_s2 = inlined_call_operand.vmem [shape: f32[4,256], index: 2, kind: input, shape index: {}]   ;;  %s8062_s3 = inlined_call_operand.vmem [shape: f32[6,4,256], index: 3, kind: input, shape index: {}]   ;;  %s8063_s4 = inlined_call_operand.vmem [shape: f32[2,128], index: 4, kind: input, shape index: {}]   ;;  %s8064_s5 = inlined_call_operand.vmem [shape: bf16[256,256], index: 5, kind: input, shape index: {}]   ;;  %s8065_s6 = inlined_call_operand.vmem [shape: f32[1,256], index: 6, kind: input, shape index: {}]   ;;  %s8066_s7 = inlined_call_operand.hbm [shape: bf16[256,256], index: 7, kind: input, shape index: {}]   ;;  %s8067_s8 = inlined_call_operand.vmem [shape: f32[1,256], index: 8, kind: input, shape index: {}]   ;;  %s8068_s9 = inlined_call_operand.vmem [shape: f32[4,8], index: 9, kind: input, shape index: {}]   ;;  %s8069_s10 = inlined_call_operand.vmem [shape: bf16[128,256], index: 10, kind: input, shape index: {}]   ;;  %s8070_s11 = inlined_call_operand.vmem [shape: f32[4,3], index: 11, kind: input, shape index: {}]   ;;  %s8071_s12 = inlined_call_operand.vmem [shape: f32[4,1], index: 12, kind: input, shape index: {}]   ;;  %s8072_s13 = inlined_call_operand.vmem [shape: f32[3,4], index: 13, kind: input, shape index: {}]   ;;  %s8073_s14 = inlined_call_operand.vmem [shape: f32[3,1], index: 14, kind: input, shape index: {}]   ;;  %s8074_s15 = inlined_call_operand.vmem [shape: f32[3,256], index: 15, kind: output, shape index: {0}]   ;;  %s8075_s16 = inlined_call_operand.vmem [shape: f32[6,256], index: 16, kind: output, shape index: {1}]  }
   0x1   :  { %8159 = sst [smem:[#allocation44_spill]] %s8059_s0 }
   0x2   :  { %22 = vsyncpa [#allocation5], 0  ;;  %s8160_s23 = sld [smem:[#allocation44_spill]] }
   0x8   :  { %s30_s24 = sshll.u32 %s8160_s23, 4  ;;  %s31_s24 = int_to_ptr.vmem [resolvable:$true] %s30_s24 }
   0x9   :  { %23 = vsyncpa [#allocation4], 0  ;;  %s6176_s25 = scalar_lea.vmem %s31_s24, 16  ;;  %p6181_p1 = scmp.lt.s32.totalorder %s31_s24, %s31_s24 }
   0xa   :  { %p6177_p0 = scmp.ne.s32.totalorder %s31_s24, %s6176_s25  ;;  %p6182_p2 = scmp.lt.s32.totalorder %s6176_s25, %s6176_s25 }
   0xc   :  { %p6183_p3 = por %p6182_p2, %p6181_p1 }
   0xe   :  { %p6184_p4 = pnand %p6183_p3, %p6177_p0 }
  0x10   :  { %6187 = shalt.err (!%p6184_p4)
}
  0x11   :  { %s6214_s26 = smov [#allocation3]   ;;  %s6215_s27 = smov [#allocation6]  }
  0x12   :  { %33 = dma.vmem_to_smem %s31_s24, 16, %s6214_s26, [#allocation5]  }
  0x13   :  { %s51_s28 = sshll.u32 %s6215_s27, 4  ;;  %s6188_s0 = scalar_lea.hbm %s8066_s7, 4096  ;;  %s52_s28 = int_to_ptr.vmem [resolvable:$true] %s51_s28 }
  0x14   :  { %p6189_p5 = scmp.ne.s32.totalorder %s8066_s7, %s6188_s0  ;;  %p6192_p6 = scmp.lt.u32.totalorder %s6188_s0, %s8066_s7 }
  0x16   :  { %p6194_p7 = pnand %p6192_p6, %p6189_p5 }
  0x18   :  { %6197 = shalt.err (!%p6194_p7)
}
  0x19   :  { %s6198_s21 = scalar_lea.vmem %s52_s28, 4096  ;;  %p6203_p9 = scmp.lt.s32.totalorder %s52_s28, %s52_s28 }
  0x1a   :  { %p6199_p8 = scmp.ne.s32.totalorder %s52_s28, %s6198_s21  ;;  %p6204_p10 = scmp.lt.s32.totalorder %s6198_s21, %s6198_s21 }
  0x1c   :  { %p6205_p11 = por %p6204_p10, %p6203_p9 }
  0x1e   :  { %p6206_p12 = pnand %p6205_p11, %p6199_p8 }
  0x20   :  { %6209 = shalt.err (!%p6206_p12)
}
  0x21   :  { %s6216_s22 = smov 128   ;;  %s6217_s23 = smov 8  }
  0x22   :  { %57 = dma.hbm_to_vmem [thread:$0]  %s8066_s7, 4096, %s52_s28, [#allocation4], %s6216_s22, %s6216_s22, %s6217_s23  }
  0x23   :  { %6210 = dma.done.wait [#allocation5], 16  }
  0x24   :  { %6211 = vsyncadd [#allocation5], 4294967280 }
  0x25   :  { %6212 = dma.done.wait [#allocation4], 4096  }
  0x26   :  { %6213 = vsyncadd [#allocation4], 4294963200 }
  0x27   :  { %78 = sfence }
  0x28   :  { %v84_v0 = vld [vmem:[%s8070_s11] sm:$0xf]  ;;  %v8081_v1 = vmov 0   ;;  %v8079_v2 = vmov 1   ;;  %v5713_v3 = vld [vmem:[%s8064_s5 + $0x4] ss:$8 sps:$4 sm:$0xff]  }
  0x29   :  { %5698 = vset.pattern.permute.xlu0 %v8081_v1  ;;  %5699 = vset.pattern.permute.xlu1 %v8079_v2  ;;  %v5715_v4 = vld [vmem:[%s8064_s5] ss:$8 sps:$4 sm:$0xff]   ;;  %v5716_v6 = vld [vmem:[%s8064_s5 + $0x14] ss:$8 sps:$4 sm:$0xff]   ;;  %v5718_v7 = vld [vmem:[%s8064_s5 + $0x10] ss:$8 sps:$4 sm:$0xff]  }
  0x2a   :  { %88 = vperm.xlu0 %5698, %v84_v0   ;;  %120 = vperm.xlu1 %5699, %v84_v0   ;;  %v85_v5 = vld [vmem:[%s8071_s12] sm:$0xf]  ;;  %v5719_v8 = vld [vmem:[%s8064_s5 + $0x24] ss:$8 sps:$4 sm:$0xff]   ;;  %v8077_v9 = vmov 2   ;;  %vm1005_vm0 = vcmask 27648  }
  0x2b   :  { %365 = vmatprep.subr.bf16.mxu0 %v5713_v3  ;;  %536 = vmatprep.mubr.bf16.mxu1 %v8081_v1  ;;  %v5721_v10 = vld [vmem:[%s8064_s5 + $0x20] ss:$8 sps:$4 sm:$0xff]   ;;  %v5722_v11 = vld [vmem:[%s8064_s5 + $0x34] ss:$8 sps:$4 sm:$0xff]   ;;  %v5731_v12 = vld [vmem:[%s8069_s10 + $0x4] ss:$8 sps:$4 sm:$0xff]  }
  0x2c   :  { %366 = vmatpush1.bf16.msra.mxu0 %v5715_v4  ;;  %v5724_v13 = vld [vmem:[%s8064_s5 + $0x30] ss:$8 sps:$4 sm:$0xff]   ;;  %504 = vmatprep.subr.bf16.mxu1 %v5731_v12  ;;  %v5735_v14 = vld [vmem:[%s8069_s10] ss:$8 sps:$4 sm:$0xff]   ;;  %v5737_v15 = vld [vmem:[%s8069_s10 + $0x14] ss:$8 sps:$4 sm:$0xff]  }
  0x2d   :  { %367 = vmatprep.subr.bf16.mxu0 %v5716_v6  ;;  %v5725_v16 = vld [vmem:[%s8064_s5 + $0x44] ss:$8 sps:$4 sm:$0xff]   ;;  %505 = vmatpush1.bf16.msra.mxu1 %v5735_v14  ;;  %v5741_v17 = vld [vmem:[%s8069_s10 + $0x10] ss:$8 sps:$4 sm:$0xff]   ;;  %v5727_v19 = vld [vmem:[%s8064_s5 + $0x40] ss:$8 sps:$4 sm:$0xff]  }
  0x2e   :  { %114 = vperm.xlu0 %5698, %v85_v5   ;;  %5700 = vset.pattern.permute.xlu1 %v8077_v9  ;;  %v5743_v18 = vld [vmem:[%s8069_s10 + $0x24] ss:$8 sps:$4 sm:$0xff]   ;;  %v5728_v20 = vld [vmem:[%s8064_s5 + $0x54] ss:$8 sps:$4 sm:$0xff]   ;;  %v5747_v21 = vld [vmem:[%s8069_s10 + $0x20] ss:$8 sps:$4 sm:$0xff]  }
  0x2f   :  { %146 = vperm.xlu1 %5700, %v84_v0   ;;  %506 = vmatprep.subr.bf16.mxu1 %v5737_v15  ;;  %v5749_v22 = vld [vmem:[%s8069_s10 + $0x34] ss:$8 sps:$4 sm:$0xff]   ;;  %v5730_v23 = vld [vmem:[%s8064_s5 + $0x50] ss:$8 sps:$4 sm:$0xff]   ;;  %v5733_v24 = vld [vmem:[%s8064_s5 + $0x64] ss:$8 sps:$4 sm:$0xff]  }
  0x30   :  { %368 = vmatpush1.bf16.msra.mxu0 %v5718_v7  ;;  %v5753_v25 = vld [vmem:[%s8069_s10 + $0x30] ss:$8 sps:$4 sm:$0xff]   ;;  %v5755_v26 = vld [vmem:[%s8069_s10 + $0x44] ss:$8 sps:$4 sm:$0xff]   ;;  %v5736_v27 = vld [vmem:[%s8064_s5 + $0x60] ss:$8 sps:$4 sm:$0xff]  }
  0x31   :  { %369 = vmatprep.subr.bf16.mxu0 %v5719_v8  ;;  %507 = vmatpush1.bf16.msra.mxu1 %v5741_v17  ;;  %v5739_v28 = vld [vmem:[%s8064_s5 + $0x74] ss:$8 sps:$4 sm:$0xff]   ;;  %v5759_v29 = vld [vmem:[%s8069_s10 + $0x40] ss:$8 sps:$4 sm:$0xff]   ;;  %v5742_v31 = vld [vmem:[%s8064_s5 + $0x70] ss:$8 sps:$4 sm:$0xff]  }
  0x32   :  { %508 = vmatprep.subr.bf16.mxu1 %v5743_v18  ;;  %v5761_v30 = vld [vmem:[%s8069_s10 + $0x54] ss:$8 sps:$4 sm:$0xff]   ;;  %v5745_v32 = vld [vmem:[%s8064_s5 + $0x84] ss:$8 sps:$4 sm:$0xff]   ;;  %v5765_v33 = vld [vmem:[%s8069_s10 + $0x50] ss:$8 sps:$4 sm:$0xff]  }
  0x33   :  { %v5767_v34 = vld [vmem:[%s8069_s10 + $0x64] ss:$8 sps:$4 sm:$0xff]   ;;  %v5748_v35 = vld [vmem:[%s8064_s5 + $0x80] ss:$8 sps:$4 sm:$0xff]   ;;  %v5751_v36 = vld [vmem:[%s8064_s5 + $0x94] ss:$8 sps:$4 sm:$0xff]  }
  0x34   :  { %370 = vmatpush1.bf16.msra.mxu0 %v5721_v10  ;;  %v5771_v37 = vld [vmem:[%s8069_s10 + $0x60] ss:$8 sps:$4 sm:$0xff]   ;;  %v5773_v38 = vld [vmem:[%s8069_s10 + $0x74] ss:$8 sps:$4 sm:$0xff]   ;;  %v5754_v39 = vld [vmem:[%s8064_s5 + $0x90] ss:$8 sps:$4 sm:$0xff]  }
  0x35   :  { %371 = vmatprep.subr.bf16.mxu0 %v5722_v11  ;;  %509 = vmatpush1.bf16.msra.mxu1 %v5747_v21  ;;  %v5757_v40 = vld [vmem:[%s8064_s5 + $0xa4] ss:$8 sps:$4 sm:$0xff]   ;;  %v5777_v41 = vld [vmem:[%s8069_s10 + $0x70] ss:$8 sps:$4 sm:$0xff]   ;;  %v406_v42 = vld [vmem:[%s8063_s4] sm:$0x3] }
  0x36   :  { %510 = vmatprep.subr.bf16.mxu1 %v5749_v22  ;;  %v5760_v43 = vld [vmem:[%s8064_s5 + $0xa0] ss:$8 sps:$4 sm:$0xff]   ;;  %v407_v44 = vpack.c.bf16 %v406_v42, %v406_v42  ;;  %v6455_v45 = vld [vmem:[#allocation6 + $0x4] ss:$8 sps:$4 sm:$0xff]   ;;  %s6221_s4 = smov 124   ;;  %vm872_vm1 = vcmask 60416  }
  0x37   :  { %v6460_v46 = vld [vmem:[%s8064_s5 + $0xb4] ss:$8 sps:$4 sm:$0xff]   ;;  %v6465_v47 = vld [vmem:[%s8068_s9] sm:$0xf]  ;;  %v6469_v48 = vld [vmem:[#allocation6] ss:$8 sps:$4 sm:$0xff]  }
  0x38   :  { %372 = vmatpush1.bf16.msra.mxu0 %v5724_v13  ;;  %1002 = vrot.lane.b32.xlu0 %v6465_v47, %s6221_s4  ;;  %v6474_v49 = vld [vmem:[%s8064_s5 + $0xb0] ss:$8 sps:$4 sm:$0xff]   ;;  %v6476_v50 = vld [vmem:[#allocation6 + $0x14] ss:$8 sps:$4 sm:$0xff]   ;;  %v6484_v52 = vld [vmem:[#allocation6 + $0x10] ss:$8 sps:$4 sm:$0xff]  }
  0x39   :  { %373 = vmatprep.subr.bf16.mxu0 %v5725_v16  ;;  %511 = vmatpush1.bf16.msra.mxu1 %v5753_v25  ;;  %v6482_v51 = vld [vmem:[%s8064_s5 + $0xc4] ss:$8 sps:$4 sm:$0xff]   ;;  %v6490_v53 = vld [vmem:[%s8064_s5 + $0xc0] ss:$8 sps:$4 sm:$0xff]   ;;  %v6497_v54 = vld [vmem:[%s8064_s5 + $0xd4] ss:$8 sps:$4 sm:$0xff]  }
  0x3a   :  { %512 = vmatprep.subr.bf16.mxu1 %v5755_v26  ;;  %v6499_v55 = vld [vmem:[#allocation6 + $0x24] ss:$8 sps:$4 sm:$0xff]   ;;  %v6502_v56 = vld [vmem:[#allocation6 + $0x20] ss:$8 sps:$4 sm:$0xff]   ;;  %v6515_v58 = vld [vmem:[%s8064_s5 + $0xe4] ss:$8 sps:$4 sm:$0xff]  }
  0x3b   :  { %v6508_v57 = vld [vmem:[%s8064_s5 + $0xd0] ss:$8 sps:$4 sm:$0xff]   ;;  %v6517_v59 = vld [vmem:[#allocation6 + $0x34] ss:$8 sps:$4 sm:$0xff]   ;;  %v6520_v60 = vld [vmem:[#allocation6 + $0x30] ss:$8 sps:$4 sm:$0xff]  }
  0x3c   :  { %374 = vmatpush1.bf16.msra.mxu0 %v5727_v19  ;;  %v6526_v61 = vld [vmem:[%s8064_s5 + $0xe0] ss:$8 sps:$4 sm:$0xff]   ;;  %v6533_v62 = vld [vmem:[%s8064_s5 + $0xf4] ss:$8 sps:$4 sm:$0xff]   ;;  %v6538_v0 = vld [vmem:[#allocation6 + $0x40] ss:$8 sps:$4 sm:$0xff]   ;;  %v8076_v19 = vlaneseq }
  0x3d   :  { %375 = vmatprep.subr.bf16.mxu0 %v5728_v20  ;;  %513 = vmatpush1.bf16.msra.mxu1 %v5759_v29  ;;  %v6535_v63 = vld [vmem:[#allocation6 + $0x44] ss:$8 sps:$4 sm:$0xff]   ;;  %v6544_v3 = vld [vmem:[%s8064_s5 + $0xf0] ss:$8 sps:$4 sm:$0xff]   ;;  %v6548_v4 = vld [vmem:[#allocation6 + $0x54] ss:$8 sps:$4 sm:$0xff]  }
  0x3e   :  { %514 = vmatprep.subr.bf16.mxu1 %v5761_v30  ;;  %v6551_v5 = vld [vmem:[#allocation6 + $0x50] ss:$8 sps:$4 sm:$0xff]   ;;  %v6554_v6 = vld [vmem:[#allocation6 + $0x64] ss:$8 sps:$4 sm:$0xff]   ;;  %v6559_v7 = vld [vmem:[#allocation6 + $0x60] ss:$8 sps:$4 sm:$0xff]  }
  0x3f   :  { %v6562_v8 = vld [vmem:[#allocation6 + $0x74] ss:$8 sps:$4 sm:$0xff]   ;;  %v6565_v10 = vld [vmem:[#allocation6 + $0x70] ss:$8 sps:$4 sm:$0xff]   ;;  %v6568_v11 = vld [vmem:[#allocation6 + $0x84] ss:$8 sps:$4 sm:$0xff]  }
  0x40   :  { %376 = vmatpush1.bf16.msra.mxu0 %v5730_v23  ;;  %v6571_v12 = vld [vmem:[#allocation6 + $0x80] ss:$8 sps:$4 sm:$0xff]   ;;  %v6574_v13 = vld [vmem:[#allocation6 + $0x94] ss:$8 sps:$4 sm:$0xff]   ;;  %v6577_v14 = vld [vmem:[#allocation6 + $0x90] ss:$8 sps:$4 sm:$0xff]  }
  0x41   :  { %377 = vmatprep.subr.bf16.mxu0 %v5733_v24  ;;  %515 = vmatpush1.bf16.msra.mxu1 %v5765_v33  ;;  %v6580_v15 = vld [vmem:[#allocation6 + $0xa4] ss:$8 sps:$4 sm:$0xff]   ;;  %v6583_v16 = vld [vmem:[#allocation6 + $0xa0] ss:$8 sps:$4 sm:$0xff]   ;;  %v6586_v17 = vld [vmem:[#allocation6 + $0xb4] ss:$8 sps:$4 sm:$0xff]  }
  0x42   :  { %516 = vmatprep.subr.bf16.mxu1 %v5767_v34  ;;  %v6589_v18 = vld [vmem:[#allocation6 + $0xb0] ss:$8 sps:$4 sm:$0xff]   ;;  %v6595_v20 = vshrl.u32 %v8076_v19, 7  ;;  %v6630_v42 = vld [vmem:[#allocation6 + $0xc4] ss:$8 sps:$4 sm:$0xff]   ;;  %s7170_s10 = sld [smem:[#allocation3 + $0x1]] }
  0x43   :  { %v83_v23 = vld [vmem:[%s8060_s1] sm:$0x77]  ;;  %v6632_v19 = vld [vmem:[#allocation6 + $0xc0] ss:$8 sps:$4 sm:$0xff]   ;;  %s7181_s21 = sld [smem:[#allocation3 + $0x2]]  ;;  %s5334_s4 = sld [smem:[#allocation3 + $0x4]] }
  0x44   :  { %378 = vmatpush1.bf16.msra.mxu0 %v5736_v27  ;;  %v6598_v21 = vsub.s32 0, %v6595_v20  ;;  %v6601_v22 = vsub.s32 4, %v6595_v20  ;;  %v6607_v24 = vsub.s32 1, %v6595_v20  ;;  %v6610_v25 = vsub.s32 5, %v6595_v20  ;;  %s5269_s12 = sld [smem:[#allocation3 + $0x3]]  ;;  %s7331_s24 = sld [smem:[#allocation3 + $0x5]] }
  0x45   :  { %379 = vmatprep.subr.bf16.mxu0 %v5739_v28  ;;  %517 = vmatpush1.bf16.msra.mxu1 %v5771_v37  ;;  %v6613_v26 = vsub.s32 2, %v6595_v20  ;;  %v6616_v27 = vsub.s32 6, %v6595_v20  ;;  %vm1677_vm2 = vcmask 1043456   ;;  %s5336_s25 = sld [smem:[#allocation3 + $0x6]]  ;;  %s5404_s26 = sld [smem:[#allocation3 + $0x8]] }
  0x46   :  { %518 = vmatprep.subr.bf16.mxu1 %v5773_v38  ;;  %8161 = vst [vmem:[#allocation9_spill] sm:$0xff] %v6598_v21  ;;  %8162 = vst [vmem:[#allocation10_spill] sm:$0xff] %v6601_v22  ;;  %v95_v28 = vrot.slane %v83_v23, %v6598_v21  ;;  %v99_v29 = vrot.slane %v83_v23, %v6601_v22  ;;  %v126_v30 = vrot.slane %v83_v23, %v6607_v24  ;;  %s5337_s29 = sld [smem:[#allocation3 + $0x7]]  ;;  %s5406_s23 = sld [smem:[#allocation3 + $0xa]] }
  0x47   :  { %8163 = vst [vmem:[#allocation11_spill] sm:$0xff] %v6607_v24  ;;  %8164 = vst [vmem:[#allocation12_spill] sm:$0xff] %v6610_v25  ;;  %v156_v33 = vrot.slane %v83_v23, %v6616_v27  ;;  %s5476_s30 = sld [smem:[#allocation3 + $0xe]]  ;;  %s5544_s7 = sld [smem:[#allocation3 + $0x10]] }
  0x48   :  { %380 = vmatpush1.bf16.msra.mxu0 %v5742_v31  ;;  %8165 = vst [vmem:[#allocation13_spill] sm:$0xff] %v6613_v26  ;;  %8166 = vst [vmem:[#allocation14_spill] sm:$0xff] %v6616_v27  ;;  %v130_v31 = vrot.slane %v83_v23, %v6610_v25  ;;  %v105_v34 = vrot.slane %v95_v28, %v6598_v21  ;;  %v136_v38 = vrot.slane %v126_v30, %v6607_v24  ;;  %v6634_v28 = vld [vmem:[#allocation6 + $0xd4] ss:$8 sps:$4 sm:$0xff]   ;;  %s5614_s27 = sld [smem:[#allocation3 + $0x14]]  ;;  %s8028_s19 = sld [smem:[#allocation3 + $0x17]] }
  0x49   :  { %381 = vmatprep.subr.bf16.mxu0 %v5745_v32  ;;  %519 = vmatpush1.bf16.msra.mxu1 %v5777_v41  ;;  %v152_v32 = vrot.slane %v83_v23, %v6613_v26  ;;  %v166_v41 = vrot.slane %v156_v33, %v6613_v26 }
  0x4a   :  { %786 = vmatprep.subr.bf16.mxu1 %v6455_v45 }
  0x4c   :  { %382 = vmatpush1.bf16.msra.mxu0 %v5748_v35  ;;  %537 = vmatmul.mubr.bf16.vlgmr.msra.gmra.mrb[0].mxu1 %v407_v44  ;;  %v109_v35 = vrot.slane %v99_v29, %v6598_v21 }
  0x4d   :  { %383 = vmatprep.subr.bf16.mxu0 %v5751_v36  ;;  %787 = vmatpush1.bf16.msra.mxu1 %v6469_v48 }
  0x4e   :  { %788 = vmatprep.subr.bf16.mxu1 %v6476_v50 }
  0x50   :  { %384 = vmatpush1.bf16.msra.mxu0 %v5754_v39  ;;  %v140_v39 = vrot.slane %v130_v31, %v6607_v24 }
  0x51   :  { %385 = vmatprep.subr.bf16.mxu0 %v5757_v40  ;;  %789 = vmatpush1.bf16.msra.mxu1 %v6484_v52  ;;  %v162_v40 = vrot.slane %v152_v32, %v6613_v26 }
  0x52   :  { %790 = vmatprep.subr.bf16.mxu1 %v6499_v55 }
  0x54   :  { %386 = vmatpush1.bf16.msra.mxu0 %v5760_v43 }
  0x55   :  { %387 = vmatprep.subr.bf16.mxu0 %v6460_v46  ;;  %791 = vmatpush1.bf16.msra.mxu1 %v6502_v56 }
  0x56   :  { %792 = vmatprep.subr.bf16.mxu1 %v6517_v59 }
  0x58   :  { %388 = vmatpush1.bf16.msra.mxu0 %v6474_v49 }
  0x59   :  { %389 = vmatprep.subr.bf16.mxu0 %v6482_v51  ;;  %793 = vmatpush1.bf16.msra.mxu1 %v6520_v60 }
  0x5a   :  { %794 = vmatprep.subr.bf16.mxu1 %v6535_v63 }
  0x5c   :  { %390 = vmatpush1.bf16.msra.mxu0 %v6490_v53 }
  0x5d   :  { %391 = vmatprep.subr.bf16.mxu0 %v6497_v54  ;;  %795 = vmatpush1.bf16.msra.mxu1 %v6538_v0 }
  0x5e   :  { %796 = vmatprep.subr.bf16.mxu1 %v6548_v4 }
  0x60   :  { %392 = vmatpush1.bf16.msra.mxu0 %v6508_v57 }
  0x61   :  { %393 = vmatprep.subr.bf16.mxu0 %v6515_v58  ;;  %797 = vmatpush1.bf16.msra.mxu1 %v6551_v5 }
  0x62   :  { %798 = vmatprep.subr.bf16.mxu1 %v6554_v6 }
  0x64   :  { %394 = vmatpush1.bf16.msra.mxu0 %v6526_v61 }
  0x65   :  { %395 = vmatprep.subr.bf16.mxu0 %v6533_v62  ;;  %799 = vmatpush1.bf16.msra.mxu1 %v6559_v7 }
  0x66   :  { %800 = vmatprep.subr.bf16.mxu1 %v6562_v8 }
  0x68   :  { %396 = vmatpush1.bf16.msra.mxu0 %v6544_v3 }
  0x69   :  { %831 = vmatprep.subr.bf16.mxu0 %v6455_v45  ;;  %801 = vmatpush1.bf16.msra.mxu1 %v6565_v10 }
  0x6a   :  { %802 = vmatprep.subr.bf16.mxu1 %v6568_v11 }
  0x6d   :  { %803 = vmatpush1.bf16.msra.mxu1 %v6571_v12 }
  0x6e   :  { %804 = vmatprep.subr.bf16.mxu1 %v6574_v13 }
  0x71   :  { %805 = vmatpush1.bf16.msra.mxu1 %v6577_v14 }
  0x72   :  { %806 = vmatprep.subr.bf16.mxu1 %v6580_v15 }
  0x75   :  { %807 = vmatpush1.bf16.msra.mxu1 %v6583_v16 }
  0x76   :  { %808 = vmatprep.subr.bf16.mxu1 %v6586_v17 }
  0x79   :  { %809 = vmatpush1.bf16.msra.mxu1 %v6589_v18 }
  0x7a   :  { %810 = vmatprep.subr.bf16.mxu1 %v6630_v42 }
  0x7d   :  { %811 = vmatpush1.bf16.msra.mxu1 %v6632_v19 }
  0x7e   :  { %812 = vmatprep.subr.bf16.mxu1 %v6634_v28 }
  0xa9   :  { %v89_v36 = vpop.permute.xlu0 %88  ;;  %v121_v37 = vpop.permute.xlu1 %120 }
  0xaa   :  { %v110_v43 = vmul.f32 %v105_v34, %v89_v36  ;;  %v111_v44 = vmul.f32 %v109_v35, %v89_v36  ;;  %v141_v29 = vmul.f32 %v136_v38, %v121_v37  ;;  %v142_v9 = vmul.f32 %v140_v39, %v121_v37  ;;  %v6639_v36 = vld [vmem:[#allocation6 + $0xd0] ss:$8 sps:$4 sm:$0xff]  }
  0xab   :  { %813 = vmatpush1.bf16.msra.mxu1 %v6639_v36  ;;  %v80_v37 = vld [vmem:[%s8065_s6] sm:$0x3]  ;;  %s1034_s6 = sld [smem:[#allocation3]] }
  0xac   :  { %v549_v39 = vrot.slane %v80_v37, %v6598_v21 }
  0xad   :  { %v115_v23 = vpop.permute.xlu0 %114 }
  0xae   :  { %v117_v30 = vadd.f32 %v115_v23, %v110_v43  ;;  %v118_v2 = vadd.f32 %v115_v23, %v111_v44  ;;  %v147_v31 = vpop.permute.xlu1 %146 }
  0xaf   :  { %v167_v32 = vmul.f32 %v162_v40, %v147_v31  ;;  %v168_v33 = vmul.f32 %v166_v41, %v147_v31  ;;  %v553_v40 = vrot.slane %v80_v37, %v6607_v24  ;;  %v6155_v37 = vld [vmem:[%s8064_s5 + $0x14] ss:$8 sps:$4 sm:$0xff]  }
  0xb0   :  { %v143_v34 = vadd.f32 %v141_v29, %v117_v30  ;;  %v144_v35 = vadd.f32 %v142_v9, %v118_v2  ;;  %v6671_v2 = vld [vmem:[#allocation6 + $0xe0] ss:$8 sps:$4 sm:$0xff]   ;;  %v6677_v9 = vld [vmem:[#allocation6 + $0xf4] ss:$8 sps:$4 sm:$0xff]  }
  0xb2   :  { %v169_v1 = vadd.f32 %v167_v32, %v143_v34  ;;  %v170_v27 = vadd.f32 %v168_v33, %v144_v35  ;;  %v6222_v34 = vmov 4  }
  0xb3   :  { %5701 = vset.pattern.permute.xlu0 %v6222_v34  ;;  %v6168_v34 = vld [vmem:[%s8064_s5 + $0x70] ss:$8 sps:$4 sm:$0xff]  }
  0xb4   :  { %v172_v26 = vpack.c.bf16 %v170_v27, %v170_v27  ;;  %v171_v38 = vpack.c.bf16 %v169_v1, %v169_v1  ;;  %v6669_v1 = vld [vmem:[#allocation6 + $0xe4] ss:$8 sps:$4 sm:$0xff]   ;;  %v6153_v27 = vld [vmem:[%s8064_s5 + $0x4] ss:$8 sps:$4 sm:$0xff]   ;;  %891 = vperm.xlu0 %5701, %v6465_v47  }
  0xb5   :  { %814 = vmatprep.subr.bf16.mxu1 %v6669_v1 }
  0xb6   :  { %397 = vmatprep.mubr.bf16.mxu0 %v172_v26  ;;  %815 = vmatpush1.bf16.msra.mxu1 %v6671_v2  ;;  %v6679_v26 = vld [vmem:[#allocation6 + $0xf0] ss:$8 sps:$4 sm:$0xff]  }
  0xb7   :  { %398 = vmatmul.mubr.bf16.vlgmr.msra.gmra.mrb[0].mxu0 %v171_v38  ;;  %816 = vmatprep.subr.bf16.mxu1 %v6677_v9 }
  0xb8   :  { %832 = vmatpush1.bf16.msra.mxu0 %v6469_v48 }
  0xb9   :  { %833 = vmatprep.subr.bf16.mxu0 %v6476_v50 }
  0xba   :  { %817 = vmatpush1.bf16.msra.mxu1 %v6679_v26 }
  0xbb   :  { %1237 = vmatprep.subr.bf16.mxu1 %v6153_v27  ;;  %v6154_v27 = vld [vmem:[%s8064_s5] ss:$8 sps:$4 sm:$0xff]  }
  0xbc   :  { %834 = vmatpush1.bf16.msra.mxu0 %v6484_v52 }
  0xbd   :  { %835 = vmatprep.subr.bf16.mxu0 %v6499_v55 }
  0xc0   :  { %836 = vmatpush1.bf16.msra.mxu0 %v6502_v56 }
  0xc1   :  { %837 = vmatprep.subr.bf16.mxu0 %v6517_v59 }
  0xc4   :  { %838 = vmatpush1.bf16.msra.mxu0 %v6520_v60 }
  0xc5   :  { %839 = vmatprep.subr.bf16.mxu0 %v6535_v63 }
  0xc8   :  { %840 = vmatpush1.bf16.msra.mxu0 %v6538_v0 }
  0xc9   :  { %841 = vmatprep.subr.bf16.mxu0 %v6548_v4 }
  0xcc   :  { %842 = vmatpush1.bf16.msra.mxu0 %v6551_v5 }
  0xcd   :  { %843 = vmatprep.subr.bf16.mxu0 %v6554_v6 }
  0xd0   :  { %844 = vmatpush1.bf16.msra.mxu0 %v6559_v7 }
  0xd1   :  { %845 = vmatprep.subr.bf16.mxu0 %v6562_v8 }
  0xd4   :  { %846 = vmatpush1.bf16.msra.mxu0 %v6565_v10 }
  0xd5   :  { %847 = vmatprep.subr.bf16.mxu0 %v6568_v11 }
  0xd8   :  { %848 = vmatpush1.bf16.msra.mxu0 %v6571_v12 }
  0xd9   :  { %849 = vmatprep.subr.bf16.mxu0 %v6574_v13 }
  0xdc   :  { %850 = vmatpush1.bf16.msra.mxu0 %v6577_v14 }
  0xdd   :  { %851 = vmatprep.subr.bf16.mxu0 %v6580_v15 }
  0xe0   :  { %852 = vmatpush1.bf16.msra.mxu0 %v6583_v16 }
  0xe1   :  { %853 = vmatprep.subr.bf16.mxu0 %v6586_v17 }
  0xe4   :  { %854 = vmatpush1.bf16.msra.mxu0 %v6589_v18 }
  0xe5   :  { %855 = vmatprep.subr.bf16.mxu0 %v6630_v42 }
  0xe8   :  { %856 = vmatpush1.bf16.msra.mxu0 %v6632_v19 }
  0xe9   :  { %857 = vmatprep.subr.bf16.mxu0 %v6634_v28 }
  0xec   :  { %858 = vmatpush1.bf16.msra.mxu0 %v6639_v36 }
  0xed   :  { %859 = vmatprep.subr.bf16.mxu0 %v6669_v1 }
  0xf0   :  { %860 = vmatpush1.bf16.msra.mxu0 %v6671_v2 }
  0xf1   :  { %861 = vmatprep.subr.bf16.mxu0 %v6677_v9 }
  0xf4   :  { %862 = vmatpush1.bf16.msra.mxu0 %v6679_v26 }
  0xf5   :  { %1490 = vmatprep.subr.bf16.mxu0 %v6455_v45 }
 0x11f   :  { %v538_v41 = vpop.f32.mrb[0].mxu1 }
 0x120   :  { %v6694_v43 = vadd.f32 %v549_v39, %v538_v41  ;;  %v540_v44 = vpop.f32.mrb[1].mxu1  ;;  %v6156_v39 = vld [vmem:[%s8064_s5 + $0x10] ss:$8 sps:$4 sm:$0xff]   ;;  %v6158_v41 = vld [vmem:[%s8064_s5 + $0x20] ss:$8 sps:$4 sm:$0xff]  }
 0x121   :  { %v6696_v23 = vadd.f32 %v553_v40, %v540_v44  ;;  %v542_v29 = vpop.f32.mrb[2].mxu1  ;;  %v6157_v40 = vld [vmem:[%s8064_s5 + $0x24] ss:$8 sps:$4 sm:$0xff]   ;;  %v6160_v44 = vld [vmem:[%s8064_s5 + $0x30] ss:$8 sps:$4 sm:$0xff]  }
 0x122   :  { %6121 = vtanh.f32 %v6694_v43  ;;  %v543_v30 = vpop.f32.mrb[3].mxu1  ;;  %v6162_v29 = vld [vmem:[%s8064_s5 + $0x40] ss:$8 sps:$4 sm:$0xff]  }
 0x123   :  { %6123 = vtanh.f32 %v6696_v23  ;;  %v6163_v30 = vld [vmem:[%s8064_s5 + $0x54] ss:$8 sps:$4 sm:$0xff]  }
 0x12c   :  { %v6122_v45 = vpop.eup %6121 }
 0x12d   :  { %v6124_v31 = vpop.eup %6123  ;;  %v829_v32 = vpack.c.bf16 %v6122_v45, %v6122_v45  ;;  %v6164_v45 = vld [vmem:[%s8064_s5 + $0x50] ss:$8 sps:$4 sm:$0xff]  }
 0x12e   :  { %v830_v33 = vpack.c.bf16 %v6124_v31, %v6124_v31  ;;  %v6165_v31 = vld [vmem:[%s8064_s5 + $0x64] ss:$8 sps:$4 sm:$0xff]  }
 0x130   :  { %863 = vmatprep.mubr.bf16.mxu0 %v830_v33  ;;  %v6167_v33 = vld [vmem:[%s8064_s5 + $0x74] ss:$8 sps:$4 sm:$0xff]  }
 0x131   :  { %864 = vmatmul.mubr.bf16.vlgmr.msra.gmra.mrb[4].mxu0 %v829_v32  ;;  %v6166_v32 = vld [vmem:[%s8064_s5 + $0x60] ss:$8 sps:$4 sm:$0xff]  }
 0x132   :  { %1491 = vmatpush1.bf16.msra.mxu0 %v6469_v48  ;;  %v1003_v48 = vpop.permute.xlu0 %1002 }
 0x133   :  { %1492 = vmatprep.subr.bf16.mxu0 %v6476_v50  ;;  %v1006_v50 = vsel %vm1005_vm0, %v1003_v48, 0.0  ;;  %v6169_v48 = vld [vmem:[%s8064_s5 + $0x84] ss:$8 sps:$4 sm:$0xff]  }
 0x134   :  { %1007 = vadd.xlane.f32.xlu0 %v1006_v50  ;;  %v6170_v50 = vld [vmem:[%s8064_s5 + $0x80] ss:$8 sps:$4 sm:$0xff]  }
 0x136   :  { %1493 = vmatpush1.bf16.msra.mxu0 %v6484_v52  ;;  %v873_v52 = vsel %vm872_vm1, %v6465_v47, 0.0 }
 0x137   :  { %1494 = vmatprep.subr.bf16.mxu0 %v6499_v55  ;;  %874 = vadd.xlane.f32.xlu1 %v873_v52  ;;  %v6223_v55 = vmov 5   ;;  %v6171_v52 = vld [vmem:[%s8064_s5 + $0x94] ss:$8 sps:$4 sm:$0xff]  }
 0x138   :  { %5702 = vset.pattern.permute.xlu1 %v6223_v55  ;;  %v6172_v55 = vld [vmem:[%s8064_s5 + $0x90] ss:$8 sps:$4 sm:$0xff]  }
 0x13a   :  { %1495 = vmatpush1.bf16.msra.mxu0 %v6502_v56  ;;  %v6224_v56 = vmov 6  }
 0x13b   :  { %1496 = vmatprep.subr.bf16.mxu0 %v6517_v59  ;;  %5703 = vset.pattern.permute.xlu0 %v6224_v56  ;;  %v6225_v59 = vmov 7   ;;  %v6173_v56 = vld [vmem:[%s8064_s5 + $0xa4] ss:$8 sps:$4 sm:$0xff]  }
 0x13e   :  { %1497 = vmatpush1.bf16.msra.mxu0 %v6520_v60  ;;  %v8167_v60 = vmov 0  }
 0x13f   :  { %1498 = vmatprep.subr.bf16.mxu0 %v6535_v63  ;;  %v8168_v63 = vmov 1  }
 0x142   :  { %1499 = vmatpush1.bf16.msra.mxu0 %v6538_v0  ;;  %v8169_v0 = vmov 2  }
 0x143   :  { %1500 = vmatprep.subr.bf16.mxu0 %v6548_v4  ;;  %v6744_v4 = vrot.slane %v6694_v43, %v6598_v21 }
 0x145   :  { %8170 = vst [vmem:[#allocation15_spill] sm:$0xff] %v6744_v4 }
 0x146   :  { %1501 = vmatpush1.bf16.msra.mxu0 %v6551_v5  ;;  %v6748_v5 = vrot.slane %v6694_v43, %v6607_v24  ;;  %v6159_v43 = vld [vmem:[%s8064_s5 + $0x34] ss:$8 sps:$4 sm:$0xff]  }
 0x147   :  { %1502 = vmatprep.subr.bf16.mxu0 %v6554_v6  ;;  %v6752_v6 = vrot.slane %v6696_v23, %v6598_v21 }
 0x148   :  { %919 = vperm.xlu1 %5702, %v6465_v47   ;;  %8171 = vst [vmem:[#allocation16_spill] sm:$0xff] %v6748_v5 }
 0x149   :  { %8172 = vst [vmem:[#allocation17_spill] sm:$0xff] %v6752_v6 }
 0x14a   :  { %1503 = vmatpush1.bf16.msra.mxu0 %v6559_v7  ;;  %947 = vperm.xlu0 %5703, %v6465_v47   ;;  %v6756_v7 = vrot.slane %v6696_v23, %v6607_v24  ;;  %v6161_v23 = vld [vmem:[%s8064_s5 + $0x44] ss:$8 sps:$4 sm:$0xff]  }
 0x14b   :  { %1504 = vmatprep.subr.bf16.mxu0 %v6562_v8 }
 0x14c   :  { %5704 = vset.pattern.permute.xlu1 %v6225_v59  ;;  %8173 = vst [vmem:[#allocation18_spill] sm:$0xff] %v6756_v7  ;;  %v6174_v59 = vld [vmem:[%s8064_s5 + $0xa0] ss:$8 sps:$4 sm:$0xff]  }
 0x14d   :  { %975 = vperm.xlu1 %5704, %v6465_v47  }
 0x14e   :  { %1505 = vmatpush1.bf16.msra.mxu0 %v6565_v10 }
 0x14f   :  { %1506 = vmatprep.subr.bf16.mxu0 %v6568_v11 }
 0x151   :  { %5705 = vset.pattern.permute.xlu1 %v8167_v60 }
 0x152   :  { %1507 = vmatpush1.bf16.msra.mxu0 %v6571_v12  ;;  %1544 = vperm.xlu1 %5705, %v6465_v47  }
 0x153   :  { %1508 = vmatprep.subr.bf16.mxu0 %v6574_v13 }
 0x156   :  { %1509 = vmatpush1.bf16.msra.mxu0 %v6577_v14  ;;  %5706 = vset.pattern.permute.xlu1 %v8168_v63  ;;  %v7140_v63 = vld [vmem:[#allocation6 + $0x84] ss:$8 sps:$4 sm:$0xff]  }
 0x157   :  { %1510 = vmatprep.subr.bf16.mxu0 %v6580_v15  ;;  %1576 = vperm.xlu1 %5706, %v6465_v47   ;;  %8197 = vst [vmem:[#allocation40_spill] sm:$0xff] %v7140_v63 }
 0x15a   :  { %1511 = vmatpush1.bf16.msra.mxu0 %v6583_v16 }
 0x15b   :  { %1512 = vmatprep.subr.bf16.mxu0 %v6586_v17  ;;  %5707 = vset.pattern.permute.xlu1 %v8169_v0 }
 0x15c   :  { %1604 = vperm.xlu1 %5707, %v6465_v47  }
 0x15e   :  { %1513 = vmatpush1.bf16.msra.mxu0 %v6589_v18 }
 0x15f   :  { %1514 = vmatprep.subr.bf16.mxu0 %v6630_v42  ;;  %v6765_v42 = vld [vmem:[%s8061_s2] sm:$0xff] }
 0x162   :  { %1515 = vmatpush1.bf16.msra.mxu0 %v6632_v19 }
 0x163   :  { %1516 = vmatprep.subr.bf16.mxu0 %v6634_v28  ;;  %v1038_v28 = vstv %s1034_s6  ;;  %s5474_s6 = sld [smem:[#allocation3 + $0xc]] }
 0x164   :  { %v6768_v35 = vmul.f32 %v1038_v28, %v6765_v42  ;;  %v6943_v28 = vld [vmem:[%s8064_s5 + $0x70] ss:$8 sps:$4 sm:$0xff]  }
 0x166   :  { %1517 = vmatpush1.bf16.msra.mxu0 %v6639_v36  ;;  %v1041_v36 = vcombine.high %v6768_v35, %v6768_v35 }
 0x167   :  { %1518 = vmatprep.subr.bf16.mxu0 %v6669_v1 }
 0x16a   :  { %1519 = vmatpush1.bf16.msra.mxu0 %v6671_v2 }
 0x16b   :  { %1520 = vmatprep.subr.bf16.mxu0 %v6677_v9  ;;  %v1044_v9 = vpack.c.bf16 %v1041_v36, %v1041_v36 }
 0x16e   :  { %1521 = vmatpush1.bf16.msra.mxu0 %v6679_v26 }
 0x18a   :  { %v399_v8 = vpop.f32.mrb[0].mxu0 }
 0x18b   :  { %v566_v10 = vadd.f32 %v6744_v4, %v399_v8  ;;  %v578_v47 = vadd.f32 %v6748_v5, %v399_v8  ;;  %v401_v11 = vpop.f32.mrb[1].mxu0  ;;  %v1043_v8 = vpack.c.bf16 %v6768_v35, %v6768_v35  ;;  %v81_v35 = vld [vmem:[%s8067_s8] sm:$0x3]  ;;  %s5477_s8 = sld [smem:[#allocation3 + $0xf]] }
 0x18c   :  { %v567_v12 = vadd.f32 %v6752_v6, %v401_v11  ;;  %v579_v13 = vadd.f32 %v6756_v7, %v401_v11  ;;  %v403_v14 = vpop.f32.mrb[2].mxu0  ;;  %v6889_v11 = vld [vmem:[%s8064_s5 + $0x34] ss:$8 sps:$4 sm:$0xff]   ;;  %v880_v36 = vrot.slane %v81_v35, %v6598_v21 }
 0x18d   :  { %568 = vst [vmem:[#allocation2] sm:$0xf] %v566_v10  ;;  %v582_v15 = vrot.slane %v578_v47, 4  ;;  %v404_v16 = vpop.f32.mrb[3].mxu0  ;;  %v6876_v10 = vld [vmem:[%s8064_s5 + $0x24] ss:$8 sps:$4 sm:$0xff]  }
 0x18e   :  { %569 = vst [vmem:[#allocation2 + $0x8] sm:$0xf] %v567_v12  ;;  %v583_v17 = vrot.slane %v579_v13, 4  ;;  %v6883_v47 = vld [vmem:[%s8064_s5 + $0x20] ss:$8 sps:$4 sm:$0xff]  }
 0x18f   :  { %586 = vst [vmem:[#allocation2] sm:$0xf0] %v582_v15  ;;  %v6901_v12 = vld [vmem:[%s8064_s5 + $0x44] ss:$8 sps:$4 sm:$0xff]   ;;  %v6907_v13 = vld [vmem:[%s8064_s5 + $0x40] ss:$8 sps:$4 sm:$0xff]  }
 0x190   :  { %587 = vst [vmem:[#allocation2 + $0x8] sm:$0xf0] %v583_v17  ;;  %v6913_v14 = vld [vmem:[%s8064_s5 + $0x54] ss:$8 sps:$4 sm:$0xff]   ;;  %v6919_v15 = vld [vmem:[%s8064_s5 + $0x50] ss:$8 sps:$4 sm:$0xff]  }
 0x191   :  { %v6925_v16 = vld [vmem:[%s8064_s5 + $0x64] ss:$8 sps:$4 sm:$0xff]   ;;  %v6931_v17 = vld [vmem:[%s8064_s5 + $0x60] ss:$8 sps:$4 sm:$0xff]  }
 0x196   :  { %v588_v18 = vld [vmem:[#allocation2] sm:$0xff] }
 0x197   :  { %v589_v19 = vld [vmem:[#allocation2 + $0x8] sm:$0xff]  ;;  %6125 = vtanh.f32 %v588_v18  ;;  %v6937_v18 = vld [vmem:[%s8064_s5 + $0x74] ss:$8 sps:$4 sm:$0xff]  }
 0x198   :  { %6127 = vtanh.f32 %v589_v19  ;;  %v892_v19 = vpop.permute.xlu0 %891 }
 0x1a1   :  { %v6126_v38 = vpop.eup %6125 }
 0x1a2   :  { %v6128_v1 = vpop.eup %6127  ;;  %v592_v26 = vpack.c.bf16 %v6126_v38, %v6126_v38 }
 0x1a3   :  { %v593_v2 = vpack.c.bf16 %v6128_v1, %v6128_v1 }
 0x1a5   :  { %818 = vmatprep.mubr.bf16.mxu1 %v593_v2 }
 0x1a6   :  { %819 = vmatmul.mubr.bf16.vlgmr.msra.gmra.mrb[4].mxu1 %v592_v26 }
 0x1a7   :  { %1238 = vmatpush1.bf16.msra.mxu1 %v6154_v27  ;;  %1269 = vmatprep.mubr.bf16.mxu1 %v1044_v9  ;;  %v884_v9 = vrot.slane %v81_v35, %v6607_v24  ;;  %v6955_v27 = vsub.s32 3, %v6595_v20 }
 0x1a8   :  { %1239 = vmatprep.subr.bf16.mxu1 %v6155_v37 }
 0x1ab   :  { %1240 = vmatpush1.bf16.msra.mxu1 %v6156_v39 }
 0x1ac   :  { %1241 = vmatprep.subr.bf16.mxu1 %v6157_v40 }
 0x1af   :  { %1242 = vmatpush1.bf16.msra.mxu1 %v6158_v41 }
 0x1b0   :  { %1243 = vmatprep.subr.bf16.mxu1 %v6159_v43 }
 0x1b3   :  { %1244 = vmatpush1.bf16.msra.mxu1 %v6160_v44  ;;  %v6958_v44 = vsub.s32 7, %v6595_v20 }
 0x1b4   :  { %1245 = vmatprep.subr.bf16.mxu1 %v6161_v23 }
 0x1b5   :  { %8174 = vst [vmem:[#allocation19_spill] sm:$0xff] %v6958_v44 }
 0x1b7   :  { %1246 = vmatpush1.bf16.msra.mxu1 %v6162_v29 }
 0x1b8   :  { %1247 = vmatprep.subr.bf16.mxu1 %v6163_v30 }
 0x1bb   :  { %1248 = vmatpush1.bf16.msra.mxu1 %v6164_v45 }
 0x1bc   :  { %1249 = vmatprep.subr.bf16.mxu1 %v6165_v31 }
 0x1bf   :  { %1250 = vmatpush1.bf16.msra.mxu1 %v6166_v32 }
 0x1c0   :  { %1251 = vmatprep.subr.bf16.mxu1 %v6167_v33 }
 0x1c1   :  { %v1008_v26 = vpop.xlane.xlu0 %1007 }
 0x1c3   :  { %1252 = vmatpush1.bf16.msra.mxu1 %v6168_v34 }
 0x1c4   :  { %1253 = vmatprep.subr.bf16.mxu1 %v6169_v48  ;;  %v875_v2 = vpop.xlane.xlu1 %874 }
 0x1c5   :  { %v887_v37 = vmul.f32 %v880_v36, %v875_v2  ;;  %v888_v41 = vmul.f32 %v884_v9, %v875_v2 }
 0x1c7   :  { %1254 = vmatpush1.bf16.msra.mxu1 %v6170_v50 }
 0x1c8   :  { %1255 = vmatprep.subr.bf16.mxu1 %v6171_v52  ;;  %v920_v32 = vpop.permute.xlu1 %919 }
 0x1cb   :  { %1256 = vmatpush1.bf16.msra.mxu1 %v6172_v55 }
 0x1cc   :  { %1257 = vmatprep.subr.bf16.mxu1 %v6173_v56 }
 0x1cf   :  { %1258 = vmatpush1.bf16.msra.mxu1 %v6174_v59 }
 0x1d0   :  { %1259 = vmatprep.subr.bf16.mxu1 %v6460_v46 }
 0x1d3   :  { %1260 = vmatpush1.bf16.msra.mxu1 %v6474_v49 }
 0x1d4   :  { %1261 = vmatprep.subr.bf16.mxu1 %v6482_v51 }
 0x1d7   :  { %1262 = vmatpush1.bf16.msra.mxu1 %v6490_v53 }
 0x1d8   :  { %1263 = vmatprep.subr.bf16.mxu1 %v6497_v54  ;;  %v6850_v54 = vld [vmem:[%s8064_s5] ss:$8 sps:$4 sm:$0xff]  }
 0x1db   :  { %1264 = vmatpush1.bf16.msra.mxu1 %v6508_v57  ;;  %v6855_v57 = vld [vmem:[%s8064_s5 + $0x4] ss:$8 sps:$4 sm:$0xff]  }
 0x1dc   :  { %1265 = vmatprep.subr.bf16.mxu1 %v6515_v58  ;;  %v6226_v58 = vmov 3  }
 0x1dd   :  { %5708 = vset.pattern.permute.xlu1 %v6226_v58  ;;  %5712 = vset.pattern.permute.xlu0 %v6226_v58 }
 0x1df   :  { %1266 = vmatpush1.bf16.msra.mxu1 %v6526_v61  ;;  %v6860_v61 = vld [vmem:[%s8064_s5 + $0x14] ss:$8 sps:$4 sm:$0xff]  }
 0x1e0   :  { %1267 = vmatprep.subr.bf16.mxu1 %v6533_v62  ;;  %v6175_v62 = vld [vmem:[%s8068_s9] sm:$0xf] }
 0x1e1   :  { %1632 = vperm.xlu1 %5708, %v6175_v62  }
 0x1e3   :  { %1268 = vmatpush1.bf16.msra.mxu1 %v6544_v3  ;;  %v6870_v3 = vld [vmem:[%s8064_s5 + $0x10] ss:$8 sps:$4 sm:$0xff]  }
 0x1e4   :  { %1922 = vmatprep.subr.bf16.mxu1 %v6855_v57 }
 0x1e5   :  { %5709 = vset.pattern.permute.xlu1 %v8167_v60  ;;  %v6895_v60 = vld [vmem:[%s8064_s5 + $0x30] ss:$8 sps:$4 sm:$0xff]  }
 0x1e6   :  { %1270 = vmatmul.mubr.bf16.vlgmr.msra.gmra.mrb[8].mxu1 %v1043_v8 }
 0x1e7   :  { %1923 = vmatpush1.bf16.msra.mxu1 %v6850_v54 }
 0x1e8   :  { %1924 = vmatprep.subr.bf16.mxu1 %v6860_v61 }
 0x1eb   :  { %1925 = vmatpush1.bf16.msra.mxu1 %v6870_v3 }
 0x1ec   :  { %1926 = vmatprep.subr.bf16.mxu1 %v6876_v10 }
 0x1ef   :  { %1927 = vmatpush1.bf16.msra.mxu1 %v6883_v47 }
 0x1f0   :  { %1928 = vmatprep.subr.bf16.mxu1 %v6889_v11 }
 0x1f3   :  { %1929 = vmatpush1.bf16.msra.mxu1 %v6895_v60 }
 0x1f4   :  { %1930 = vmatprep.subr.bf16.mxu1 %v6901_v12 }
 0x1f7   :  { %1931 = vmatpush1.bf16.msra.mxu1 %v6907_v13 }
 0x1f8   :  { %1932 = vmatprep.subr.bf16.mxu1 %v6913_v14 }
 0x1fb   :  { %1933 = vmatpush1.bf16.msra.mxu1 %v6919_v15 }
 0x1fc   :  { %1934 = vmatprep.subr.bf16.mxu1 %v6925_v16 }
 0x1ff   :  { %1935 = vmatpush1.bf16.msra.mxu1 %v6931_v17 }
 0x200   :  { %1936 = vmatprep.subr.bf16.mxu1 %v6937_v18 }
 0x203   :  { %1937 = vmatpush1.bf16.msra.mxu1 %v6943_v28 }
 0x204   :  { %v865_v46 = vpop.f32.mrb[4].mxu0 }
 0x205   :  { %v867_v49 = vpop.f32.mrb[5].mxu0  ;;  %v1012_v38 = vrot.slane %v865_v46, %v6598_v21 }
 0x206   :  { %v869_v51 = vpop.f32.mrb[6].mxu0  ;;  %v1016_v1 = vrot.slane %v867_v49, %v6598_v21  ;;  %v948_v49 = vpop.permute.xlu0 %947 }
 0x207   :  { %v870_v53 = vpop.f32.mrb[7].mxu0  ;;  %v1017_v39 = vmul.f32 %v1012_v38, %v1008_v26  ;;  %v8175_v38 = vld [vmem:[#allocation13_spill] sm:$0xff] }
 0x208   :  { %v1018_v40 = vmul.f32 %v1016_v1, %v1008_v26 }
 0x279   :  { %v820_v43 = vpop.f32.mrb[4].mxu1 }
 0x27a   :  { %v822_v23 = vpop.f32.mrb[5].mxu1  ;;  %v897_v29 = vrot.slane %v820_v43, %v6598_v21  ;;  %v909_v30 = vrot.slane %v820_v43, %v6601_v22  ;;  %v925_v45 = vrot.slane %v820_v43, %v6607_v24  ;;  %v937_v31 = vrot.slane %v820_v43, %v6610_v25 }
 0x27b   :  { %v901_v33 = vrot.slane %v822_v23, %v6598_v21  ;;  %v913_v34 = vrot.slane %v822_v23, %v6601_v22  ;;  %v929_v48 = vrot.slane %v822_v23, %v6607_v24  ;;  %v941_v50 = vrot.slane %v822_v23, %v6610_v25  ;;  %v824_v52 = vpop.f32.mrb[6].mxu1  ;;  %v8176_v25 = vld [vmem:[#allocation14_spill] sm:$0xff] }
 0x27c   :  { %v902_v55 = vmul.f32 %v897_v29, %v892_v19  ;;  %v914_v56 = vmul.f32 %v909_v30, %v892_v19  ;;  %v930_v59 = vmul.f32 %v925_v45, %v920_v32  ;;  %v942_v8 = vmul.f32 %v937_v31, %v920_v32  ;;  %v825_v46 = vpop.f32.mrb[7].mxu1 }
 0x27d   :  { %v903_v51 = vmul.f32 %v901_v33, %v892_v19  ;;  %v915_v53 = vmul.f32 %v913_v34, %v892_v19  ;;  %v931_v58 = vmul.f32 %v929_v48, %v920_v32  ;;  %v943_v62 = vmul.f32 %v941_v50, %v920_v32  ;;  %v976_v48 = vpop.permute.xlu1 %975 }
 0x27e   :  { %v904_v35 = vadd.f32 %v902_v55, %v887_v37  ;;  %v916_v36 = vadd.f32 %v914_v56, %v887_v37  ;;  %v953_v1 = vrot.slane %v820_v43, %v8175_v38  ;;  %v957_v2 = vrot.slane %v822_v23, %v8175_v38 }
 0x27f   :  { %v905_v9 = vadd.f32 %v903_v51, %v888_v41  ;;  %v917_v26 = vadd.f32 %v915_v53, %v888_v41  ;;  %v965_v52 = vrot.slane %v820_v43, %v8176_v25  ;;  %v969_v29 = vrot.slane %v822_v23, %v8176_v25  ;;  %v7134_v25 = vld [vmem:[#allocation6 + $0x74] ss:$8 sps:$4 sm:$0xff]  }
 0x280   :  { %v932_v30 = vadd.f32 %v930_v59, %v904_v35  ;;  %v944_v45 = vadd.f32 %v942_v8, %v916_v36  ;;  %v958_v31 = vmul.f32 %v953_v1, %v948_v49  ;;  %v959_v46 = vmul.f32 %v957_v2, %v948_v49  ;;  %8195 = vst [vmem:[#allocation38_spill] sm:$0xff] %v7134_v25 }
 0x281   :  { %v933_v33 = vadd.f32 %v931_v58, %v905_v9  ;;  %v945_v19 = vadd.f32 %v943_v62, %v917_v26  ;;  %v970_v34 = vmul.f32 %v965_v52, %v948_v49  ;;  %v971_v32 = vmul.f32 %v969_v29, %v948_v49 }
 0x282   :  { %v960_v50 = vadd.f32 %v958_v31, %v932_v30  ;;  %v981_v55 = vrot.slane %v820_v43, %v6955_v27  ;;  %v985_v56 = vrot.slane %v822_v23, %v6955_v27  ;;  %v993_v51 = vrot.slane %v820_v43, %v6958_v44 }
 0x283   :  { %v961_v53 = vadd.f32 %v959_v46, %v933_v33  ;;  %v972_v22 = vadd.f32 %v970_v34, %v944_v45  ;;  %v973_v0 = vadd.f32 %v971_v32, %v945_v19  ;;  %v997_v59 = vrot.slane %v822_v23, %v6958_v44  ;;  %v7137_v44 = vld [vmem:[#allocation6 + $0x70] ss:$8 sps:$4 sm:$0xff]  }
 0x284   :  { %v986_v8 = vmul.f32 %v981_v55, %v976_v48  ;;  %v987_v35 = vmul.f32 %v985_v56, %v976_v48  ;;  %v998_v36 = vmul.f32 %v993_v51, %v976_v48  ;;  %v1019_v62 = vadd.f32 %v1017_v39, %v887_v37  ;;  %8196 = vst [vmem:[#allocation39_spill] sm:$0xff] %v7137_v44 }
 0x285   :  { %v999_v58 = vmul.f32 %v997_v59, %v976_v48  ;;  %v1020_v9 = vadd.f32 %v1018_v40, %v888_v41 }
 0x286   :  { %v6976_v1 = vadd.f32 %v986_v8, %v960_v50  ;;  %v6978_v49 = vadd.f32 %v987_v35, %v961_v53  ;;  %v6980_v2 = vadd.f32 %v998_v36, %v972_v22  ;;  %v1027_v30 = vmul.f32 -1.0, %v1019_v62  ;;  %v6999_v35 = vld [vmem:[%s8064_s5 + $0x84] ss:$8 sps:$4 sm:$0xff]   ;;  %v7004_v36 = vld [vmem:[%s8064_s5 + $0x80] ss:$8 sps:$4 sm:$0xff]  }
 0x287   :  { %v6982_v26 = vadd.f32 %v999_v58, %v973_v0  ;;  %v1028_v37 = vmul.f32 -1.0, %v1020_v9  ;;  %1938 = vmatprep.subr.bf16.mxu1 %v6999_v35  ;;  %v7011_v58 = vld [vmem:[%s8064_s5 + $0x94] ss:$8 sps:$4 sm:$0xff]   ;;  %v7016_v62 = vld [vmem:[%s8064_s5 + $0x90] ss:$8 sps:$4 sm:$0xff]  }
 0x288   :  { %v1021_v43 = vmul.f32 9.0, %v6976_v1  ;;  %v1022_v52 = vmul.f32 9.0, %v6978_v49  ;;  %v1023_v23 = vmul.f32 -7.0, %v6980_v2  ;;  %1939 = vmatpush1.bf16.msra.mxu1 %v7004_v36  ;;  %v7021_v9 = vld [vmem:[%s8064_s5 + $0xa4] ss:$8 sps:$4 sm:$0xff]  }
 0x289   :  { %v1024_v29 = vmul.f32 -7.0, %v6982_v26  ;;  %1940 = vmatprep.subr.bf16.mxu1 %v7011_v58 }
 0x28a   :  { %v1025_v45 = vadd.f32 %v1023_v23, %v1021_v43  ;;  %v7028_v43 = vld [vmem:[%s8064_s5 + $0xa0] ss:$8 sps:$4 sm:$0xff]   ;;  %v7040_v23 = vld [vmem:[%s8064_s5 + $0xb0] ss:$8 sps:$4 sm:$0xff]  }
 0x28b   :  { %v1026_v39 = vadd.f32 %v1024_v29, %v1022_v52  ;;  %v7034_v52 = vld [vmem:[%s8064_s5 + $0xb4] ss:$8 sps:$4 sm:$0xff]   ;;  %v7046_v29 = vld [vmem:[%s8064_s5 + $0xc4] ss:$8 sps:$4 sm:$0xff]  }
 0x28c   :  { %v6988_v31 = vadd.f32 %v1027_v30, %v1025_v45  ;;  %1941 = vmatpush1.bf16.msra.mxu1 %v7016_v62  ;;  %v7052_v30 = vld [vmem:[%s8064_s5 + $0xc0] ss:$8 sps:$4 sm:$0xff]   ;;  %v7058_v45 = vld [vmem:[%s8064_s5 + $0xd4] ss:$8 sps:$4 sm:$0xff]  }
 0x28d   :  { %v6990_v46 = vadd.f32 %v1028_v37, %v1026_v39  ;;  %1942 = vmatprep.subr.bf16.mxu1 %v7021_v9  ;;  %v7064_v37 = vld [vmem:[%s8064_s5 + $0xd0] ss:$8 sps:$4 sm:$0xff]   ;;  %v7070_v39 = vld [vmem:[%s8064_s5 + $0xe4] ss:$8 sps:$4 sm:$0xff]  }
 0x28e   :  { %8177 = vst [vmem:[#allocation20_spill] sm:$0xff] %v7070_v39 }
 0x290   :  { %1943 = vmatpush1.bf16.msra.mxu1 %v7028_v43 }
 0x291   :  { %1944 = vmatprep.subr.bf16.mxu1 %v7034_v52 }
 0x294   :  { %1945 = vmatpush1.bf16.msra.mxu1 %v7040_v23 }
 0x295   :  { %1946 = vmatprep.subr.bf16.mxu1 %v7046_v29 }
 0x298   :  { %1947 = vmatpush1.bf16.msra.mxu1 %v7052_v30 }
 0x299   :  { %1948 = vmatprep.subr.bf16.mxu1 %v7058_v45 }
 0x29c   :  { %1949 = vmatpush1.bf16.msra.mxu1 %v7064_v37 }
 0x29d   :  { %1950 = vmatprep.subr.bf16.mxu1 %v7070_v39 }
 0x2b9   :  { %v1271_v22 = vpop.f32.mrb[8].mxu1 }
 0x2ba   :  { %v1278_v0 = vadd.f32 %v1271_v22, %v6744_v4  ;;  %v1282_v40 = vadd.f32 %v1271_v22, %v6748_v5  ;;  %v1273_v41 = vpop.f32.mrb[9].mxu1  ;;  %v7076_v22 = vld [vmem:[%s8064_s5 + $0xe0] ss:$8 sps:$4 sm:$0xff]  }
 0x2bb   :  { %v1279_v33 = vadd.f32 %v1273_v41, %v6752_v6  ;;  %v1283_v19 = vadd.f32 %v1273_v41, %v6756_v7  ;;  %v1275_v34 = vpop.f32.mrb[10].mxu1  ;;  %8178 = vst [vmem:[#allocation21_spill] sm:$0xff] %v7076_v22  ;;  %1951 = vmatpush1.bf16.msra.mxu1 %v7076_v22  ;;  %v7091_v41 = vld [vmem:[#allocation6] ss:$8 sps:$4 sm:$0xff]  }
 0x2bc   :  { %1280 = vst [vmem:[#allocation2] sm:$0xf] %v1278_v0  ;;  %v1286_v32 = vrot.slane %v1282_v40, 4  ;;  %v1276_v48 = vpop.f32.mrb[11].mxu1  ;;  %v7082_v0 = vld [vmem:[%s8064_s5 + $0xf4] ss:$8 sps:$4 sm:$0xff]  }
 0x2bd   :  { %1281 = vst [vmem:[#allocation2 + $0x8] sm:$0xf] %v1279_v33  ;;  %v1287_v50 = vrot.slane %v1283_v19, 4  ;;  %8179 = vst [vmem:[#allocation22_spill] sm:$0xff] %v7082_v0  ;;  %v7088_v40 = vld [vmem:[%s8064_s5 + $0xf0] ss:$8 sps:$4 sm:$0xff]   ;;  %1952 = vmatprep.subr.bf16.mxu1 %v7082_v0 }
 0x2be   :  { %1290 = vst [vmem:[#allocation2] sm:$0xf0] %v1286_v32  ;;  %8180 = vst [vmem:[#allocation23_spill] sm:$0xff] %v7088_v40  ;;  %v7093_v33 = vld [vmem:[#allocation6 + $0x4] ss:$8 sps:$4 sm:$0xff]  }
 0x2bf   :  { %1291 = vst [vmem:[#allocation2 + $0x8] sm:$0xf0] %v1287_v50  ;;  %8181 = vst [vmem:[#allocation24_spill] sm:$0xff] %v7091_v41  ;;  %v7095_v19 = vld [vmem:[#allocation6 + $0x14] ss:$8 sps:$4 sm:$0xff]   ;;  %2175 = vmatprep.subr.bf16.mxu0 %v7093_v33  ;;  %1953 = vmatpush1.bf16.msra.mxu1 %v7088_v40 }
 0x2c0   :  { %8182 = vst [vmem:[#allocation25_spill] sm:$0xff] %v7093_v33  ;;  %8183 = vst [vmem:[#allocation26_spill] sm:$0xff] %v7095_v19  ;;  %v7100_v34 = vld [vmem:[#allocation6 + $0x10] ss:$8 sps:$4 sm:$0xff]   ;;  %v7103_v32 = vld [vmem:[#allocation6 + $0x24] ss:$8 sps:$4 sm:$0xff]   ;;  %2588 = vmatprep.subr.bf16.mxu1 %v6855_v57 }
 0x2c1   :  { %8184 = vst [vmem:[#allocation27_spill] sm:$0xff] %v7100_v34  ;;  %8185 = vst [vmem:[#allocation28_spill] sm:$0xff] %v7103_v32  ;;  %v7107_v48 = vld [vmem:[#allocation6 + $0x20] ss:$8 sps:$4 sm:$0xff]   ;;  %v7110_v50 = vld [vmem:[#allocation6 + $0x34] ss:$8 sps:$4 sm:$0xff]  }
 0x2c2   :  { %8186 = vst [vmem:[#allocation29_spill] sm:$0xff] %v7107_v48  ;;  %8187 = vst [vmem:[#allocation30_spill] sm:$0xff] %v7110_v50  ;;  %v7122_v57 = vld [vmem:[#allocation6 + $0x54] ss:$8 sps:$4 sm:$0xff]  }
 0x2c3   :  { %8191 = vst [vmem:[#allocation34_spill] sm:$0xff] %v7122_v57 }
 0x2c5   :  { %v1292_v55 = vld [vmem:[#allocation2] sm:$0xff] }
 0x2c6   :  { %v1293_v56 = vld [vmem:[#allocation2 + $0x8] sm:$0xff]  ;;  %6129 = vtanh.f32 %v1292_v55 }
 0x2c7   :  { %6131 = vtanh.f32 %v1293_v56  ;;  %v7113_v55 = vld [vmem:[#allocation6 + $0x30] ss:$8 sps:$4 sm:$0xff]   ;;  %v7116_v56 = vld [vmem:[#allocation6 + $0x44] ss:$8 sps:$4 sm:$0xff]  }
 0x2c8   :  { %8188 = vst [vmem:[#allocation31_spill] sm:$0xff] %v7113_v55  ;;  %8189 = vst [vmem:[#allocation32_spill] sm:$0xff] %v7116_v56 }
 0x2d0   :  { %v6130_v51 = vpop.eup %6129 }
 0x2d1   :  { %v6132_v53 = vpop.eup %6131  ;;  %v1296_v8 = vpack.c.bf16 %v6130_v51, %v6130_v51  ;;  %v7119_v51 = vld [vmem:[#allocation6 + $0x40] ss:$8 sps:$4 sm:$0xff]  }
 0x2d2   :  { %v1297_v59 = vpack.c.bf16 %v6132_v53, %v6132_v53  ;;  %8190 = vst [vmem:[#allocation33_spill] sm:$0xff] %v7119_v51  ;;  %v7125_v53 = vld [vmem:[#allocation6 + $0x50] ss:$8 sps:$4 sm:$0xff]  }
 0x2d3   :  { %8192 = vst [vmem:[#allocation35_spill] sm:$0xff] %v7125_v53 }
 0x2d4   :  { %1522 = vmatprep.mubr.bf16.mxu0 %v1297_v59  ;;  %v7128_v59 = vld [vmem:[#allocation6 + $0x64] ss:$8 sps:$4 sm:$0xff]  }
 0x2d5   :  { %1523 = vmatmul.mubr.bf16.vlgmr.msra.gmra.mrb[8].mxu0 %v1296_v8  ;;  %8193 = vst [vmem:[#allocation36_spill] sm:$0xff] %v7128_v59  ;;  %v7131_v8 = vld [vmem:[#allocation6 + $0x60] ss:$8 sps:$4 sm:$0xff]  }
 0x2d6   :  { %2176 = vmatpush1.bf16.msra.mxu0 %v7091_v41  ;;  %8194 = vst [vmem:[#allocation37_spill] sm:$0xff] %v7131_v8 }
 0x2d7   :  { %2177 = vmatprep.subr.bf16.mxu0 %v7095_v19 }
 0x2da   :  { %2178 = vmatpush1.bf16.msra.mxu0 %v7100_v34 }
 0x2db   :  { %2179 = vmatprep.subr.bf16.mxu0 %v7103_v32 }
 0x2de   :  { %2180 = vmatpush1.bf16.msra.mxu0 %v7107_v48 }
 0x2df   :  { %2181 = vmatprep.subr.bf16.mxu0 %v7110_v50 }
 0x2e2   :  { %2182 = vmatpush1.bf16.msra.mxu0 %v7113_v55 }
 0x2e3   :  { %2183 = vmatprep.subr.bf16.mxu0 %v7116_v56 }
 0x2e6   :  { %2184 = vmatpush1.bf16.msra.mxu0 %v7119_v51 }
 0x2e7   :  { %2185 = vmatprep.subr.bf16.mxu0 %v7122_v57  ;;  %v7143_v57 = vld [vmem:[#allocation6 + $0x80] ss:$8 sps:$4 sm:$0xff]  }
 0x2e8   :  { %8198 = vst [vmem:[#allocation41_spill] sm:$0xff] %v7143_v57 }
 0x2ea   :  { %2186 = vmatpush1.bf16.msra.mxu0 %v7125_v53  ;;  %v7147_v53 = vpop.permute.xlu1 %1544 }
 0x2eb   :  { %2187 = vmatprep.subr.bf16.mxu0 %v7128_v59  ;;  %8199 = vst [vmem:[#allocation42_spill] sm:$0xff] %v7147_v53 }
 0x2ee   :  { %2188 = vmatpush1.bf16.msra.mxu0 %v7131_v8  ;;  %v7149_v59 = vpop.permute.xlu1 %1576 }
 0x2ef   :  { %2189 = vmatprep.subr.bf16.mxu0 %v7134_v25  ;;  %8200 = vst [vmem:[#allocation43_spill] sm:$0xff] %v7149_v59 }
 0x2f2   :  { %2190 = vmatpush1.bf16.msra.mxu0 %v7137_v44  ;;  %v7154_v33 = vpop.permute.xlu1 %1604 }
 0x2f3   :  { %2191 = vmatprep.subr.bf16.mxu0 %v7140_v63 }
 0x2f6   :  { %2192 = vmatpush1.bf16.msra.mxu0 %v7143_v57 }
 0x3a8   :  { %v1524_v51 = vpop.f32.mrb[8].mxu0 }
 0x3a9   :  { %v1533_v8 = vmul.f32 -7.0, %v1524_v51  ;;  %v1559_v56 = vrot.slane %v1524_v51, 4  ;;  %v1526_v55 = vpop.f32.mrb[9].mxu0  ;;  %v1531_v32 = vmul.f32 8.0, %v1524_v51 }
 0x3aa   :  { %v1534_v50 = vmul.f32 -7.0, %v1526_v55  ;;  %v1560_v25 = vrot.slane %v1526_v55, 4  ;;  %v1528_v48 = vpop.f32.mrb[10].mxu0  ;;  %v1532_v41 = vmul.f32 8.0, %v1526_v55 }
 0x3ab   :  { %v1537_v34 = vrot.slane %v1533_v8, 4  ;;  %v1563_v44 = vsub.f32 %v1524_v51, %v1559_v56  ;;  %v1529_v19 = vpop.f32.mrb[11].mxu0 }
 0x3ac   :  { %v1538_v7 = vrot.slane %v1534_v50, 4  ;;  %v1564_v63 = vsub.f32 %v1526_v55, %v1560_v25 }
 0x3ad   :  { %v1541_v6 = vadd.f32 %v1537_v34, %v1531_v32  ;;  %v1568_v57 = vrot.slane %v1563_v44, %v6598_v21  ;;  %v1592_v5 = vrot.slane %v1563_v44, %v6607_v24  ;;  %v1620_v4 = vrot.slane %v1563_v44, %v8175_v38 }
 0x3ae   :  { %v1648_v40 = vrot.slane %v1563_v44, %v6955_v27  ;;  %v1542_v0 = vadd.f32 %v1538_v7, %v1532_v41  ;;  %v1572_v48 = vrot.slane %v1564_v63, %v6598_v21  ;;  %v1596_v56 = vrot.slane %v1564_v63, %v6607_v24 }
 0x3af   :  { %v1550_v19 = vrot.slane %v1541_v6, %v6598_v21  ;;  %v1573_v25 = vmul.f32 %v1568_v57, %v7147_v53  ;;  %v1582_v34 = vrot.slane %v1541_v6, %v6607_v24  ;;  %v1597_v32 = vmul.f32 %v1592_v5, %v7149_v59 }
 0x3b0   :  { %v1610_v50 = vrot.slane %v1541_v6, %v8175_v38  ;;  %v1638_v55 = vrot.slane %v1541_v6, %v6955_v27  ;;  %v1554_v51 = vrot.slane %v1542_v0, %v6598_v21  ;;  %v1574_v7 = vmul.f32 %v1572_v48, %v7147_v53 }
 0x3b1   :  { %v1555_v44 = vmul.f32 %v1550_v19, %v7147_v53  ;;  %v1587_v41 = vmul.f32 %v1582_v34, %v7149_v59  ;;  %v1601_v8 = vadd.f32 %v1597_v32, %v1573_v25  ;;  %v1586_v22 = vrot.slane %v1542_v0, %v6607_v24  ;;  %v7179_v25 = vpop.permute.xlu1 %1632 }
 0x3b2   :  { %v1556_v57 = vmul.f32 %v1554_v51, %v7147_v53  ;;  %v1598_v5 = vmul.f32 %v1596_v56, %v7149_v59  ;;  %v1614_v39 = vrot.slane %v1542_v0, %v8175_v38  ;;  %v1624_v6 = vrot.slane %v1564_v63, %v8175_v38 }
 0x3b3   :  { %v1599_v21 = vadd.f32 %v1587_v41, %v1555_v44  ;;  %v1588_v48 = vmul.f32 %v1586_v22, %v7149_v59  ;;  %v1642_v19 = vrot.slane %v1542_v0, %v6955_v27  ;;  %v1652_v34 = vrot.slane %v1564_v63, %v6955_v27 }
 0x3b4   :  { %v1602_v32 = vadd.f32 %v1598_v5, %v1574_v7  ;;  %v1615_v51 = vmul.f32 %v1610_v50, %v7154_v33  ;;  %v1616_v56 = vmul.f32 %v1614_v39, %v7154_v33  ;;  %v1625_v38 = vmul.f32 %v1620_v4, %v7154_v33 }
 0x3b5   :  { %v1600_v53 = vadd.f32 %v1588_v48, %v1556_v57  ;;  %v1626_v44 = vmul.f32 %v1624_v6, %v7154_v33  ;;  %v1643_v0 = vmul.f32 %v1638_v55, %v7179_v25  ;;  %v1644_v63 = vmul.f32 %v1642_v19, %v7179_v25 }
 0x3b6   :  { %v1627_v22 = vadd.f32 %v1615_v51, %v1599_v21  ;;  %v1653_v41 = vmul.f32 %v1648_v40, %v7179_v25  ;;  %v1629_v5 = vadd.f32 %v1625_v38, %v1601_v8  ;;  %v1654_v50 = vmul.f32 %v1652_v34, %v7179_v25 }
 0x3b7   :  { %v1628_v7 = vadd.f32 %v1616_v56, %v1600_v53  ;;  %v1630_v59 = vadd.f32 %v1626_v44, %v1602_v32  ;;  %v7193_v39 = vsub.f32 %v6976_v1, %v6980_v2  ;;  %v7197_v4 = vsub.f32 %v6978_v49, %v6982_v26  ;;  %v1669_v49 = vld [vmem:[%s8062_s3] sm:$0xff] }
 0x3b8   :  { %v1655_v21 = vadd.f32 %v1643_v0, %v1627_v22  ;;  %v1661_v57 = vstv %s7170_s10  ;;  %v1657_v6 = vadd.f32 %v1653_v41, %v1629_v5  ;;  %v1670_v2 = vstv %s7181_s21 }
 0x3b9   :  { %v1656_v55 = vadd.f32 %v1644_v63, %v1628_v7  ;;  %v1658_v48 = vadd.f32 %v1654_v50, %v1630_v59  ;;  %v1671_v32 = vmul.f32 %v1670_v2, %v1669_v49  ;;  %v1723_v63 = vstv %s5334_s4 }
 0x3ba   :  { %v1659_v40 = vadd.f32 %v1655_v21, %v6988_v31  ;;  %v1673_v53 = vadd.f32 %v1657_v6, %v7193_v39  ;;  %v6227_v50 = vmov 1966171168  }
 0x3bb   :  { %v1660_v38 = vadd.f32 %v1656_v55, %v6990_v46  ;;  %v1674_v8 = vadd.f32 %v1658_v48, %v7197_v4  ;;  %v1699_v21 = vunpack.c.l.s4 %v6227_v50 }
 0x3bc   :  { %v1662_v1 = vmul.f32 %v1661_v57, %v1659_v40  ;;  %v1675_v19 = vand.u32 2147483647, %v1673_v53 }
 0x3bd   :  { %v1663_v26 = vmul.f32 %v1661_v57, %v1660_v38  ;;  %v1676_v34 = vand.u32 2147483647, %v1674_v8  ;;  %v1700_v53 = vunpack.c.0.s8 %v1699_v21 }
 0x3be   :  { %v1678_v51 = vsel %vm1677_vm2, %v1675_v19, 0.0 }
 0x3bf   :  { %v1666_v59 = vcombine.low %v1662_v1, %v1663_v26  ;;  %v1685_v56 = vsel %vm1677_vm2, %v1676_v34, 0.0  ;;  %v1679_v44 = vrot.slane %v1678_v51, 4  ;;  %v7215_v34 = vsub.s32 %v1700_v53, %v6595_v20  ;;  %v8213_v53 = vld [vmem:[#allocation24_spill] sm:$0xff] }
 0x3c0   :  { %v1686_v22 = vrot.slane %v1685_v56, 4 }
 0x3c1   :  { %v1668_v0 = vadd.f32 %v1666_v59, %v6765_v42  ;;  %v1680_v41 = vadd.f32 %v1679_v44, %v1678_v51  ;;  %v1692_v42 = vstv %s5269_s12  ;;  %v8201_v44 = vlaneseq  ;;  %s7637_s12 = sld [smem:[#allocation3 + $0x9]] }
 0x3c2   :  { %v1687_v7 = vadd.f32 %v1686_v22, %v1685_v56 }
 0x3c3   :  { %v7211_v5 = vadd.f32 %v1671_v32, %v1668_v0  ;;  %v1681_v55 = vrot.slane %v1680_v41, 2  ;;  %vm7222_vm3 = vcmp.lt.s32.totalorder %v8201_v44, 256  ;;  %v8212_v0 = vld [vmem:[#allocation18_spill] sm:$0xff]  ;;  %v8225_v44 = vld [vmem:[#allocation37_spill] sm:$0xff] }
 0x3c4   :  { %v1688_v57 = vrot.slane %v1687_v7, 2 }
 0x3c5   :  { %v1724_v6 = vmul.f32 %v1723_v63, %v7211_v5  ;;  %v1682_v48 = vadd.f32 %v1681_v55, %v1680_v41 }
 0x3c6   :  { %v1689_v40 = vadd.f32 %v1688_v57, %v1687_v7 }
 0x3c7   :  { %v1726_v38 = vcombine.high %v1724_v6, %v1724_v6  ;;  %v1683_v8 = vrot.slane %v1682_v48, 1  ;;  %v1728_v2 = vpack.c.bf16 %v1724_v6, %v1724_v6 }
 0x3c8   :  { %v1690_v1 = vrot.slane %v1689_v40, 1 }
 0x3c9   :  { %v1729_v49 = vpack.c.bf16 %v1726_v38, %v1726_v38  ;;  %v1684_v26 = vadd.f32 %v1683_v8, %v1682_v48  ;;  %v8214_v8 = vld [vmem:[#allocation26_spill] sm:$0xff] }
 0x3ca   :  { %v1691_v19 = vadd.f32 %v1690_v1, %v1689_v40  ;;  %v8215_v1 = vld [vmem:[#allocation27_spill] sm:$0xff] }
 0x3cb   :  { %1954 = vmatprep.mubr.bf16.mxu1 %v1729_v49  ;;  %v1693_v59 = vmul.f32 %v1692_v42, %v1684_v26  ;;  %v8216_v49 = vld [vmem:[#allocation28_spill] sm:$0xff]  ;;  %v8219_v26 = vld [vmem:[#allocation31_spill] sm:$0xff] }
 0x3cc   :  { %1955 = vmatmul.mubr.bf16.vlgmr.msra.gmra.mrb[12].mxu1 %v1728_v2  ;;  %v1694_v32 = vmul.f32 %v1692_v42, %v1691_v19  ;;  %v8217_v42 = vld [vmem:[#allocation29_spill] sm:$0xff]  ;;  %v8218_v2 = vld [vmem:[#allocation30_spill] sm:$0xff]  ;;  %v8220_v19 = vld [vmem:[#allocation32_spill] sm:$0xff] }
 0x3cd   :  { %2589 = vmatpush1.bf16.msra.mxu1 %v6850_v54  ;;  %v8204_v54 = vld [vmem:[#allocation20_spill] sm:$0xff] }
 0x3ce   :  { %2590 = vmatprep.subr.bf16.mxu1 %v6860_v61  ;;  %v1697_v51 = vcombine.low %v1693_v59, %v1694_v32  ;;  %v8205_v61 = vld [vmem:[#allocation21_spill] sm:$0xff]  ;;  %v8222_v32 = vld [vmem:[#allocation34_spill] sm:$0xff] }
 0x3cf   :  { %v8221_v59 = vld [vmem:[#allocation33_spill] sm:$0xff] }
 0x3d0   :  { %v1704_v56 = vrot.slane %v1697_v51, %v7215_v34  ;;  %v8223_v51 = vld [vmem:[#allocation35_spill] sm:$0xff] }
 0x3d1   :  { %2591 = vmatpush1.bf16.msra.mxu1 %v6870_v3  ;;  %v8206_v3 = vld [vmem:[#allocation22_spill] sm:$0xff] }
 0x3d2   :  { %2592 = vmatprep.subr.bf16.mxu1 %v6876_v10  ;;  %v1711_v20 = vrot.slane %v1704_v56, %v7215_v34  ;;  %v8207_v10 = vld [vmem:[#allocation23_spill] sm:$0xff]  ;;  %v8224_v56 = vld [vmem:[#allocation36_spill] sm:$0xff] }
 0x3d4   :  { %1717 = vst.msk [vmem:[%s8075_s16] ss:$8 sm:$0x3] %vm7222_vm3, %v1711_v20  ;;  %v8226_v20 = vld [vmem:[#allocation38_spill] sm:$0xff] }
 0x3d5   :  { %2593 = vmatpush1.bf16.msra.mxu1 %v6883_v47  ;;  %v7260_v47 = vld [vmem:[#allocation6 + $0x94] ss:$8 sps:$4 sm:$0xff]  }
 0x3d6   :  { %2594 = vmatprep.subr.bf16.mxu1 %v6889_v11  ;;  %v7262_v11 = vld [vmem:[#allocation6 + $0x90] ss:$8 sps:$4 sm:$0xff]   ;;  %2193 = vmatprep.subr.bf16.mxu0 %v7260_v47 }
 0x3d7   :  { %2194 = vmatpush1.bf16.msra.mxu0 %v7262_v11 }
 0x3d9   :  { %2595 = vmatpush1.bf16.msra.mxu1 %v6895_v60  ;;  %v7265_v60 = vld [vmem:[#allocation6 + $0xa4] ss:$8 sps:$4 sm:$0xff]  }
 0x3da   :  { %2596 = vmatprep.subr.bf16.mxu1 %v6901_v12  ;;  %v7268_v12 = vld [vmem:[#allocation6 + $0xa0] ss:$8 sps:$4 sm:$0xff]   ;;  %2195 = vmatprep.subr.bf16.mxu0 %v7265_v60 }
 0x3db   :  { %2196 = vmatpush1.bf16.msra.mxu0 %v7268_v12 }
 0x3dd   :  { %2597 = vmatpush1.bf16.msra.mxu1 %v6907_v13  ;;  %v7271_v13 = vld [vmem:[#allocation6 + $0xb4] ss:$8 sps:$4 sm:$0xff]  }
 0x3de   :  { %2598 = vmatprep.subr.bf16.mxu1 %v6913_v14  ;;  %v7274_v14 = vld [vmem:[#allocation6 + $0xb0] ss:$8 sps:$4 sm:$0xff]   ;;  %2197 = vmatprep.subr.bf16.mxu0 %v7271_v13 }
 0x3df   :  { %2198 = vmatpush1.bf16.msra.mxu0 %v7274_v14 }
 0x3e1   :  { %2599 = vmatpush1.bf16.msra.mxu1 %v6919_v15  ;;  %v7277_v15 = vld [vmem:[#allocation6 + $0xc4] ss:$8 sps:$4 sm:$0xff]  }
 0x3e2   :  { %2600 = vmatprep.subr.bf16.mxu1 %v6925_v16  ;;  %v7280_v16 = vld [vmem:[#allocation6 + $0xc0] ss:$8 sps:$4 sm:$0xff]   ;;  %2199 = vmatprep.subr.bf16.mxu0 %v7277_v15 }
 0x3e3   :  { %2200 = vmatpush1.bf16.msra.mxu0 %v7280_v16 }
 0x3e5   :  { %2601 = vmatpush1.bf16.msra.mxu1 %v6931_v17  ;;  %v5922_v17 = vld [vmem:[#allocation6 + $0xd4] ss:$8 sps:$4 sm:$0xff]  }
 0x3e6   :  { %2602 = vmatprep.subr.bf16.mxu1 %v6937_v18  ;;  %v5920_v18 = vld [vmem:[#allocation6 + $0xd0] ss:$8 sps:$4 sm:$0xff]   ;;  %2201 = vmatprep.subr.bf16.mxu0 %v5922_v17 }
 0x3e7   :  { %2202 = vmatpush1.bf16.msra.mxu0 %v5920_v18 }
 0x3e9   :  { %2603 = vmatpush1.bf16.msra.mxu1 %v6943_v28  ;;  %v5925_v28 = vld [vmem:[#allocation6 + $0xe4] ss:$8 sps:$4 sm:$0xff]  }
 0x3ea   :  { %2604 = vmatprep.subr.bf16.mxu1 %v6999_v35  ;;  %v5923_v35 = vld [vmem:[#allocation6 + $0xe0] ss:$8 sps:$4 sm:$0xff]   ;;  %2203 = vmatprep.subr.bf16.mxu0 %v5925_v28 }
 0x3eb   :  { %2204 = vmatpush1.bf16.msra.mxu0 %v5923_v35 }
 0x3ed   :  { %2605 = vmatpush1.bf16.msra.mxu1 %v7004_v36  ;;  %v5928_v36 = vld [vmem:[#allocation6 + $0xf4] ss:$8 sps:$4 sm:$0xff]  }
 0x3ee   :  { %2606 = vmatprep.subr.bf16.mxu1 %v7011_v58  ;;  %v5926_v58 = vld [vmem:[#allocation6 + $0xf0] ss:$8 sps:$4 sm:$0xff]   ;;  %2205 = vmatprep.subr.bf16.mxu0 %v5928_v36 }
 0x3ef   :  { %2206 = vmatpush1.bf16.msra.mxu0 %v5926_v58 }
 0x3f1   :  { %2607 = vmatpush1.bf16.msra.mxu1 %v7016_v62  ;;  %v8208_v62 = vld [vmem:[#allocation25_spill] sm:$0xff] }
 0x3f2   :  { %2608 = vmatprep.subr.bf16.mxu1 %v7021_v9  ;;  %2841 = vmatprep.subr.bf16.mxu0 %v8208_v62 }
 0x3f5   :  { %2609 = vmatpush1.bf16.msra.mxu1 %v7028_v43  ;;  %v8209_v43 = vld [vmem:[#allocation15_spill] sm:$0xff] }
 0x3f6   :  { %2610 = vmatprep.subr.bf16.mxu1 %v7034_v52 }
 0x3f9   :  { %2611 = vmatpush1.bf16.msra.mxu1 %v7040_v23  ;;  %v8210_v23 = vld [vmem:[#allocation16_spill] sm:$0xff] }
 0x3fa   :  { %2612 = vmatprep.subr.bf16.mxu1 %v7046_v29 }
 0x3fd   :  { %2613 = vmatpush1.bf16.msra.mxu1 %v7052_v30 }
 0x3fe   :  { %2614 = vmatprep.subr.bf16.mxu1 %v7058_v45  ;;  %v8211_v45 = vld [vmem:[#allocation17_spill] sm:$0xff] }
 0x401   :  { %2615 = vmatpush1.bf16.msra.mxu1 %v7064_v37 }
 0x402   :  { %2616 = vmatprep.subr.bf16.mxu1 %v8204_v54  ;;  %v8227_v54 = vld [vmem:[#allocation39_spill] sm:$0xff] }
 0x405   :  { %2617 = vmatpush1.bf16.msra.mxu1 %v8205_v61  ;;  %v8228_v61 = vld [vmem:[#allocation40_spill] sm:$0xff] }
 0x406   :  { %2618 = vmatprep.subr.bf16.mxu1 %v8206_v3  ;;  %v8229_v3 = vld [vmem:[#allocation41_spill] sm:$0xff] }
 0x409   :  { %2619 = vmatpush1.bf16.msra.mxu1 %v8207_v10 }
 0x49f   :  { %v1956_v9 = vpop.f32.mrb[12].mxu1 }
 0x4a0   :  { %v1963_v52 = vadd.f32 %v1956_v9, %v8209_v43  ;;  %v1967_v29 = vadd.f32 %v1956_v9, %v8210_v23  ;;  %v1958_v30 = vpop.f32.mrb[13].mxu1 }
 0x4a1   :  { %v1964_v37 = vadd.f32 %v1958_v30, %v8211_v45  ;;  %v1968_v63 = vadd.f32 %v1958_v30, %v8212_v0  ;;  %v1960_v41 = vpop.f32.mrb[14].mxu1 }
 0x4a2   :  { %1965 = vst [vmem:[#allocation2] sm:$0xf] %v1963_v52  ;;  %v1971_v7 = vrot.slane %v1967_v29, 4  ;;  %v1961_v50 = vpop.f32.mrb[15].mxu1 }
 0x4a3   :  { %1966 = vst [vmem:[#allocation2 + $0x8] sm:$0xf] %v1964_v37  ;;  %v1972_v21 = vrot.slane %v1968_v63, 4 }
 0x4a4   :  { %1975 = vst [vmem:[#allocation2] sm:$0xf0] %v1971_v7 }
 0x4a5   :  { %1976 = vst [vmem:[#allocation2 + $0x8] sm:$0xf0] %v1972_v21  ;;  %v8232_v21 = vld [vmem:[#allocation42_spill] sm:$0xff] }
 0x4ab   :  { %v1977_v55 = vld [vmem:[#allocation2] sm:$0xff] }
 0x4ac   :  { %v1978_v57 = vld [vmem:[#allocation2 + $0x8] sm:$0xff]  ;;  %6133 = vtanh.f32 %v1977_v55 }
 0x4ad   :  { %6135 = vtanh.f32 %v1978_v57 }
 0x4b6   :  { %v6134_v6 = vpop.eup %6133 }
 0x4b7   :  { %v6136_v48 = vpop.eup %6135  ;;  %v1981_v38 = vpack.c.bf16 %v6134_v6, %v6134_v6  ;;  %v8233_v6 = vld [vmem:[#allocation43_spill] sm:$0xff] }
 0x4b8   :  { %v1982_v40 = vpack.c.bf16 %v6136_v48, %v6136_v48 }
 0x4ba   :  { %2207 = vmatprep.mubr.bf16.mxu0 %v1982_v40 }
 0x4bb   :  { %2208 = vmatmul.mubr.bf16.vlgmr.msra.gmra.mrb[12].mxu0 %v1981_v38 }
 0x4bc   :  { %2842 = vmatpush1.bf16.msra.mxu0 %v8213_v53 }
 0x4bd   :  { %2843 = vmatprep.subr.bf16.mxu0 %v8214_v8 }
 0x4c0   :  { %2844 = vmatpush1.bf16.msra.mxu0 %v8215_v1 }
 0x4c1   :  { %2845 = vmatprep.subr.bf16.mxu0 %v8216_v49 }
 0x4c4   :  { %2846 = vmatpush1.bf16.msra.mxu0 %v8217_v42 }
 0x4c5   :  { %2847 = vmatprep.subr.bf16.mxu0 %v8218_v2 }
 0x4c8   :  { %2848 = vmatpush1.bf16.msra.mxu0 %v8219_v26 }
 0x4c9   :  { %2849 = vmatprep.subr.bf16.mxu0 %v8220_v19 }
 0x4cc   :  { %2850 = vmatpush1.bf16.msra.mxu0 %v8221_v59 }
 0x4cd   :  { %2851 = vmatprep.subr.bf16.mxu0 %v8222_v32 }
 0x4d0   :  { %2852 = vmatpush1.bf16.msra.mxu0 %v8223_v51 }
 0x4d1   :  { %2853 = vmatprep.subr.bf16.mxu0 %v8224_v56 }
 0x4d4   :  { %2854 = vmatpush1.bf16.msra.mxu0 %v8225_v44 }
 0x4d5   :  { %2855 = vmatprep.subr.bf16.mxu0 %v8226_v20 }
 0x4d8   :  { %2856 = vmatpush1.bf16.msra.mxu0 %v8227_v54 }
 0x4d9   :  { %2857 = vmatprep.subr.bf16.mxu0 %v8228_v61 }
 0x4dc   :  { %2858 = vmatpush1.bf16.msra.mxu0 %v8229_v3 }
 0x4dd   :  { %2859 = vmatprep.subr.bf16.mxu0 %v7260_v47 }
 0x4e0   :  { %2860 = vmatpush1.bf16.msra.mxu0 %v7262_v11 }
 0x4e1   :  { %2861 = vmatprep.subr.bf16.mxu0 %v7265_v60 }
 0x4e4   :  { %2862 = vmatpush1.bf16.msra.mxu0 %v7268_v12 }
 0x4e5   :  { %2863 = vmatprep.subr.bf16.mxu0 %v7271_v13 }
 0x4e8   :  { %2864 = vmatpush1.bf16.msra.mxu0 %v7274_v14 }
 0x4e9   :  { %2865 = vmatprep.subr.bf16.mxu0 %v7277_v15 }
 0x4ec   :  { %2866 = vmatpush1.bf16.msra.mxu0 %v7280_v16 }
 0x4ed   :  { %2867 = vmatprep.subr.bf16.mxu0 %v5922_v17 }
 0x4f0   :  { %2868 = vmatpush1.bf16.msra.mxu0 %v5920_v18  ;;  %v8230_v18 = vld [vmem:[#allocation9_spill] sm:$0xff] }
 0x4f1   :  { %2869 = vmatprep.subr.bf16.mxu0 %v5925_v28 }
 0x4f4   :  { %2870 = vmatpush1.bf16.msra.mxu0 %v5923_v35 }
 0x4f5   :  { %2871 = vmatprep.subr.bf16.mxu0 %v5928_v36  ;;  %v8231_v36 = vld [vmem:[#allocation13_spill] sm:$0xff] }
 0x4f8   :  { %2872 = vmatpush1.bf16.msra.mxu0 %v5926_v58 }
 0x58e   :  { %v2209_v10 = vpop.f32.mrb[12].mxu0 }
 0x58f   :  { %v2218_v47 = vmul.f32 -7.0, %v2209_v10  ;;  %v2240_v11 = vrot.slane %v2209_v10, 4  ;;  %v2211_v60 = vpop.f32.mrb[13].mxu0  ;;  %v2216_v13 = vmul.f32 8.0, %v2209_v10 }
 0x590   :  { %v2219_v62 = vmul.f32 -7.0, %v2211_v60  ;;  %v2241_v12 = vrot.slane %v2211_v60, 4  ;;  %v2213_v9 = vpop.f32.mrb[14].mxu0  ;;  %v2217_v15 = vmul.f32 8.0, %v2211_v60 }
 0x591   :  { %v2222_v52 = vrot.slane %v2218_v47, 4  ;;  %v2244_v14 = vsub.f32 %v2209_v10, %v2240_v11  ;;  %v2214_v29 = vpop.f32.mrb[15].mxu0 }
 0x592   :  { %v2223_v30 = vrot.slane %v2219_v62, 4  ;;  %v2245_v16 = vsub.f32 %v2211_v60, %v2241_v12 }
 0x593   :  { %v2226_v17 = vadd.f32 %v2222_v52, %v2216_v13  ;;  %v2249_v28 = vrot.slane %v2244_v14, %v8230_v18  ;;  %v2269_v35 = vrot.slane %v2244_v14, %v6607_v24  ;;  %v2293_v58 = vrot.slane %v2244_v14, %v8231_v36 }
 0x594   :  { %v2317_v37 = vrot.slane %v2244_v14, %v6955_v27  ;;  %v2227_v63 = vadd.f32 %v2223_v30, %v2217_v15  ;;  %v2253_v41 = vrot.slane %v2245_v16, %v8230_v18  ;;  %v2273_v7 = vrot.slane %v2245_v16, %v6607_v24 }
 0x595   :  { %v2231_v50 = vrot.slane %v2226_v17, %v8230_v18  ;;  %v2254_v55 = vmul.f32 %v2249_v28, %v8232_v21  ;;  %v2259_v57 = vrot.slane %v2226_v17, %v6607_v24  ;;  %v2274_v48 = vmul.f32 %v2269_v35, %v8233_v6 }
 0x596   :  { %v2283_v40 = vrot.slane %v2226_v17, %v8231_v36  ;;  %v2298_v38 = vmul.f32 %v2293_v58, %v7154_v33  ;;  %v2307_v53 = vrot.slane %v2226_v17, %v6955_v27  ;;  %v2322_v8 = vmul.f32 %v2317_v37, %v7179_v25 }
 0x597   :  { %v2236_v1 = vmul.f32 %v2231_v50, %v8232_v21  ;;  %v2264_v49 = vmul.f32 %v2259_v57, %v8233_v6  ;;  %v2278_v42 = vadd.f32 %v2274_v48, %v2254_v55  ;;  %v2235_v2 = vrot.slane %v2227_v63, %v8230_v18  ;;  %v5402_v57 = vld [vmem:[%s8062_s3 + $0x8] sm:$0xff] }
 0x598   :  { %v2288_v26 = vmul.f32 %v2283_v40, %v7154_v33  ;;  %v2312_v19 = vmul.f32 %v2307_v53, %v7179_v25  ;;  %v2255_v59 = vmul.f32 %v2253_v41, %v8232_v21  ;;  %v2263_v32 = vrot.slane %v2227_v63, %v6607_v24 }
 0x599   :  { %v2276_v51 = vadd.f32 %v2264_v49, %v2236_v1  ;;  %v2302_v56 = vadd.f32 %v2298_v38, %v2278_v42  ;;  %v2237_v44 = vmul.f32 %v2235_v2, %v8232_v21  ;;  %v2275_v20 = vmul.f32 %v2273_v7, %v8233_v6 }
 0x59a   :  { %v2265_v54 = vmul.f32 %v2263_v32, %v8233_v6  ;;  %v2287_v61 = vrot.slane %v2227_v63, %v8231_v36  ;;  %v2297_v3 = vrot.slane %v2245_v16, %v8231_v36  ;;  %v2311_v10 = vrot.slane %v2227_v63, %v6955_v27 }
 0x59b   :  { %v2300_v47 = vadd.f32 %v2288_v26, %v2276_v51  ;;  %v2326_v11 = vadd.f32 %v2322_v8, %v2302_v56  ;;  %v2279_v60 = vadd.f32 %v2275_v20, %v2255_v59  ;;  %v2321_v62 = vrot.slane %v2245_v16, %v6955_v27 }
 0x59c   :  { %v2277_v12 = vadd.f32 %v2265_v54, %v2237_v44  ;;  %v2289_v9 = vmul.f32 %v2287_v61, %v7154_v33  ;;  %v2299_v13 = vmul.f32 %v2297_v3, %v7154_v33  ;;  %v2313_v30 = vmul.f32 %v2311_v10, %v7179_v25 }
 0x59d   :  { %v2343_v52 = vadd.f32 %v2326_v11, %v7193_v39  ;;  %v2324_v14 = vadd.f32 %v2312_v19, %v2300_v47  ;;  %v2323_v17 = vmul.f32 %v2321_v62, %v7179_v25  ;;  %v2330_v58 = vstv %s7331_s24 }
 0x59e   :  { %v2301_v29 = vadd.f32 %v2289_v9, %v2277_v12  ;;  %v2303_v15 = vadd.f32 %v2299_v13, %v2279_v60  ;;  %v2340_v48 = vstv %s5336_s25  ;;  %v2389_v32 = vstv %s5404_s26  ;;  %s5407_s26 = sld [smem:[#allocation3 + $0xb]] }
 0x59f   :  { %v2345_v28 = vand.u32 2147483647, %v2343_v52  ;;  %v2328_v35 = vadd.f32 %v2324_v14, %v6988_v31  ;;  %v2341_v42 = vmul.f32 %v5402_v57, %v2340_v48  ;;  %v2361_v3 = vstv %s5337_s29  ;;  %v7372_v14 = vld [vmem:[%s8064_s5] ss:$8 sps:$4 sm:$0xff]   ;;  %v7461_v57 = vld [vmem:[%s8064_s5 + $0x70] ss:$8 sps:$4 sm:$0xff]  }
 0x5a0   :  { %v2327_v16 = vadd.f32 %v2323_v17, %v2303_v15  ;;  %v2325_v37 = vadd.f32 %v2313_v30, %v2301_v29  ;;  %v7377_v29 = vld [vmem:[%s8064_s5 + $0x4] ss:$8 sps:$4 sm:$0xff]   ;;  %v7382_v15 = vld [vmem:[%s8064_s5 + $0x14] ss:$8 sps:$4 sm:$0xff]   ;;  %v7389_v30 = vld [vmem:[%s8064_s5 + $0x10] ss:$8 sps:$4 sm:$0xff]  }
 0x5a1   :  { %v2347_v63 = vsel %vm1677_vm2, %v2345_v28, 0.0  ;;  %v2331_v55 = vmul.f32 %v2330_v58, %v2328_v35  ;;  %3254 = vmatprep.subr.bf16.mxu1 %v7377_v29  ;;  %v7395_v17 = vld [vmem:[%s8064_s5 + $0x24] ss:$8 sps:$4 sm:$0xff]   ;;  %v7401_v28 = vld [vmem:[%s8064_s5 + $0x20] ss:$8 sps:$4 sm:$0xff]   ;;  %s7777_s29 = sld [smem:[#allocation3 + $0xd]] }
 0x5a2   :  { %v2348_v41 = vrot.slane %v2347_v63, 4  ;;  %v2344_v7 = vadd.f32 %v2327_v16, %v7197_v4  ;;  %v2329_v50 = vadd.f32 %v2325_v37, %v6990_v46  ;;  %v7407_v35 = vld [vmem:[%s8064_s5 + $0x34] ss:$8 sps:$4 sm:$0xff]   ;;  %v7419_v16 = vld [vmem:[%s8064_s5 + $0x44] ss:$8 sps:$4 sm:$0xff]  }
 0x5a3   :  { %v7425_v37 = vld [vmem:[%s8064_s5 + $0x40] ss:$8 sps:$4 sm:$0xff]  }
 0x5a4   :  { %v2349_v40 = vadd.f32 %v2348_v41, %v2347_v63  ;;  %v2346_v38 = vand.u32 2147483647, %v2344_v7  ;;  %v2332_v53 = vmul.f32 %v2330_v58, %v2329_v50  ;;  %v7413_v58 = vld [vmem:[%s8064_s5 + $0x30] ss:$8 sps:$4 sm:$0xff]   ;;  %v7431_v63 = vld [vmem:[%s8064_s5 + $0x54] ss:$8 sps:$4 sm:$0xff]  }
 0x5a5   :  { %v7437_v41 = vld [vmem:[%s8064_s5 + $0x50] ss:$8 sps:$4 sm:$0xff]   ;;  %v7443_v7 = vld [vmem:[%s8064_s5 + $0x64] ss:$8 sps:$4 sm:$0xff]   ;;  %v7449_v50 = vld [vmem:[%s8064_s5 + $0x60] ss:$8 sps:$4 sm:$0xff]  }
 0x5a6   :  { %v2350_v8 = vrot.slane %v2349_v40, 2  ;;  %v2354_v1 = vsel %vm1677_vm2, %v2346_v38, 0.0  ;;  %v2335_v49 = vcombine.low %v2331_v55, %v2332_v53  ;;  %v7455_v55 = vld [vmem:[%s8064_s5 + $0x74] ss:$8 sps:$4 sm:$0xff]  }
 0x5a7   :  { %v2355_v2 = vrot.slane %v2354_v1, 4 }
 0x5a8   :  { %v2351_v26 = vadd.f32 %v2350_v8, %v2349_v40  ;;  %v2337_v19 = vadd.f32 %v2335_v49, %v7211_v5 }
 0x5a9   :  { %v2356_v59 = vadd.f32 %v2355_v2, %v2354_v1 }
 0x5aa   :  { %v2352_v51 = vrot.slane %v2351_v26, 1  ;;  %v7359_v56 = vadd.f32 %v2341_v42, %v2337_v19 }
 0x5ab   :  { %v2357_v44 = vrot.slane %v2356_v59, 2 }
 0x5ac   :  { %v2390_v20 = vmul.f32 %v2389_v32, %v7359_v56  ;;  %v2353_v54 = vadd.f32 %v2352_v51, %v2351_v26 }
 0x5ad   :  { %v2358_v61 = vadd.f32 %v2357_v44, %v2356_v59 }
 0x5ae   :  { %v2392_v10 = vcombine.high %v2390_v20, %v2390_v20  ;;  %v2362_v60 = vmul.f32 %v2361_v3, %v2353_v54  ;;  %v2394_v12 = vpack.c.bf16 %v2390_v20, %v2390_v20  ;;  %v7472_v54 = vld [vmem:[%s8064_s5 + $0x84] ss:$8 sps:$4 sm:$0xff]  }
 0x5af   :  { %v2359_v47 = vrot.slane %v2358_v61, 1 }
 0x5b0   :  { %v2395_v11 = vpack.c.bf16 %v2392_v10, %v2392_v10  ;;  %v7489_v10 = vld [vmem:[%s8064_s5 + $0x90] ss:$8 sps:$4 sm:$0xff]  }
 0x5b1   :  { %v2360_v62 = vadd.f32 %v2359_v47, %v2358_v61  ;;  %v7477_v61 = vld [vmem:[%s8064_s5 + $0x80] ss:$8 sps:$4 sm:$0xff]   ;;  %v7496_v47 = vld [vmem:[%s8064_s5 + $0xa4] ss:$8 sps:$4 sm:$0xff]  }
 0x5b2   :  { %2620 = vmatprep.mubr.bf16.mxu1 %v2395_v11  ;;  %v7501_v11 = vld [vmem:[%s8064_s5 + $0xa0] ss:$8 sps:$4 sm:$0xff]  }
 0x5b3   :  { %v2363_v9 = vmul.f32 %v2361_v3, %v2360_v62  ;;  %2621 = vmatmul.mubr.bf16.vlgmr.msra.gmra.mrb[16].mxu1 %v2394_v12  ;;  %v7484_v3 = vld [vmem:[%s8064_s5 + $0x94] ss:$8 sps:$4 sm:$0xff]   ;;  %v7513_v62 = vld [vmem:[%s8064_s5 + $0xb0] ss:$8 sps:$4 sm:$0xff]   ;;  %v7520_v12 = vld [vmem:[%s8064_s5 + $0xc4] ss:$8 sps:$4 sm:$0xff]  }
 0x5b4   :  { %3255 = vmatpush1.bf16.msra.mxu1 %v7372_v14 }
 0x5b5   :  { %v2366_v5 = vcombine.low %v2362_v60, %v2363_v9  ;;  %3256 = vmatprep.subr.bf16.mxu1 %v7382_v15  ;;  %v7508_v60 = vld [vmem:[%s8064_s5 + $0xb4] ss:$8 sps:$4 sm:$0xff]   ;;  %v7525_v9 = vld [vmem:[%s8064_s5 + $0xc0] ss:$8 sps:$4 sm:$0xff]  }
 0x5b7   :  { %v2373_v13 = vrot.slane %v2366_v5, %v7215_v34  ;;  %v7532_v5 = vld [vmem:[%s8064_s5 + $0xd4] ss:$8 sps:$4 sm:$0xff]  }
 0x5b8   :  { %3257 = vmatpush1.bf16.msra.mxu1 %v7389_v30 }
 0x5b9   :  { %v2380_v52 = vrot.slane %v2373_v13, %v7215_v34  ;;  %3258 = vmatprep.subr.bf16.mxu1 %v7395_v17  ;;  %v7537_v13 = vld [vmem:[%s8064_s5 + $0xd0] ss:$8 sps:$4 sm:$0xff]  }
 0x5ba   :  { %8234 = vst [vmem:[#allocation20_spill] sm:$0xff] %v7537_v13 }
 0x5bb   :  { %5403 = vst.msk [vmem:[%s8075_s16 + $0x1] ss:$8 sm:$0x3] %vm7222_vm3, %v2380_v52  ;;  %v7544_v52 = vld [vmem:[%s8064_s5 + $0xe4] ss:$8 sps:$4 sm:$0xff]  }
 0x5bc   :  { %3259 = vmatpush1.bf16.msra.mxu1 %v7401_v28  ;;  %8235 = vst [vmem:[#allocation21_spill] sm:$0xff] %v7544_v52 }
 0x5bd   :  { %3260 = vmatprep.subr.bf16.mxu1 %v7407_v35 }
 0x5c0   :  { %3261 = vmatpush1.bf16.msra.mxu1 %v7413_v58 }
 0x5c1   :  { %3262 = vmatprep.subr.bf16.mxu1 %v7419_v16 }
 0x5c4   :  { %3263 = vmatpush1.bf16.msra.mxu1 %v7425_v37 }
 0x5c5   :  { %3264 = vmatprep.subr.bf16.mxu1 %v7431_v63 }
 0x5c8   :  { %3265 = vmatpush1.bf16.msra.mxu1 %v7437_v41 }
 0x5c9   :  { %3266 = vmatprep.subr.bf16.mxu1 %v7443_v7 }
 0x5cc   :  { %3267 = vmatpush1.bf16.msra.mxu1 %v7449_v50 }
 0x5cd   :  { %3268 = vmatprep.subr.bf16.mxu1 %v7455_v55 }
 0x5d0   :  { %3269 = vmatpush1.bf16.msra.mxu1 %v7461_v57 }
 0x5d1   :  { %3270 = vmatprep.subr.bf16.mxu1 %v7472_v54 }
 0x5d4   :  { %3271 = vmatpush1.bf16.msra.mxu1 %v7477_v61 }
 0x5d5   :  { %3272 = vmatprep.subr.bf16.mxu1 %v7484_v3 }
 0x5d8   :  { %3273 = vmatpush1.bf16.msra.mxu1 %v7489_v10 }
 0x5d9   :  { %3274 = vmatprep.subr.bf16.mxu1 %v7496_v47 }
 0x5dc   :  { %3275 = vmatpush1.bf16.msra.mxu1 %v7501_v11 }
 0x5dd   :  { %3276 = vmatprep.subr.bf16.mxu1 %v7508_v60 }
 0x5e0   :  { %3277 = vmatpush1.bf16.msra.mxu1 %v7513_v62 }
 0x5e1   :  { %3278 = vmatprep.subr.bf16.mxu1 %v7520_v12 }
 0x5e4   :  { %3279 = vmatpush1.bf16.msra.mxu1 %v7525_v9 }
 0x5e5   :  { %3280 = vmatprep.subr.bf16.mxu1 %v7532_v5 }
 0x5e8   :  { %3281 = vmatpush1.bf16.msra.mxu1 %v7537_v13 }
 0x5e9   :  { %3282 = vmatprep.subr.bf16.mxu1 %v7544_v52 }
 0x686   :  { %v2622_v48 = vpop.f32.mrb[16].mxu1 }
 0x687   :  { %v2629_v40 = vadd.f32 %v2622_v48, %v8209_v43  ;;  %v2633_v38 = vadd.f32 %v2622_v48, %v8210_v23  ;;  %v2624_v53 = vpop.f32.mrb[17].mxu1  ;;  %v7549_v48 = vld [vmem:[%s8064_s5 + $0xe0] ss:$8 sps:$4 sm:$0xff]  }
 0x688   :  { %v2630_v8 = vadd.f32 %v2624_v53, %v8211_v45  ;;  %v2634_v1 = vadd.f32 %v2624_v53, %v8212_v0  ;;  %v2626_v49 = vpop.f32.mrb[18].mxu1  ;;  %8236 = vst [vmem:[#allocation22_spill] sm:$0xff] %v7549_v48  ;;  %3283 = vmatpush1.bf16.msra.mxu1 %v7549_v48  ;;  %v7566_v53 = vld [vmem:[#allocation6] ss:$8 sps:$4 sm:$0xff]  }
 0x689   :  { %2631 = vst [vmem:[#allocation2] sm:$0xf] %v2629_v40  ;;  %v2637_v42 = vrot.slane %v2633_v38, 4  ;;  %v2627_v2 = vpop.f32.mrb[19].mxu1  ;;  %v7556_v40 = vld [vmem:[%s8064_s5 + $0xf4] ss:$8 sps:$4 sm:$0xff]  }
 0x68a   :  { %2632 = vst [vmem:[#allocation2 + $0x8] sm:$0xf] %v2630_v8  ;;  %v2638_v26 = vrot.slane %v2634_v1, 4  ;;  %8237 = vst [vmem:[#allocation23_spill] sm:$0xff] %v7556_v40  ;;  %v7561_v38 = vld [vmem:[%s8064_s5 + $0xf0] ss:$8 sps:$4 sm:$0xff]   ;;  %3284 = vmatprep.subr.bf16.mxu1 %v7556_v40 }
 0x68b   :  { %2641 = vst [vmem:[#allocation2] sm:$0xf0] %v2637_v42  ;;  %8238 = vst [vmem:[#allocation25_spill] sm:$0xff] %v7561_v38  ;;  %v7568_v8 = vld [vmem:[#allocation6 + $0x4] ss:$8 sps:$4 sm:$0xff]  }
 0x68c   :  { %2642 = vst [vmem:[#allocation2 + $0x8] sm:$0xf0] %v2638_v26  ;;  %3285 = vmatpush1.bf16.msra.mxu1 %v7561_v38  ;;  %8239 = vst [vmem:[#allocation24_spill] sm:$0xff] %v7566_v53  ;;  %v7570_v1 = vld [vmem:[#allocation6 + $0x14] ss:$8 sps:$4 sm:$0xff]   ;;  %3507 = vmatprep.subr.bf16.mxu0 %v7568_v8 }
 0x68d   :  { %3920 = vmatprep.subr.bf16.mxu1 %v7377_v29  ;;  %8240 = vst [vmem:[#allocation26_spill] sm:$0xff] %v7568_v8  ;;  %8241 = vst [vmem:[#allocation27_spill] sm:$0xff] %v7570_v1  ;;  %v7574_v49 = vld [vmem:[#allocation6 + $0x10] ss:$8 sps:$4 sm:$0xff]   ;;  %v7577_v42 = vld [vmem:[#allocation6 + $0x24] ss:$8 sps:$4 sm:$0xff]  }
 0x68e   :  { %8242 = vst [vmem:[#allocation28_spill] sm:$0xff] %v7574_v49  ;;  %8243 = vst [vmem:[#allocation29_spill] sm:$0xff] %v7577_v42  ;;  %v7580_v2 = vld [vmem:[#allocation6 + $0x20] ss:$8 sps:$4 sm:$0xff]   ;;  %v7583_v29 = vld [vmem:[#allocation6 + $0x34] ss:$8 sps:$4 sm:$0xff]  }
 0x68f   :  { %8244 = vst [vmem:[#allocation30_spill] sm:$0xff] %v7580_v2  ;;  %8245 = vst [vmem:[#allocation31_spill] sm:$0xff] %v7583_v29  ;;  %v7586_v26 = vld [vmem:[#allocation6 + $0x30] ss:$8 sps:$4 sm:$0xff]  }
 0x690   :  { %8246 = vst [vmem:[#allocation32_spill] sm:$0xff] %v7586_v26 }
 0x692   :  { %v2643_v19 = vld [vmem:[#allocation2] sm:$0xff] }
 0x693   :  { %v2644_v59 = vld [vmem:[#allocation2 + $0x8] sm:$0xff]  ;;  %6137 = vtanh.f32 %v2643_v19  ;;  %v7589_v19 = vld [vmem:[#allocation6 + $0x44] ss:$8 sps:$4 sm:$0xff]  }
 0x694   :  { %6139 = vtanh.f32 %v2644_v59  ;;  %8247 = vst [vmem:[#allocation33_spill] sm:$0xff] %v7589_v19  ;;  %v7592_v59 = vld [vmem:[#allocation6 + $0x40] ss:$8 sps:$4 sm:$0xff]  }
 0x695   :  { %8248 = vst [vmem:[#allocation34_spill] sm:$0xff] %v7592_v59 }
 0x69d   :  { %v6138_v32 = vpop.eup %6137 }
 0x69e   :  { %v6140_v51 = vpop.eup %6139  ;;  %v2647_v20 = vpack.c.bf16 %v6138_v32, %v6138_v32  ;;  %v7595_v32 = vld [vmem:[#allocation6 + $0x54] ss:$8 sps:$4 sm:$0xff]  }
 0x69f   :  { %v2648_v44 = vpack.c.bf16 %v6140_v51, %v6140_v51  ;;  %8249 = vst [vmem:[#allocation35_spill] sm:$0xff] %v7595_v32  ;;  %v7598_v51 = vld [vmem:[#allocation6 + $0x50] ss:$8 sps:$4 sm:$0xff]  }
 0x6a0   :  { %8250 = vst [vmem:[#allocation36_spill] sm:$0xff] %v7598_v51 }
 0x6a1   :  { %2873 = vmatprep.mubr.bf16.mxu0 %v2648_v44  ;;  %v7601_v44 = vld [vmem:[#allocation6 + $0x64] ss:$8 sps:$4 sm:$0xff]  }
 0x6a2   :  { %2874 = vmatmul.mubr.bf16.vlgmr.msra.gmra.mrb[16].mxu0 %v2647_v20  ;;  %8251 = vst [vmem:[#allocation37_spill] sm:$0xff] %v7601_v44  ;;  %v7604_v20 = vld [vmem:[#allocation6 + $0x60] ss:$8 sps:$4 sm:$0xff]  }
 0x6a3   :  { %3508 = vmatpush1.bf16.msra.mxu0 %v7566_v53  ;;  %8252 = vst [vmem:[#allocation38_spill] sm:$0xff] %v7604_v20 }
 0x6a4   :  { %3509 = vmatprep.subr.bf16.mxu0 %v7570_v1 }
 0x6a7   :  { %3510 = vmatpush1.bf16.msra.mxu0 %v7574_v49 }
 0x6a8   :  { %3511 = vmatprep.subr.bf16.mxu0 %v7577_v42 }
 0x6ab   :  { %3512 = vmatpush1.bf16.msra.mxu0 %v7580_v2 }
 0x6ac   :  { %3513 = vmatprep.subr.bf16.mxu0 %v7583_v29 }
 0x6af   :  { %3514 = vmatpush1.bf16.msra.mxu0 %v7586_v26  ;;  %v7607_v26 = vld [vmem:[#allocation6 + $0x74] ss:$8 sps:$4 sm:$0xff]  }
 0x6b0   :  { %3515 = vmatprep.subr.bf16.mxu0 %v7589_v19  ;;  %8253 = vst [vmem:[#allocation39_spill] sm:$0xff] %v7607_v26  ;;  %v7610_v19 = vld [vmem:[#allocation6 + $0x70] ss:$8 sps:$4 sm:$0xff]  }
 0x6b1   :  { %8254 = vst [vmem:[#allocation40_spill] sm:$0xff] %v7610_v19 }
 0x6b3   :  { %3516 = vmatpush1.bf16.msra.mxu0 %v7592_v59  ;;  %v7613_v59 = vld [vmem:[#allocation6 + $0x84] ss:$8 sps:$4 sm:$0xff]  }
 0x6b4   :  { %3517 = vmatprep.subr.bf16.mxu0 %v7595_v32  ;;  %8255 = vst [vmem:[#allocation41_spill] sm:$0xff] %v7613_v59  ;;  %v7616_v32 = vld [vmem:[#allocation6 + $0x80] ss:$8 sps:$4 sm:$0xff]  }
 0x6b5   :  { %8256 = vst [vmem:[#allocation13_spill] sm:$0xff] %v7616_v32 }
 0x6b7   :  { %3518 = vmatpush1.bf16.msra.mxu0 %v7598_v51 }
 0x6b8   :  { %3519 = vmatprep.subr.bf16.mxu0 %v7601_v44 }
 0x6bb   :  { %3520 = vmatpush1.bf16.msra.mxu0 %v7604_v20 }
 0x6bc   :  { %3521 = vmatprep.subr.bf16.mxu0 %v7607_v26 }
 0x6bf   :  { %3522 = vmatpush1.bf16.msra.mxu0 %v7610_v19 }
 0x6c0   :  { %3523 = vmatprep.subr.bf16.mxu0 %v7613_v59 }
 0x6c3   :  { %3524 = vmatpush1.bf16.msra.mxu0 %v7616_v32 }
 0x775   :  { %v2875_v51 = vpop.f32.mrb[16].mxu0 }
 0x776   :  { %v2884_v44 = vmul.f32 -7.0, %v2875_v51  ;;  %v2906_v29 = vrot.slane %v2875_v51, 4  ;;  %v2877_v2 = vpop.f32.mrb[17].mxu0  ;;  %v2882_v1 = vmul.f32 8.0, %v2875_v51 }
 0x777   :  { %v2885_v42 = vmul.f32 -7.0, %v2877_v2  ;;  %v2907_v20 = vrot.slane %v2877_v2, 4  ;;  %v2879_v49 = vpop.f32.mrb[18].mxu0  ;;  %v2883_v45 = vmul.f32 8.0, %v2877_v2 }
 0x778   :  { %v2888_v53 = vrot.slane %v2884_v44, 4  ;;  %v2910_v26 = vsub.f32 %v2875_v51, %v2906_v29  ;;  %v2880_v0 = vpop.f32.mrb[19].mxu0 }
 0x779   :  { %v2889_v23 = vrot.slane %v2885_v42, 4  ;;  %v2911_v19 = vsub.f32 %v2877_v2, %v2907_v20 }
 0x77a   :  { %v2892_v43 = vadd.f32 %v2888_v53, %v2882_v1  ;;  %v2915_v8 = vrot.slane %v2910_v26, %v8230_v18  ;;  %v2935_v59 = vrot.slane %v2910_v26, %v6607_v24  ;;  %v2959_v32 = vrot.slane %v2910_v26, %v8231_v36 }
 0x77b   :  { %v2983_v38 = vrot.slane %v2910_v26, %v6955_v27  ;;  %v2893_v40 = vadd.f32 %v2889_v23, %v2883_v45  ;;  %v2919_v48 = vrot.slane %v2911_v19, %v8230_v18  ;;  %v2939_v49 = vrot.slane %v2911_v19, %v6607_v24 }
 0x77c   :  { %v2897_v29 = vrot.slane %v2892_v43, %v8230_v18  ;;  %v2920_v0 = vmul.f32 %v2915_v8, %v8232_v21  ;;  %v2925_v42 = vrot.slane %v2892_v43, %v6607_v24  ;;  %v2940_v53 = vmul.f32 %v2935_v59, %v8233_v6 }
 0x77d   :  { %v2949_v1 = vrot.slane %v2892_v43, %v8231_v36  ;;  %v2964_v2 = vmul.f32 %v2959_v32, %v7154_v33  ;;  %v2973_v51 = vrot.slane %v2892_v43, %v6955_v27  ;;  %v2988_v23 = vmul.f32 %v2983_v38, %v7179_v25 }
 0x77e   :  { %v2902_v45 = vmul.f32 %v2897_v29, %v8232_v21  ;;  %v2930_v26 = vmul.f32 %v2925_v42, %v8233_v6  ;;  %v2944_v44 = vadd.f32 %v2940_v53, %v2920_v0  ;;  %v2901_v20 = vrot.slane %v2893_v40, %v8230_v18 }
 0x77f   :  { %v2954_v8 = vmul.f32 %v2949_v1, %v7154_v33  ;;  %v2978_v59 = vmul.f32 %v2973_v51, %v7179_v25  ;;  %v2921_v52 = vmul.f32 %v2919_v48, %v8232_v21  ;;  %v2929_v32 = vrot.slane %v2893_v40, %v6607_v24 }
 0x780   :  { %v2942_v43 = vadd.f32 %v2930_v26, %v2902_v45  ;;  %v2968_v13 = vadd.f32 %v2964_v2, %v2944_v44  ;;  %v2903_v38 = vmul.f32 %v2901_v20, %v8232_v21  ;;  %v2941_v29 = vmul.f32 %v2939_v49, %v8233_v6 }
 0x781   :  { %v2931_v0 = vmul.f32 %v2929_v32, %v8233_v6  ;;  %v2953_v42 = vrot.slane %v2893_v40, %v8231_v36  ;;  %v2963_v53 = vrot.slane %v2911_v19, %v8231_v36  ;;  %v2977_v1 = vrot.slane %v2893_v40, %v6955_v27 }
 0x782   :  { %v2966_v18 = vadd.f32 %v2954_v8, %v2942_v43  ;;  %v2992_v51 = vadd.f32 %v2988_v23, %v2968_v13  ;;  %v2945_v48 = vadd.f32 %v2941_v29, %v2921_v52  ;;  %v2987_v24 = vrot.slane %v2911_v19, %v6955_v27 }
 0x783   :  { %v2943_v2 = vadd.f32 %v2931_v0, %v2903_v38  ;;  %v2955_v45 = vmul.f32 %v2953_v42, %v7154_v33  ;;  %v2965_v49 = vmul.f32 %v2963_v53, %v7154_v33  ;;  %v2979_v6 = vmul.f32 %v2977_v1, %v7179_v25  ;;  %v5472_v0 = vld [vmem:[%s8062_s3 + $0x10] sm:$0xff] }
 0x784   :  { %v3009_v26 = vadd.f32 %v2992_v51, %v7193_v39  ;;  %v2990_v44 = vadd.f32 %v2978_v59, %v2966_v18  ;;  %v2989_v40 = vmul.f32 %v2987_v24, %v7179_v25  ;;  %v2996_v52 = vstv %s7637_s12 }
 0x785   :  { %v2967_v20 = vadd.f32 %v2955_v45, %v2943_v2  ;;  %v2969_v32 = vadd.f32 %v2965_v49, %v2945_v48  ;;  %v3006_v24 = vstv %s5406_s23 }
 0x786   :  { %v3011_v8 = vand.u32 2147483647, %v3009_v26  ;;  %v2994_v13 = vadd.f32 %v2990_v44, %v6988_v31  ;;  %v3007_v2 = vmul.f32 %v5472_v0, %v3006_v24 }
 0x787   :  { %v2993_v19 = vadd.f32 %v2989_v40, %v2969_v32  ;;  %v2991_v23 = vadd.f32 %v2979_v6, %v2967_v20  ;;  %v3055_v20 = vstv %s5474_s6 }
 0x788   :  { %v3013_v43 = vsel %vm1677_vm2, %v3011_v8, 0.0  ;;  %v2997_v59 = vmul.f32 %v2996_v52, %v2994_v13 }
 0x789   :  { %v3014_v38 = vrot.slane %v3013_v43, 4  ;;  %v3010_v29 = vadd.f32 %v2993_v19, %v7197_v4  ;;  %v2995_v18 = vadd.f32 %v2991_v23, %v6990_v46  ;;  %v3027_v23 = vstv %s5407_s26  ;;  %s5546_s26 = sld [smem:[#allocation3 + $0x12]] }
 0x78b   :  { %v3015_v42 = vadd.f32 %v3014_v38, %v3013_v43  ;;  %v3012_v53 = vand.u32 2147483647, %v3010_v29  ;;  %v2998_v1 = vmul.f32 %v2996_v52, %v2995_v18 }
 0x78d   :  { %v3016_v51 = vrot.slane %v3015_v42, 2  ;;  %v3020_v6 = vsel %vm1677_vm2, %v3012_v53, 0.0  ;;  %v3001_v48 = vcombine.low %v2997_v59, %v2998_v1  ;;  %v8265_v1 = vld [vmem:[#allocation17_spill] sm:$0xff] }
 0x78e   :  { %v3021_v45 = vrot.slane %v3020_v6, 4 }
 0x78f   :  { %v3017_v49 = vadd.f32 %v3016_v51, %v3015_v42  ;;  %v3003_v26 = vadd.f32 %v3001_v48, %v7359_v56 }
 0x790   :  { %v3022_v44 = vadd.f32 %v3021_v45, %v3020_v6  ;;  %v8266_v6 = vld [vmem:[#allocation18_spill] sm:$0xff] }
 0x791   :  { %v3018_v32 = vrot.slane %v3017_v49, 1  ;;  %v7665_v40 = vadd.f32 %v3007_v2, %v3003_v26 }
 0x792   :  { %v3023_v8 = vrot.slane %v3022_v44, 2 }
 0x793   :  { %v3056_v13 = vmul.f32 %v3055_v20, %v7665_v40  ;;  %v3019_v19 = vadd.f32 %v3018_v32, %v3017_v49 }
 0x794   :  { %v3024_v52 = vadd.f32 %v3023_v8, %v3022_v44 }
 0x795   :  { %v3058_v43 = vcombine.high %v3056_v13, %v3056_v13  ;;  %v3028_v18 = vmul.f32 %v3027_v23, %v3019_v19  ;;  %v3060_v0 = vpack.c.bf16 %v3056_v13, %v3056_v13 }
 0x796   :  { %v3025_v38 = vrot.slane %v3024_v52, 1 }
 0x797   :  { %v3061_v29 = vpack.c.bf16 %v3058_v43, %v3058_v43  ;;  %v8269_v43 = vld [vmem:[#allocation28_spill] sm:$0xff] }
 0x798   :  { %v3026_v59 = vadd.f32 %v3025_v38, %v3024_v52  ;;  %v8267_v52 = vld [vmem:[#allocation24_spill] sm:$0xff]  ;;  %v8270_v38 = vld [vmem:[#allocation29_spill] sm:$0xff] }
 0x799   :  { %3286 = vmatprep.mubr.bf16.mxu1 %v3061_v29  ;;  %v8271_v29 = vld [vmem:[#allocation30_spill] sm:$0xff] }
 0x79a   :  { %v3029_v24 = vmul.f32 %v3027_v23, %v3026_v59  ;;  %3287 = vmatmul.mubr.bf16.vlgmr.msra.gmra.mrb[20].mxu1 %v3060_v0  ;;  %v8268_v23 = vld [vmem:[#allocation27_spill] sm:$0xff]  ;;  %v8273_v59 = vld [vmem:[#allocation32_spill] sm:$0xff]  ;;  %v8274_v0 = vld [vmem:[#allocation33_spill] sm:$0xff] }
 0x79b   :  { %3921 = vmatpush1.bf16.msra.mxu1 %v7372_v14  ;;  %v8257_v14 = vld [vmem:[#allocation20_spill] sm:$0xff] }
 0x79c   :  { %v3032_v56 = vcombine.low %v3028_v18, %v3029_v24  ;;  %3922 = vmatprep.subr.bf16.mxu1 %v7382_v15  ;;  %v8258_v15 = vld [vmem:[#allocation21_spill] sm:$0xff]  ;;  %v8272_v18 = vld [vmem:[#allocation31_spill] sm:$0xff]  ;;  %v8275_v24 = vld [vmem:[#allocation34_spill] sm:$0xff] }
 0x79e   :  { %v3039_v42 = vrot.slane %v3032_v56, %v7215_v34  ;;  %v8276_v56 = vld [vmem:[#allocation35_spill] sm:$0xff] }
 0x79f   :  { %3923 = vmatpush1.bf16.msra.mxu1 %v7389_v30  ;;  %v8259_v30 = vld [vmem:[#allocation22_spill] sm:$0xff] }
 0x7a0   :  { %v3046_v53 = vrot.slane %v3039_v42, %v7215_v34  ;;  %3924 = vmatprep.subr.bf16.mxu1 %v7395_v17  ;;  %v8260_v17 = vld [vmem:[#allocation23_spill] sm:$0xff]  ;;  %v8277_v42 = vld [vmem:[#allocation36_spill] sm:$0xff] }
 0x7a2   :  { %5473 = vst.msk [vmem:[%s8075_s16 + $0x2] ss:$8 sm:$0x3] %vm7222_vm3, %v3046_v53  ;;  %v8278_v53 = vld [vmem:[#allocation37_spill] sm:$0xff] }
 0x7a3   :  { %3925 = vmatpush1.bf16.msra.mxu1 %v7401_v28  ;;  %v8261_v28 = vld [vmem:[#allocation25_spill] sm:$0xff] }
 0x7a4   :  { %3926 = vmatprep.subr.bf16.mxu1 %v7407_v35  ;;  %v7706_v35 = vld [vmem:[#allocation6 + $0x94] ss:$8 sps:$4 sm:$0xff]  }
 0x7a5   :  { %3525 = vmatprep.subr.bf16.mxu0 %v7706_v35 }
 0x7a7   :  { %3927 = vmatpush1.bf16.msra.mxu1 %v7413_v58  ;;  %v7708_v58 = vld [vmem:[#allocation6 + $0x90] ss:$8 sps:$4 sm:$0xff]  }
 0x7a8   :  { %3928 = vmatprep.subr.bf16.mxu1 %v7419_v16  ;;  %3526 = vmatpush1.bf16.msra.mxu0 %v7708_v58  ;;  %v7712_v16 = vld [vmem:[#allocation6 + $0xa0] ss:$8 sps:$4 sm:$0xff]  }
 0x7ab   :  { %3929 = vmatpush1.bf16.msra.mxu1 %v7425_v37  ;;  %v7714_v37 = vld [vmem:[#allocation6 + $0xa4] ss:$8 sps:$4 sm:$0xff]  }
 0x7ac   :  { %3930 = vmatprep.subr.bf16.mxu1 %v7431_v63  ;;  %v7716_v63 = vld [vmem:[#allocation6 + $0xb4] ss:$8 sps:$4 sm:$0xff]   ;;  %3527 = vmatprep.subr.bf16.mxu0 %v7714_v37 }
 0x7ad   :  { %3528 = vmatpush1.bf16.msra.mxu0 %v7712_v16 }
 0x7ae   :  { %3529 = vmatprep.subr.bf16.mxu0 %v7716_v63 }
 0x7af   :  { %3931 = vmatpush1.bf16.msra.mxu1 %v7437_v41  ;;  %v7720_v41 = vld [vmem:[#allocation6 + $0xb0] ss:$8 sps:$4 sm:$0xff]  }
 0x7b0   :  { %3932 = vmatprep.subr.bf16.mxu1 %v7443_v7  ;;  %v7723_v7 = vld [vmem:[#allocation6 + $0xc4] ss:$8 sps:$4 sm:$0xff]  }
 0x7b1   :  { %3530 = vmatpush1.bf16.msra.mxu0 %v7720_v41 }
 0x7b2   :  { %3531 = vmatprep.subr.bf16.mxu0 %v7723_v7 }
 0x7b3   :  { %3933 = vmatpush1.bf16.msra.mxu1 %v7449_v50  ;;  %v7726_v50 = vld [vmem:[#allocation6 + $0xc0] ss:$8 sps:$4 sm:$0xff]  }
 0x7b4   :  { %3934 = vmatprep.subr.bf16.mxu1 %v7455_v55  ;;  %v6018_v55 = vld [vmem:[#allocation6 + $0xd4] ss:$8 sps:$4 sm:$0xff]  }
 0x7b5   :  { %3532 = vmatpush1.bf16.msra.mxu0 %v7726_v50 }
 0x7b6   :  { %3533 = vmatprep.subr.bf16.mxu0 %v6018_v55 }
 0x7b7   :  { %3935 = vmatpush1.bf16.msra.mxu1 %v7461_v57  ;;  %v6016_v57 = vld [vmem:[#allocation6 + $0xd0] ss:$8 sps:$4 sm:$0xff]  }
 0x7b8   :  { %3936 = vmatprep.subr.bf16.mxu1 %v7472_v54  ;;  %v6021_v54 = vld [vmem:[#allocation6 + $0xe4] ss:$8 sps:$4 sm:$0xff]  }
 0x7b9   :  { %3534 = vmatpush1.bf16.msra.mxu0 %v6016_v57 }
 0x7ba   :  { %3535 = vmatprep.subr.bf16.mxu0 %v6021_v54 }
 0x7bb   :  { %3937 = vmatpush1.bf16.msra.mxu1 %v7477_v61  ;;  %v6019_v61 = vld [vmem:[#allocation6 + $0xe0] ss:$8 sps:$4 sm:$0xff]  }
 0x7bc   :  { %3938 = vmatprep.subr.bf16.mxu1 %v7484_v3  ;;  %v6024_v3 = vld [vmem:[#allocation6 + $0xf4] ss:$8 sps:$4 sm:$0xff]  }
 0x7bd   :  { %3536 = vmatpush1.bf16.msra.mxu0 %v6019_v61 }
 0x7be   :  { %3537 = vmatprep.subr.bf16.mxu0 %v6024_v3 }
 0x7bf   :  { %3939 = vmatpush1.bf16.msra.mxu1 %v7489_v10  ;;  %v6022_v10 = vld [vmem:[#allocation6 + $0xf0] ss:$8 sps:$4 sm:$0xff]  }
 0x7c0   :  { %3940 = vmatprep.subr.bf16.mxu1 %v7496_v47  ;;  %v8262_v47 = vld [vmem:[#allocation26_spill] sm:$0xff] }
 0x7c1   :  { %3538 = vmatpush1.bf16.msra.mxu0 %v6022_v10 }
 0x7c2   :  { %4173 = vmatprep.subr.bf16.mxu0 %v8262_v47 }
 0x7c3   :  { %3941 = vmatpush1.bf16.msra.mxu1 %v7501_v11 }
 0x7c4   :  { %3942 = vmatprep.subr.bf16.mxu1 %v7508_v60  ;;  %v8263_v60 = vld [vmem:[#allocation15_spill] sm:$0xff] }
 0x7c7   :  { %3943 = vmatpush1.bf16.msra.mxu1 %v7513_v62 }
 0x7c8   :  { %3944 = vmatprep.subr.bf16.mxu1 %v7520_v12  ;;  %v8264_v12 = vld [vmem:[#allocation16_spill] sm:$0xff] }
 0x7cb   :  { %3945 = vmatpush1.bf16.msra.mxu1 %v7525_v9 }
 0x7cc   :  { %3946 = vmatprep.subr.bf16.mxu1 %v7532_v5 }
 0x7cf   :  { %3947 = vmatpush1.bf16.msra.mxu1 %v8257_v14  ;;  %v8279_v14 = vld [vmem:[#allocation38_spill] sm:$0xff] }
 0x7d0   :  { %3948 = vmatprep.subr.bf16.mxu1 %v8258_v15  ;;  %v8280_v15 = vld [vmem:[#allocation39_spill] sm:$0xff] }
 0x7d3   :  { %3949 = vmatpush1.bf16.msra.mxu1 %v8259_v30  ;;  %v8281_v30 = vld [vmem:[#allocation40_spill] sm:$0xff] }
 0x7d4   :  { %3950 = vmatprep.subr.bf16.mxu1 %v8260_v17  ;;  %v8282_v17 = vld [vmem:[#allocation41_spill] sm:$0xff] }
 0x7d7   :  { %3951 = vmatpush1.bf16.msra.mxu1 %v8261_v28  ;;  %v8283_v28 = vld [vmem:[#allocation13_spill] sm:$0xff] }
 0x86d   :  { %v3288_v11 = vpop.f32.mrb[20].mxu1 }
 0x86e   :  { %v3295_v62 = vadd.f32 %v3288_v11, %v8263_v60  ;;  %v3299_v9 = vadd.f32 %v3288_v11, %v8264_v12  ;;  %v3290_v5 = vpop.f32.mrb[21].mxu1 }
 0x86f   :  { %v3296_v51 = vadd.f32 %v3290_v5, %v8265_v1  ;;  %v3300_v48 = vadd.f32 %v3290_v5, %v8266_v6  ;;  %v3292_v2 = vpop.f32.mrb[22].mxu1 }
 0x870   :  { %3297 = vst [vmem:[#allocation2] sm:$0xf] %v3295_v62  ;;  %v3303_v45 = vrot.slane %v3299_v9, 4  ;;  %v3293_v49 = vpop.f32.mrb[23].mxu1 }
 0x871   :  { %3298 = vst [vmem:[#allocation2 + $0x8] sm:$0xf] %v3296_v51  ;;  %v3304_v26 = vrot.slane %v3300_v48, 4 }
 0x872   :  { %3307 = vst [vmem:[#allocation2] sm:$0xf0] %v3303_v45 }
 0x873   :  { %3308 = vst [vmem:[#allocation2 + $0x8] sm:$0xf0] %v3304_v26 }
 0x879   :  { %v3309_v44 = vld [vmem:[#allocation2] sm:$0xff] }
 0x87a   :  { %v3310_v20 = vld [vmem:[#allocation2 + $0x8] sm:$0xff]  ;;  %6141 = vtanh.f32 %v3309_v44 }
 0x87b   :  { %6143 = vtanh.f32 %v3310_v20 }
 0x884   :  { %v6142_v32 = vpop.eup %6141 }
 0x885   :  { %v6144_v8 = vpop.eup %6143  ;;  %v3313_v19 = vpack.c.bf16 %v6142_v32, %v6142_v32  ;;  %v8286_v32 = vld [vmem:[#allocation43_spill] sm:$0xff] }
 0x886   :  { %v3314_v13 = vpack.c.bf16 %v6144_v8, %v6144_v8 }
 0x888   :  { %3539 = vmatprep.mubr.bf16.mxu0 %v3314_v13 }
 0x889   :  { %3540 = vmatmul.mubr.bf16.vlgmr.msra.gmra.mrb[20].mxu0 %v3313_v19 }
 0x88a   :  { %4174 = vmatpush1.bf16.msra.mxu0 %v8267_v52 }
 0x88b   :  { %4175 = vmatprep.subr.bf16.mxu0 %v8268_v23 }
 0x88e   :  { %4176 = vmatpush1.bf16.msra.mxu0 %v8269_v43 }
 0x88f   :  { %4177 = vmatprep.subr.bf16.mxu0 %v8270_v38 }
 0x892   :  { %4178 = vmatpush1.bf16.msra.mxu0 %v8271_v29 }
 0x893   :  { %4179 = vmatprep.subr.bf16.mxu0 %v8272_v18 }
 0x896   :  { %4180 = vmatpush1.bf16.msra.mxu0 %v8273_v59 }
 0x897   :  { %4181 = vmatprep.subr.bf16.mxu0 %v8274_v0 }
 0x89a   :  { %4182 = vmatpush1.bf16.msra.mxu0 %v8275_v24 }
 0x89b   :  { %4183 = vmatprep.subr.bf16.mxu0 %v8276_v56 }
 0x89e   :  { %4184 = vmatpush1.bf16.msra.mxu0 %v8277_v42 }
 0x89f   :  { %4185 = vmatprep.subr.bf16.mxu0 %v8278_v53 }
 0x8a2   :  { %4186 = vmatpush1.bf16.msra.mxu0 %v8279_v14 }
 0x8a3   :  { %4187 = vmatprep.subr.bf16.mxu0 %v8280_v15 }
 0x8a6   :  { %4188 = vmatpush1.bf16.msra.mxu0 %v8281_v30 }
 0x8a7   :  { %4189 = vmatprep.subr.bf16.mxu0 %v8282_v17 }
 0x8aa   :  { %4190 = vmatpush1.bf16.msra.mxu0 %v8283_v28 }
 0x8ab   :  { %4191 = vmatprep.subr.bf16.mxu0 %v7706_v35 }
 0x8ae   :  { %4192 = vmatpush1.bf16.msra.mxu0 %v7708_v58 }
 0x8af   :  { %4193 = vmatprep.subr.bf16.mxu0 %v7714_v37 }
 0x8b2   :  { %4194 = vmatpush1.bf16.msra.mxu0 %v7712_v16 }
 0x8b3   :  { %4195 = vmatprep.subr.bf16.mxu0 %v7716_v63 }
 0x8b6   :  { %4196 = vmatpush1.bf16.msra.mxu0 %v7720_v41 }
 0x8b7   :  { %4197 = vmatprep.subr.bf16.mxu0 %v7723_v7 }
 0x8ba   :  { %4198 = vmatpush1.bf16.msra.mxu0 %v7726_v50 }
 0x8bb   :  { %4199 = vmatprep.subr.bf16.mxu0 %v6018_v55 }
 0x8be   :  { %4200 = vmatpush1.bf16.msra.mxu0 %v6016_v57  ;;  %v8284_v57 = vld [vmem:[#allocation9_spill] sm:$0xff] }
 0x8bf   :  { %4201 = vmatprep.subr.bf16.mxu0 %v6021_v54 }
 0x8c2   :  { %4202 = vmatpush1.bf16.msra.mxu0 %v6019_v61  ;;  %v8285_v61 = vld [vmem:[#allocation11_spill] sm:$0xff] }
 0x8c3   :  { %4203 = vmatprep.subr.bf16.mxu0 %v6024_v3 }
 0x8c6   :  { %4204 = vmatpush1.bf16.msra.mxu0 %v6022_v10 }
 0x95c   :  { %v3541_v35 = vpop.f32.mrb[20].mxu0 }
 0x95d   :  { %v3550_v58 = vmul.f32 -7.0, %v3541_v35  ;;  %v3572_v47 = vrot.slane %v3541_v35, 4  ;;  %v3543_v37 = vpop.f32.mrb[21].mxu0  ;;  %v3548_v63 = vmul.f32 8.0, %v3541_v35 }
 0x95e   :  { %v3551_v11 = vmul.f32 -7.0, %v3543_v37  ;;  %v3573_v16 = vrot.slane %v3543_v37, 4  ;;  %v3545_v62 = vpop.f32.mrb[22].mxu0  ;;  %v3549_v7 = vmul.f32 8.0, %v3543_v37 }
 0x95f   :  { %v3554_v9 = vrot.slane %v3550_v58, 4  ;;  %v3576_v41 = vsub.f32 %v3541_v35, %v3572_v47  ;;  %v3546_v5 = vpop.f32.mrb[23].mxu0 }
 0x960   :  { %v3555_v51 = vrot.slane %v3551_v11, 4  ;;  %v3577_v50 = vsub.f32 %v3543_v37, %v3573_v16 }
 0x961   :  { %v3558_v55 = vadd.f32 %v3554_v9, %v3548_v63  ;;  %v3581_v54 = vrot.slane %v3576_v41, %v8284_v57  ;;  %v3601_v3 = vrot.slane %v3576_v41, %v8285_v61  ;;  %v3625_v10 = vrot.slane %v3576_v41, %v8231_v36 }
 0x962   :  { %v3649_v48 = vrot.slane %v3576_v41, %v6955_v27  ;;  %v3559_v2 = vadd.f32 %v3555_v51, %v3549_v7  ;;  %v3585_v45 = vrot.slane %v3577_v50, %v8284_v57  ;;  %v3605_v49 = vrot.slane %v3577_v50, %v8285_v61 }
 0x963   :  { %v3563_v26 = vrot.slane %v3558_v55, %v8284_v57  ;;  %v3586_v44 = vmul.f32 %v3581_v54, %v8232_v21  ;;  %v3591_v20 = vrot.slane %v3558_v55, %v8285_v61  ;;  %v3606_v8 = vmul.f32 %v3601_v3, %v8286_v32 }
 0x964   :  { %v3615_v13 = vrot.slane %v3558_v55, %v8231_v36  ;;  %v3630_v19 = vmul.f32 %v3625_v10, %v7154_v33  ;;  %v3639_v52 = vrot.slane %v3558_v55, %v6955_v27  ;;  %v3654_v23 = vmul.f32 %v3649_v48, %v7179_v25 }
 0x965   :  { %v3568_v43 = vmul.f32 %v3563_v26, %v8232_v21  ;;  %v3596_v38 = vmul.f32 %v3591_v20, %v8286_v32  ;;  %v3610_v29 = vadd.f32 %v3606_v8, %v3586_v44  ;;  %v3567_v18 = vrot.slane %v3559_v2, %v8284_v57  ;;  %v5542_v20 = vld [vmem:[%s8062_s3 + $0x18] sm:$0xff] }
 0x966   :  { %v3620_v59 = vmul.f32 %v3615_v13, %v7154_v33  ;;  %v3644_v0 = vmul.f32 %v3639_v52, %v7179_v25  ;;  %v3587_v24 = vmul.f32 %v3585_v45, %v8232_v21  ;;  %v3595_v56 = vrot.slane %v3559_v2, %v8285_v61 }
 0x967   :  { %v3608_v42 = vadd.f32 %v3596_v38, %v3568_v43  ;;  %v3634_v53 = vadd.f32 %v3630_v19, %v3610_v29  ;;  %v3569_v14 = vmul.f32 %v3567_v18, %v8232_v21  ;;  %v3607_v15 = vmul.f32 %v3605_v49, %v8286_v32 }
 0x968   :  { %v3597_v30 = vmul.f32 %v3595_v56, %v8286_v32  ;;  %v3619_v17 = vrot.slane %v3559_v2, %v8231_v36  ;;  %v3629_v28 = vrot.slane %v3577_v50, %v8231_v36  ;;  %v3643_v35 = vrot.slane %v3559_v2, %v6955_v27 }
 0x969   :  { %v3632_v58 = vadd.f32 %v3620_v59, %v3608_v42  ;;  %v3658_v47 = vadd.f32 %v3654_v23, %v3634_v53  ;;  %v3611_v37 = vadd.f32 %v3607_v15, %v3587_v24  ;;  %v3653_v11 = vrot.slane %v3577_v50, %v6955_v27 }
 0x96a   :  { %v3609_v16 = vadd.f32 %v3597_v30, %v3569_v14  ;;  %v3621_v62 = vmul.f32 %v3619_v17, %v7154_v33  ;;  %v3631_v63 = vmul.f32 %v3629_v28, %v7154_v33  ;;  %v3645_v51 = vmul.f32 %v3643_v35, %v7179_v25 }
 0x96b   :  { %v3675_v9 = vadd.f32 %v3658_v47, %v7193_v39  ;;  %v3656_v41 = vadd.f32 %v3644_v0, %v3632_v58  ;;  %v3655_v55 = vmul.f32 %v3653_v11, %v7179_v25  ;;  %v3662_v10 = vstv %s7777_s29 }
 0x96c   :  { %v3633_v5 = vadd.f32 %v3621_v62, %v3609_v16  ;;  %v3635_v7 = vadd.f32 %v3631_v63, %v3611_v37  ;;  %v3672_v8 = vstv %s5476_s30  ;;  %v3721_v56 = vstv %s5544_s7  ;;  %s5547_s30 = sld [smem:[#allocation3 + $0x13]] }
 0x96d   :  { %v3677_v54 = vand.u32 2147483647, %v3675_v9  ;;  %v3660_v3 = vadd.f32 %v3656_v41, %v6988_v31  ;;  %v3673_v29 = vmul.f32 %v5542_v20, %v3672_v8  ;;  %v3693_v28 = vstv %s5477_s8  ;;  %v6025_v41 = vld [vmem:[%s8064_s5] ss:$8 sps:$4 sm:$0xff]   ;;  %v6046_v20 = vld [vmem:[%s8064_s5 + $0x70] ss:$8 sps:$4 sm:$0xff]  }
 0x96e   :  { %v3659_v50 = vadd.f32 %v3655_v55, %v3635_v7  ;;  %v3657_v48 = vadd.f32 %v3645_v51, %v3633_v5  ;;  %v6027_v5 = vld [vmem:[%s8064_s5 + $0x4] ss:$8 sps:$4 sm:$0xff]   ;;  %v6030_v7 = vld [vmem:[%s8064_s5 + $0x14] ss:$8 sps:$4 sm:$0xff]   ;;  %v6028_v51 = vld [vmem:[%s8064_s5 + $0x10] ss:$8 sps:$4 sm:$0xff]  }
 0x96f   :  { %v3679_v2 = vsel %vm1677_vm2, %v3677_v54, 0.0  ;;  %v3663_v44 = vmul.f32 %v3662_v10, %v3660_v3  ;;  %4586 = vmatprep.subr.bf16.mxu1 %v6027_v5  ;;  %v6033_v55 = vld [vmem:[%s8064_s5 + $0x24] ss:$8 sps:$4 sm:$0xff]   ;;  %v6031_v54 = vld [vmem:[%s8064_s5 + $0x20] ss:$8 sps:$4 sm:$0xff]  }
 0x970   :  { %v3680_v45 = vrot.slane %v3679_v2, 4  ;;  %v3676_v49 = vadd.f32 %v3659_v50, %v7197_v4  ;;  %v3661_v26 = vadd.f32 %v3657_v48, %v6990_v46  ;;  %v6036_v3 = vld [vmem:[%s8064_s5 + $0x34] ss:$8 sps:$4 sm:$0xff]   ;;  %v6039_v50 = vld [vmem:[%s8064_s5 + $0x44] ss:$8 sps:$4 sm:$0xff]  }
 0x971   :  { %v6037_v48 = vld [vmem:[%s8064_s5 + $0x40] ss:$8 sps:$4 sm:$0xff]   ;;  %v6072_v5 = vld [vmem:[%s8064_s5 + $0xf4] ss:$8 sps:$4 sm:$0xff]  }
 0x972   :  { %v3681_v13 = vadd.f32 %v3680_v45, %v3679_v2  ;;  %v3678_v19 = vand.u32 2147483647, %v3676_v49  ;;  %v3664_v52 = vmul.f32 %v3662_v10, %v3661_v26  ;;  %v6034_v10 = vld [vmem:[%s8064_s5 + $0x30] ss:$8 sps:$4 sm:$0xff]   ;;  %v6042_v2 = vld [vmem:[%s8064_s5 + $0x54] ss:$8 sps:$4 sm:$0xff]  }
 0x973   :  { %v6040_v45 = vld [vmem:[%s8064_s5 + $0x50] ss:$8 sps:$4 sm:$0xff]   ;;  %v6045_v49 = vld [vmem:[%s8064_s5 + $0x64] ss:$8 sps:$4 sm:$0xff]   ;;  %v6043_v26 = vld [vmem:[%s8064_s5 + $0x60] ss:$8 sps:$4 sm:$0xff]  }
 0x974   :  { %v3682_v23 = vrot.slane %v3681_v13, 2  ;;  %v3686_v43 = vsel %vm1677_vm2, %v3678_v19, 0.0  ;;  %v3667_v38 = vcombine.low %v3663_v44, %v3664_v52  ;;  %v6048_v44 = vld [vmem:[%s8064_s5 + $0x74] ss:$8 sps:$4 sm:$0xff]  }
 0x975   :  { %v3687_v18 = vrot.slane %v3686_v43, 4 }
 0x976   :  { %v3683_v59 = vadd.f32 %v3682_v23, %v3681_v13  ;;  %v3669_v0 = vadd.f32 %v3667_v38, %v7665_v40 }
 0x977   :  { %v3688_v24 = vadd.f32 %v3687_v18, %v3686_v43 }
 0x978   :  { %v3684_v42 = vrot.slane %v3683_v59, 1  ;;  %v7805_v53 = vadd.f32 %v3673_v29, %v3669_v0 }
 0x979   :  { %v3689_v14 = vrot.slane %v3688_v24, 2 }
 0x97a   :  { %v3722_v15 = vmul.f32 %v3721_v56, %v7805_v53  ;;  %v3685_v30 = vadd.f32 %v3684_v42, %v3683_v59 }
 0x97b   :  { %v3690_v17 = vadd.f32 %v3689_v14, %v3688_v24 }
 0x97c   :  { %v3724_v35 = vcombine.high %v3722_v15, %v3722_v15  ;;  %v3694_v37 = vmul.f32 %v3693_v28, %v3685_v30  ;;  %v3726_v16 = vpack.c.bf16 %v3722_v15, %v3722_v15  ;;  %v6051_v30 = vld [vmem:[%s8064_s5 + $0x84] ss:$8 sps:$4 sm:$0xff]  }
 0x97d   :  { %v3691_v58 = vrot.slane %v3690_v17, 1 }
 0x97e   :  { %v3727_v47 = vpack.c.bf16 %v3724_v35, %v3724_v35  ;;  %v6052_v35 = vld [vmem:[%s8064_s5 + $0x90] ss:$8 sps:$4 sm:$0xff]  }
 0x97f   :  { %v3692_v11 = vadd.f32 %v3691_v58, %v3690_v17  ;;  %v6049_v17 = vld [vmem:[%s8064_s5 + $0x80] ss:$8 sps:$4 sm:$0xff]   ;;  %v6057_v58 = vld [vmem:[%s8064_s5 + $0xa4] ss:$8 sps:$4 sm:$0xff]  }
 0x980   :  { %3952 = vmatprep.mubr.bf16.mxu1 %v3727_v47  ;;  %v6055_v47 = vld [vmem:[%s8064_s5 + $0xa0] ss:$8 sps:$4 sm:$0xff]  }
 0x981   :  { %v3695_v62 = vmul.f32 %v3693_v28, %v3692_v11  ;;  %3953 = vmatmul.mubr.bf16.vlgmr.msra.gmra.mrb[24].mxu1 %v3726_v16  ;;  %v6054_v28 = vld [vmem:[%s8064_s5 + $0x94] ss:$8 sps:$4 sm:$0xff]   ;;  %v6058_v11 = vld [vmem:[%s8064_s5 + $0xb0] ss:$8 sps:$4 sm:$0xff]   ;;  %v6063_v16 = vld [vmem:[%s8064_s5 + $0xc4] ss:$8 sps:$4 sm:$0xff]  }
 0x982   :  { %4587 = vmatpush1.bf16.msra.mxu1 %v6025_v41  ;;  %v6067_v41 = vld [vmem:[%s8064_s5 + $0xe0] ss:$8 sps:$4 sm:$0xff]  }
 0x983   :  { %v3698_v40 = vcombine.low %v3694_v37, %v3695_v62  ;;  %4588 = vmatprep.subr.bf16.mxu1 %v6030_v7  ;;  %v6060_v37 = vld [vmem:[%s8064_s5 + $0xb4] ss:$8 sps:$4 sm:$0xff]   ;;  %v6061_v62 = vld [vmem:[%s8064_s5 + $0xc0] ss:$8 sps:$4 sm:$0xff]   ;;  %v6070_v7 = vld [vmem:[%s8064_s5 + $0xf0] ss:$8 sps:$4 sm:$0xff]  }
 0x985   :  { %v3705_v63 = vrot.slane %v3698_v40, %v7215_v34  ;;  %v6066_v40 = vld [vmem:[%s8064_s5 + $0xd4] ss:$8 sps:$4 sm:$0xff]  }
 0x986   :  { %4589 = vmatpush1.bf16.msra.mxu1 %v6028_v51  ;;  %v6073_v51 = vld [vmem:[#allocation6] ss:$8 sps:$4 sm:$0xff]  }
 0x987   :  { %v3712_v9 = vrot.slane %v3705_v63, %v7215_v34  ;;  %4590 = vmatprep.subr.bf16.mxu1 %v6033_v55  ;;  %v6064_v63 = vld [vmem:[%s8064_s5 + $0xd0] ss:$8 sps:$4 sm:$0xff]   ;;  %v6075_v55 = vld [vmem:[#allocation6 + $0x4] ss:$8 sps:$4 sm:$0xff]  }
 0x988   :  { %4839 = vmatprep.subr.bf16.mxu0 %v6075_v55 }
 0x989   :  { %5543 = vst.msk [vmem:[%s8075_s16 + $0x3] ss:$8 sm:$0x3] %vm7222_vm3, %v3712_v9  ;;  %v6069_v9 = vld [vmem:[%s8064_s5 + $0xe4] ss:$8 sps:$4 sm:$0xff]   ;;  %s7932_s5 = sld [smem:[#allocation3 + $0x11]] }
 0x98a   :  { %4591 = vmatpush1.bf16.msra.mxu1 %v6031_v54  ;;  %v6078_v54 = vld [vmem:[#allocation6 + $0x14] ss:$8 sps:$4 sm:$0xff]  }
 0x98b   :  { %4592 = vmatprep.subr.bf16.mxu1 %v6036_v3  ;;  %v6076_v3 = vld [vmem:[#allocation6 + $0x10] ss:$8 sps:$4 sm:$0xff]  }
 0x98e   :  { %4593 = vmatpush1.bf16.msra.mxu1 %v6034_v10  ;;  %v6081_v10 = vld [vmem:[#allocation6 + $0x24] ss:$8 sps:$4 sm:$0xff]  }
 0x98f   :  { %4594 = vmatprep.subr.bf16.mxu1 %v6039_v50  ;;  %v6079_v50 = vld [vmem:[#allocation6 + $0x20] ss:$8 sps:$4 sm:$0xff]  }
 0x992   :  { %4595 = vmatpush1.bf16.msra.mxu1 %v6037_v48  ;;  %v6084_v48 = vld [vmem:[#allocation6 + $0x34] ss:$8 sps:$4 sm:$0xff]  }
 0x993   :  { %4596 = vmatprep.subr.bf16.mxu1 %v6042_v2  ;;  %v6082_v2 = vld [vmem:[#allocation6 + $0x30] ss:$8 sps:$4 sm:$0xff]  }
 0x996   :  { %4597 = vmatpush1.bf16.msra.mxu1 %v6040_v45  ;;  %v6087_v45 = vld [vmem:[#allocation6 + $0x44] ss:$8 sps:$4 sm:$0xff]  }
 0x997   :  { %4598 = vmatprep.subr.bf16.mxu1 %v6045_v49  ;;  %v6085_v49 = vld [vmem:[#allocation6 + $0x40] ss:$8 sps:$4 sm:$0xff]  }
 0x99a   :  { %4599 = vmatpush1.bf16.msra.mxu1 %v6043_v26  ;;  %v6090_v26 = vld [vmem:[#allocation6 + $0x54] ss:$8 sps:$4 sm:$0xff]  }
 0x99b   :  { %4600 = vmatprep.subr.bf16.mxu1 %v6048_v44  ;;  %v6088_v44 = vld [vmem:[#allocation6 + $0x50] ss:$8 sps:$4 sm:$0xff]  }
 0x99e   :  { %4601 = vmatpush1.bf16.msra.mxu1 %v6046_v20  ;;  %v6093_v20 = vld [vmem:[#allocation6 + $0x64] ss:$8 sps:$4 sm:$0xff]  }
 0x99f   :  { %4602 = vmatprep.subr.bf16.mxu1 %v6051_v30 }
 0x9a2   :  { %4603 = vmatpush1.bf16.msra.mxu1 %v6049_v17 }
 0x9a3   :  { %4604 = vmatprep.subr.bf16.mxu1 %v6054_v28 }
 0x9a6   :  { %4605 = vmatpush1.bf16.msra.mxu1 %v6052_v35 }
 0x9a7   :  { %4606 = vmatprep.subr.bf16.mxu1 %v6057_v58 }
 0x9aa   :  { %4607 = vmatpush1.bf16.msra.mxu1 %v6055_v47 }
 0x9ab   :  { %4608 = vmatprep.subr.bf16.mxu1 %v6060_v37 }
 0x9ae   :  { %4609 = vmatpush1.bf16.msra.mxu1 %v6058_v11 }
 0x9af   :  { %4610 = vmatprep.subr.bf16.mxu1 %v6063_v16 }
 0x9b2   :  { %4611 = vmatpush1.bf16.msra.mxu1 %v6061_v62 }
 0x9b3   :  { %4612 = vmatprep.subr.bf16.mxu1 %v6066_v40 }
 0x9b6   :  { %4613 = vmatpush1.bf16.msra.mxu1 %v6064_v63 }
 0x9b7   :  { %4614 = vmatprep.subr.bf16.mxu1 %v6069_v9 }
 0x9ba   :  { %4615 = vmatpush1.bf16.msra.mxu1 %v6067_v41 }
 0x9bb   :  { %4616 = vmatprep.subr.bf16.mxu1 %v6072_v5 }
 0x9be   :  { %4617 = vmatpush1.bf16.msra.mxu1 %v6070_v7 }
 0xa54   :  { %v3954_v8 = vpop.f32.mrb[24].mxu1 }
 0xa55   :  { %v3961_v13 = vadd.f32 %v3954_v8, %v8263_v60  ;;  %v3965_v19 = vadd.f32 %v3954_v8, %v8264_v12  ;;  %v3956_v52 = vpop.f32.mrb[25].mxu1  ;;  %v6091_v8 = vld [vmem:[#allocation6 + $0x60] ss:$8 sps:$4 sm:$0xff]  }
 0xa56   :  { %v3962_v23 = vadd.f32 %v3956_v52, %v8265_v1  ;;  %v3966_v43 = vadd.f32 %v3956_v52, %v8266_v6  ;;  %v3958_v38 = vpop.f32.mrb[26].mxu1  ;;  %v6099_v52 = vld [vmem:[#allocation6 + $0x84] ss:$8 sps:$4 sm:$0xff]  }
 0xa57   :  { %3963 = vst [vmem:[#allocation2] sm:$0xf] %v3961_v13  ;;  %v3969_v29 = vrot.slane %v3965_v19, 4  ;;  %v3959_v18 = vpop.f32.mrb[27].mxu1  ;;  %v6096_v13 = vld [vmem:[#allocation6 + $0x74] ss:$8 sps:$4 sm:$0xff]  }
 0xa58   :  { %3964 = vst [vmem:[#allocation2 + $0x8] sm:$0xf] %v3962_v23  ;;  %v3970_v59 = vrot.slane %v3966_v43, 4  ;;  %v6094_v19 = vld [vmem:[#allocation6 + $0x70] ss:$8 sps:$4 sm:$0xff]  }
 0xa59   :  { %3973 = vst [vmem:[#allocation2] sm:$0xf0] %v3969_v29  ;;  %v6097_v23 = vld [vmem:[#allocation6 + $0x80] ss:$8 sps:$4 sm:$0xff]  }
 0xa5a   :  { %3974 = vst [vmem:[#allocation2 + $0x8] sm:$0xf0] %v3970_v59 }
 0xa60   :  { %v3975_v0 = vld [vmem:[#allocation2] sm:$0xff] }
 0xa61   :  { %v3976_v24 = vld [vmem:[#allocation2 + $0x8] sm:$0xff]  ;;  %6145 = vtanh.f32 %v3975_v0 }
 0xa62   :  { %6147 = vtanh.f32 %v3976_v24 }
 0xa6b   :  { %v6146_v56 = vpop.eup %6145 }
 0xa6c   :  { %v6148_v42 = vpop.eup %6147  ;;  %v3979_v15 = vpack.c.bf16 %v6146_v56, %v6146_v56 }
 0xa6d   :  { %v3980_v14 = vpack.c.bf16 %v6148_v42, %v6148_v42 }
 0xa6f   :  { %4205 = vmatprep.mubr.bf16.mxu0 %v3980_v14 }
 0xa70   :  { %4206 = vmatmul.mubr.bf16.vlgmr.msra.gmra.mrb[24].mxu0 %v3979_v15 }
 0xa71   :  { %4840 = vmatpush1.bf16.msra.mxu0 %v6073_v51 }
 0xa72   :  { %4841 = vmatprep.subr.bf16.mxu0 %v6078_v54 }
 0xa75   :  { %4842 = vmatpush1.bf16.msra.mxu0 %v6076_v3 }
 0xa76   :  { %4843 = vmatprep.subr.bf16.mxu0 %v6081_v10 }
 0xa79   :  { %4844 = vmatpush1.bf16.msra.mxu0 %v6079_v50 }
 0xa7a   :  { %4845 = vmatprep.subr.bf16.mxu0 %v6084_v48 }
 0xa7d   :  { %4846 = vmatpush1.bf16.msra.mxu0 %v6082_v2 }
 0xa7e   :  { %4847 = vmatprep.subr.bf16.mxu0 %v6087_v45 }
 0xa81   :  { %4848 = vmatpush1.bf16.msra.mxu0 %v6085_v49 }
 0xa82   :  { %4849 = vmatprep.subr.bf16.mxu0 %v6090_v26 }
 0xa85   :  { %4850 = vmatpush1.bf16.msra.mxu0 %v6088_v44 }
 0xa86   :  { %4851 = vmatprep.subr.bf16.mxu0 %v6093_v20 }
 0xa89   :  { %4852 = vmatpush1.bf16.msra.mxu0 %v6091_v8 }
 0xa8a   :  { %4853 = vmatprep.subr.bf16.mxu0 %v6096_v13 }
 0xa8d   :  { %4854 = vmatpush1.bf16.msra.mxu0 %v6094_v19 }
 0xa8e   :  { %4855 = vmatprep.subr.bf16.mxu0 %v6099_v52 }
 0xa91   :  { %4856 = vmatpush1.bf16.msra.mxu0 %v6097_v23 }
 0xb43   :  { %v4207_v43 = vpop.f32.mrb[24].mxu0 }
 0xb44   :  { %v4216_v38 = vmul.f32 -7.0, %v4207_v43  ;;  %v4238_v29 = vrot.slane %v4207_v43, 4  ;;  %v4209_v18 = vpop.f32.mrb[25].mxu0  ;;  %v4214_v56 = vmul.f32 8.0, %v4207_v43 }
 0xb45   :  { %v4217_v59 = vmul.f32 -7.0, %v4209_v18  ;;  %v4239_v0 = vrot.slane %v4209_v18, 4  ;;  %v4211_v24 = vpop.f32.mrb[26].mxu0  ;;  %v4215_v30 = vmul.f32 8.0, %v4209_v18 }
 0xb46   :  { %v4220_v42 = vrot.slane %v4216_v38, 4  ;;  %v4242_v14 = vsub.f32 %v4207_v43, %v4238_v29  ;;  %v4212_v15 = vpop.f32.mrb[27].mxu0 }
 0xb47   :  { %v4221_v17 = vrot.slane %v4217_v59, 4  ;;  %v4243_v28 = vsub.f32 %v4209_v18, %v4239_v0 }
 0xb48   :  { %v4224_v35 = vadd.f32 %v4220_v42, %v4214_v56  ;;  %v4247_v58 = vrot.slane %v4242_v14, %v8284_v57  ;;  %v4267_v47 = vrot.slane %v4242_v14, %v8285_v61  ;;  %v4291_v37 = vrot.slane %v4242_v14, %v8231_v36 }
 0xb49   :  { %v4315_v11 = vrot.slane %v4242_v14, %v6955_v27  ;;  %v4225_v16 = vadd.f32 %v4221_v17, %v4215_v30  ;;  %v4251_v62 = vrot.slane %v4243_v28, %v8284_v57  ;;  %v4271_v40 = vrot.slane %v4243_v28, %v8285_v61 }
 0xb4a   :  { %v4229_v63 = vrot.slane %v4224_v35, %v8284_v57  ;;  %v4252_v9 = vmul.f32 %v4247_v58, %v8232_v21  ;;  %v4257_v41 = vrot.slane %v4224_v35, %v8285_v61  ;;  %v4272_v5 = vmul.f32 %v4267_v47, %v8286_v32 }
 0xb4b   :  { %v4281_v7 = vrot.slane %v4224_v35, %v8231_v36  ;;  %v4296_v51 = vmul.f32 %v4291_v37, %v7154_v33  ;;  %v4305_v55 = vrot.slane %v4224_v35, %v6955_v27  ;;  %v4320_v54 = vmul.f32 %v4315_v11, %v7179_v25 }
 0xb4c   :  { %v4234_v3 = vmul.f32 %v4229_v63, %v8232_v21  ;;  %v4262_v10 = vmul.f32 %v4257_v41, %v8286_v32  ;;  %v4276_v50 = vadd.f32 %v4272_v5, %v4252_v9  ;;  %v4233_v48 = vrot.slane %v4225_v16, %v8284_v57  ;;  %v5612_v41 = vld [vmem:[%s8062_s3 + $0x20] sm:$0xff] }
 0xb4d   :  { %v4286_v2 = vmul.f32 %v4281_v7, %v7154_v33  ;;  %v4310_v45 = vmul.f32 %v4305_v55, %v7179_v25  ;;  %v4253_v49 = vmul.f32 %v4251_v62, %v8232_v21  ;;  %v4261_v26 = vrot.slane %v4225_v16, %v8285_v61 }
 0xb4e   :  { %v4274_v44 = vadd.f32 %v4262_v10, %v4234_v3  ;;  %v4300_v20 = vadd.f32 %v4296_v51, %v4276_v50  ;;  %v4235_v8 = vmul.f32 %v4233_v48, %v8232_v21  ;;  %v4273_v13 = vmul.f32 %v4271_v40, %v8286_v32 }
 0xb4f   :  { %v4263_v19 = vmul.f32 %v4261_v26, %v8286_v32  ;;  %v4285_v52 = vrot.slane %v4225_v16, %v8231_v36  ;;  %v4295_v23 = vrot.slane %v4243_v28, %v8231_v36  ;;  %v4309_v43 = vrot.slane %v4225_v16, %v6955_v27 }
 0xb50   :  { %v4298_v38 = vadd.f32 %v4286_v2, %v4274_v44  ;;  %v4324_v29 = vadd.f32 %v4320_v54, %v4300_v20  ;;  %v4277_v18 = vadd.f32 %v4273_v13, %v4253_v49  ;;  %v4319_v59 = vrot.slane %v4243_v28, %v6955_v27 }
 0xb51   :  { %v4275_v0 = vadd.f32 %v4263_v19, %v4235_v8  ;;  %v4287_v24 = vmul.f32 %v4285_v52, %v7154_v33  ;;  %v4297_v56 = vmul.f32 %v4295_v23, %v7154_v33  ;;  %v4311_v17 = vmul.f32 %v4309_v43, %v7179_v25 }
 0xb52   :  { %v4341_v42 = vadd.f32 %v4324_v29, %v7193_v39  ;;  %v4322_v14 = vadd.f32 %v4310_v45, %v4298_v38  ;;  %v4321_v35 = vmul.f32 %v4319_v59, %v7179_v25  ;;  %v4328_v37 = vstv %s7932_s5 }
 0xb53   :  { %v4299_v15 = vadd.f32 %v4287_v24, %v4275_v0  ;;  %v4301_v30 = vadd.f32 %v4297_v56, %v4277_v18  ;;  %v4338_v5 = vstv %s5546_s26  ;;  %v4387_v26 = vstv %s5614_s27 }
 0xb54   :  { %v4343_v58 = vand.u32 2147483647, %v4341_v42  ;;  %v4326_v47 = vadd.f32 %v4322_v14, %v6988_v31  ;;  %v4339_v50 = vmul.f32 %v5612_v41, %v4338_v5  ;;  %v4359_v23 = vstv %s5547_s30  ;;  %v6102_v14 = vld [vmem:[#allocation6 + $0x94] ss:$8 sps:$4 sm:$0xff]   ;;  %v5050_v41 = vld [vmem:[%s8073_s14] sm:$0x7] }
 0xb55   :  { %v4325_v28 = vadd.f32 %v4321_v35, %v4301_v30  ;;  %v4323_v11 = vadd.f32 %v4311_v17, %v4299_v15  ;;  %v6100_v15 = vld [vmem:[#allocation6 + $0x90] ss:$8 sps:$4 sm:$0xff]   ;;  %4857 = vmatprep.subr.bf16.mxu0 %v6102_v14  ;;  %v6103_v30 = vld [vmem:[#allocation6 + $0xa0] ss:$8 sps:$4 sm:$0xff]   ;;  %v6105_v17 = vld [vmem:[#allocation6 + $0xa4] ss:$8 sps:$4 sm:$0xff]  }
 0xb56   :  { %v4345_v16 = vsel %vm1677_vm2, %v4343_v58, 0.0  ;;  %v4329_v9 = vmul.f32 %v4328_v37, %v4326_v47  ;;  %4858 = vmatpush1.bf16.msra.mxu0 %v6100_v15  ;;  %v6108_v35 = vld [vmem:[#allocation6 + $0xb4] ss:$8 sps:$4 sm:$0xff]   ;;  %v6106_v58 = vld [vmem:[#allocation6 + $0xb0] ss:$8 sps:$4 sm:$0xff]   ;;  %v8287_v5 = vmov 1  }
 0xb57   :  { %v4346_v62 = vrot.slane %v4345_v16, 4  ;;  %v4342_v40 = vadd.f32 %v4325_v28, %v7197_v4  ;;  %v4327_v63 = vadd.f32 %v4323_v11, %v6990_v46  ;;  %4859 = vmatprep.subr.bf16.mxu0 %v6105_v17  ;;  %v6111_v47 = vld [vmem:[#allocation6 + $0xc4] ss:$8 sps:$4 sm:$0xff]   ;;  %v6114_v28 = vld [vmem:[#allocation6 + $0xd4] ss:$8 sps:$4 sm:$0xff]   ;;  %s8011_s14 = sld [smem:[#allocation3 + $0x16]] }
 0xb58   :  { %v6112_v11 = vld [vmem:[#allocation6 + $0xd0] ss:$8 sps:$4 sm:$0xff]  }
 0xb59   :  { %v4347_v7 = vadd.f32 %v4346_v62, %v4345_v16  ;;  %v4344_v51 = vand.u32 2147483647, %v4342_v40  ;;  %v4330_v55 = vmul.f32 %v4328_v37, %v4327_v63  ;;  %v6109_v37 = vld [vmem:[#allocation6 + $0xc0] ss:$8 sps:$4 sm:$0xff]   ;;  %v6117_v16 = vld [vmem:[#allocation6 + $0xe4] ss:$8 sps:$4 sm:$0xff]  }
 0xb5a   :  { %4860 = vmatpush1.bf16.msra.mxu0 %v6103_v30  ;;  %v6115_v62 = vld [vmem:[#allocation6 + $0xe0] ss:$8 sps:$4 sm:$0xff]   ;;  %v6120_v40 = vld [vmem:[#allocation6 + $0xf4] ss:$8 sps:$4 sm:$0xff]   ;;  %v6118_v63 = vld [vmem:[#allocation6 + $0xf0] ss:$8 sps:$4 sm:$0xff]  }
 0xb5b   :  { %v4348_v54 = vrot.slane %v4347_v7, 2  ;;  %v4352_v3 = vsel %vm1677_vm2, %v4344_v51, 0.0  ;;  %v4333_v10 = vcombine.low %v4329_v9, %v4330_v55  ;;  %4861 = vmatprep.subr.bf16.mxu0 %v6108_v35  ;;  %v5049_v9 = vld [vmem:[%s8072_s13] sm:$0x7]  ;;  %s7996_s13 = sld [smem:[#allocation3 + $0x15]] }
 0xb5c   :  { %v4353_v48 = vrot.slane %v4352_v3, 4  ;;  %5053 = vperm.xlu1 %5709, %v5049_v9   ;;  %5137 = vperm.xlu0 %5712, %v5049_v9  }
 0xb5d   :  { %v4349_v2 = vadd.f32 %v4348_v54, %v4347_v7  ;;  %v4335_v45 = vadd.f32 %v4333_v10, %v7805_v53  ;;  %v8288_v7 = vmov 2  }
 0xb5e   :  { %v4354_v49 = vadd.f32 %v4353_v48, %v4352_v3  ;;  %4862 = vmatpush1.bf16.msra.mxu0 %v6106_v58 }
 0xb5f   :  { %v4350_v44 = vrot.slane %v4349_v2, 1  ;;  %v7960_v20 = vadd.f32 %v4339_v50, %v4335_v45  ;;  %4863 = vmatprep.subr.bf16.mxu0 %v6111_v47 }
 0xb60   :  { %v4355_v8 = vrot.slane %v4354_v49, 2  ;;  %5079 = vperm.xlu1 %5709, %v5050_v41  }
 0xb61   :  { %v4388_v13 = vmul.f32 %v4387_v26, %v7960_v20  ;;  %v4351_v19 = vadd.f32 %v4350_v44, %v4349_v2 }
 0xb62   :  { %v4356_v52 = vadd.f32 %v4355_v8, %v4354_v49  ;;  %4864 = vmatpush1.bf16.msra.mxu0 %v6109_v37 }
 0xb63   :  { %v4390_v43 = vcombine.high %v4388_v13, %v4388_v13  ;;  %v4360_v18 = vmul.f32 %v4359_v23, %v4351_v19  ;;  %v4392_v0 = vpack.c.bf16 %v4388_v13, %v4388_v13  ;;  %4865 = vmatprep.subr.bf16.mxu0 %v6114_v28 }
 0xb64   :  { %v4357_v38 = vrot.slane %v4356_v52, 1  ;;  %5710 = vset.pattern.permute.xlu1 %v8287_v5 }
 0xb65   :  { %v4393_v29 = vpack.c.bf16 %v4390_v43, %v4390_v43  ;;  %5085 = vperm.xlu1 %5710, %v5049_v9  }
 0xb66   :  { %v4358_v59 = vadd.f32 %v4357_v38, %v4356_v52  ;;  %4866 = vmatpush1.bf16.msra.mxu0 %v6112_v11 }
 0xb67   :  { %4618 = vmatprep.mubr.bf16.mxu1 %v4393_v29  ;;  %4867 = vmatprep.subr.bf16.mxu0 %v6117_v16 }
 0xb68   :  { %v4361_v24 = vmul.f32 %v4359_v23, %v4358_v59  ;;  %4619 = vmatmul.mubr.bf16.vlgmr.msra.gmra.mrb[28].mxu1 %v4392_v0 }
 0xb69   :  { %5711 = vset.pattern.permute.xlu1 %v8288_v7 }
 0xb6a   :  { %v4364_v53 = vcombine.low %v4360_v18, %v4361_v24  ;;  %4868 = vmatpush1.bf16.msra.mxu0 %v6115_v62  ;;  %5111 = vperm.xlu1 %5711, %v5049_v9  }
 0xb6b   :  { %4869 = vmatprep.subr.bf16.mxu0 %v6120_v40 }
 0xb6c   :  { %v4371_v56 = vrot.slane %v4364_v53, %v7215_v34 }
 0xb6e   :  { %v4378_v42 = vrot.slane %v4371_v56, %v7215_v34  ;;  %4870 = vmatpush1.bf16.msra.mxu0 %v6118_v63 }
 0xb70   :  { %5613 = vst.msk [vmem:[%s8075_s16 + $0x4] ss:$8 sm:$0x3] %vm7222_vm3, %v4378_v42 }
 0xc3b   :  { %v4620_v51 = vpop.f32.mrb[28].mxu1 }
 0xc3c   :  { %v4627_v55 = vadd.f32 %v4620_v51, %v8263_v60  ;;  %v4631_v54 = vadd.f32 %v4620_v51, %v8264_v12  ;;  %v4622_v3 = vpop.f32.mrb[29].mxu1 }
 0xc3d   :  { %v4628_v10 = vadd.f32 %v4622_v3, %v8265_v1  ;;  %v4632_v50 = vadd.f32 %v4622_v3, %v8266_v6  ;;  %v4624_v48 = vpop.f32.mrb[30].mxu1 }
 0xc3e   :  { %4629 = vst [vmem:[#allocation2] sm:$0xf] %v4627_v55  ;;  %v4635_v2 = vrot.slane %v4631_v54, 4  ;;  %v4625_v45 = vpop.f32.mrb[31].mxu1 }
 0xc3f   :  { %4630 = vst [vmem:[#allocation2 + $0x8] sm:$0xf] %v4628_v10  ;;  %v4636_v49 = vrot.slane %v4632_v50, 4 }
 0xc40   :  { %4639 = vst [vmem:[#allocation2] sm:$0xf0] %v4635_v2 }
 0xc41   :  { %4640 = vst [vmem:[#allocation2 + $0x8] sm:$0xf0] %v4636_v49 }
 0xc47   :  { %v4641_v26 = vld [vmem:[#allocation2] sm:$0xff] }
 0xc48   :  { %v4642_v44 = vld [vmem:[#allocation2 + $0x8] sm:$0xff]  ;;  %6149 = vtanh.f32 %v4641_v26 }
 0xc49   :  { %6151 = vtanh.f32 %v4642_v44 }
 0xc52   :  { %v6150_v60 = vpop.eup %6149 }
 0xc53   :  { %v6152_v8 = vpop.eup %6151  ;;  %v4645_v13 = vpack.c.bf16 %v6150_v60, %v6150_v60 }
 0xc54   :  { %v4646_v12 = vpack.c.bf16 %v6152_v8, %v6152_v8 }
 0xc56   :  { %4871 = vmatprep.mubr.bf16.mxu0 %v4646_v12 }
 0xc57   :  { %4872 = vmatmul.mubr.bf16.vlgmr.msra.gmra.mrb[28].mxu0 %v4645_v13 }
 0xd2a   :  { %v4873_v1 = vpop.f32.mrb[28].mxu0 }
 0xd2b   :  { %v4882_v6 = vmul.f32 -7.0, %v4873_v1  ;;  %v4904_v19 = vrot.slane %v4873_v1, 4  ;;  %v4875_v52 = vpop.f32.mrb[29].mxu0  ;;  %v4880_v29 = vmul.f32 8.0, %v4873_v1 }
 0xd2c   :  { %v4883_v23 = vmul.f32 -7.0, %v4875_v52  ;;  %v4905_v43 = vrot.slane %v4875_v52, 4  ;;  %v4877_v38 = vpop.f32.mrb[30].mxu0  ;;  %v4881_v24 = vmul.f32 8.0, %v4875_v52 }
 0xd2d   :  { %v4886_v18 = vrot.slane %v4882_v6, 4  ;;  %v4908_v59 = vsub.f32 %v4873_v1, %v4904_v19  ;;  %v4878_v0 = vpop.f32.mrb[31].mxu0 }
 0xd2e   :  { %v4887_v53 = vrot.slane %v4883_v23, 4  ;;  %v4909_v56 = vsub.f32 %v4875_v52, %v4905_v43 }
 0xd2f   :  { %v4890_v42 = vadd.f32 %v4886_v18, %v4880_v29  ;;  %v4913_v14 = vrot.slane %v4908_v59, %v8284_v57  ;;  %v4933_v15 = vrot.slane %v4908_v59, %v8285_v61  ;;  %v4957_v30 = vrot.slane %v4908_v59, %v8231_v36 }
 0xd30   :  { %v4981_v17 = vrot.slane %v4908_v59, %v6955_v27  ;;  %v4891_v35 = vadd.f32 %v4887_v53, %v4881_v24  ;;  %v4917_v58 = vrot.slane %v4909_v56, %v8284_v57  ;;  %v4937_v47 = vrot.slane %v4909_v56, %v8285_v61 }
 0xd31   :  { %v4895_v37 = vrot.slane %v4890_v42, %v8284_v57  ;;  %v4918_v28 = vmul.f32 %v4913_v14, %v8232_v21  ;;  %v4923_v11 = vrot.slane %v4890_v42, %v8285_v61  ;;  %v4938_v16 = vmul.f32 %v4933_v15, %v8286_v32 }
 0xd32   :  { %v4947_v62 = vrot.slane %v4890_v42, %v8231_v36  ;;  %v4962_v40 = vmul.f32 %v4957_v30, %v7154_v33  ;;  %v4971_v63 = vrot.slane %v4890_v42, %v6955_v27  ;;  %v4986_v9 = vmul.f32 %v4981_v17, %v7179_v25  ;;  %v5054_v42 = vpop.permute.xlu1 %5053  ;;  %v5682_v30 = vld [vmem:[%s8062_s3 + $0x28] sm:$0xff] }
 0xd33   :  { %v4900_v41 = vmul.f32 %v4895_v37, %v8232_v21  ;;  %v4928_v5 = vmul.f32 %v4923_v11, %v8286_v32  ;;  %v4942_v7 = vadd.f32 %v4938_v16, %v4918_v28  ;;  %v4899_v51 = vrot.slane %v4891_v35, %v8284_v57 }
 0xd34   :  { %v4952_v55 = vmul.f32 %v4947_v62, %v7154_v33  ;;  %v4976_v54 = vmul.f32 %v4971_v63, %v7179_v25  ;;  %v4919_v3 = vmul.f32 %v4917_v58, %v8232_v21  ;;  %v4927_v10 = vrot.slane %v4891_v35, %v8285_v61 }
 0xd35   :  { %v4940_v50 = vadd.f32 %v4928_v5, %v4900_v41  ;;  %v4966_v48 = vadd.f32 %v4962_v40, %v4942_v7  ;;  %v4901_v2 = vmul.f32 %v4899_v51, %v8232_v21  ;;  %v4939_v45 = vmul.f32 %v4937_v47, %v8286_v32  ;;  %v8289_v51 = vld [vmem:[#allocation10_spill] sm:$0xff] }
 0xd36   :  { %v4929_v49 = vmul.f32 %v4927_v10, %v8286_v32  ;;  %v4951_v26 = vrot.slane %v4891_v35, %v8231_v36  ;;  %v4961_v44 = vrot.slane %v4909_v56, %v8231_v36  ;;  %v4975_v60 = vrot.slane %v4891_v35, %v6955_v27 }
 0xd37   :  { %v4964_v8 = vadd.f32 %v4952_v55, %v4940_v50  ;;  %v4990_v12 = vadd.f32 %v4986_v9, %v4966_v48  ;;  %v4943_v13 = vadd.f32 %v4939_v45, %v4919_v3  ;;  %v4985_v1 = vrot.slane %v4909_v56, %v6955_v27  ;;  %v8290_v50 = vld [vmem:[#allocation12_spill] sm:$0xff] }
 0xd38   :  { %v4941_v6 = vadd.f32 %v4929_v49, %v4901_v2  ;;  %v4953_v21 = vmul.f32 %v4951_v26, %v7154_v33  ;;  %v4963_v19 = vmul.f32 %v4961_v44, %v7154_v33  ;;  %v4977_v38 = vmul.f32 %v4975_v60, %v7179_v25  ;;  %v8291_v60 = vld [vmem:[#allocation19_spill] sm:$0xff] }
 0xd39   :  { %v4988_v32 = vadd.f32 %v4976_v54, %v4964_v8  ;;  %v5007_v52 = vadd.f32 %v4990_v12, %v7193_v39  ;;  %v4987_v29 = vmul.f32 %v4985_v1, %v7179_v25  ;;  %v4994_v59 = vstv %s7996_s13 }
 0xd3a   :  { %v4965_v23 = vadd.f32 %v4953_v21, %v4941_v6  ;;  %v4967_v43 = vadd.f32 %v4963_v19, %v4943_v13  ;;  %v5004_v25 = vstv %s8011_s14  ;;  %v5025_v3 = vstv %s8028_s19 }
 0xd3b   :  { %v4992_v18 = vadd.f32 %v4988_v32, %v6988_v31  ;;  %v5009_v0 = vand.u32 2147483647, %v5007_v52  ;;  %v5005_v37 = vmul.f32 %v5682_v30, %v5004_v25 }
 0xd3c   :  { %v4989_v24 = vadd.f32 %v4977_v38, %v4965_v23  ;;  %v4991_v53 = vadd.f32 %v4987_v29, %v4967_v43  ;;  %v8292_v38 = vld [vmem:[#allocation14_spill] sm:$0xff] }
 0xd3d   :  { %v5011_v56 = vsel %vm1677_vm2, %v5009_v0, 0.0  ;;  %v4995_v33 = vmul.f32 %v4994_v59, %v4992_v18 }
 0xd3e   :  { %v5012_v14 = vrot.slane %v5011_v56, 4  ;;  %v4993_v39 = vadd.f32 %v4989_v24, %v6990_v46  ;;  %v5008_v15 = vadd.f32 %v4991_v53, %v7197_v4  ;;  %v5080_v46 = vpop.permute.xlu1 %5079 }
 0xd40   :  { %v5013_v17 = vadd.f32 %v5012_v14, %v5011_v56  ;;  %v4996_v31 = vmul.f32 %v4994_v59, %v4993_v39  ;;  %v5010_v35 = vand.u32 2147483647, %v5008_v15  ;;  %v5138_v59 = vpop.permute.xlu0 %5137 }
 0xd42   :  { %v5014_v58 = vrot.slane %v5013_v17, 2  ;;  %v4999_v47 = vcombine.low %v4995_v33, %v4996_v31  ;;  %v5018_v28 = vsel %vm1677_vm2, %v5010_v35, 0.0  ;;  %v5086_v41 = vpop.permute.xlu1 %5085 }
 0xd43   :  { %v5019_v11 = vrot.slane %v5018_v28, 4 }
 0xd44   :  { %v5015_v16 = vadd.f32 %v5014_v58, %v5013_v17  ;;  %v5001_v4 = vadd.f32 %v4999_v47, %v7960_v20 }
 0xd45   :  { %v5020_v62 = vadd.f32 %v5019_v11, %v5018_v28 }
 0xd46   :  { %v5016_v40 = vrot.slane %v5015_v16, 1  ;;  %v5006_v63 = vadd.f32 %v5005_v37, %v5001_v4  ;;  %v5112_v23 = vpop.permute.xlu1 %5111 }
 0xd47   :  { %v5021_v9 = vrot.slane %v5020_v62, 2 }
 0xd48   :  { %v5017_v5 = vadd.f32 %v5016_v40, %v5015_v16  ;;  %v5060_v7 = vrot.slane %v5006_v63, %v8284_v57  ;;  %v5064_v55 = vrot.slane %v5006_v63, %v8289_v51  ;;  %v5091_v54 = vrot.slane %v5006_v63, %v8285_v61 }
 0xd49   :  { %v5022_v10 = vadd.f32 %v5021_v9, %v5020_v62  ;;  %v5095_v48 = vrot.slane %v5006_v63, %v8290_v50  ;;  %v5143_v2 = vrot.slane %v5006_v63, %v6955_v27  ;;  %v5147_v8 = vrot.slane %v5006_v63, %v8291_v60 }
 0xd4a   :  { %v5070_v20 = vrot.slane %v5060_v7, %v8284_v57  ;;  %v5074_v45 = vrot.slane %v5064_v55, %v8284_v57  ;;  %v5101_v49 = vrot.slane %v5091_v54, %v8285_v61  ;;  %v5026_v12 = vmul.f32 %v5025_v3, %v5017_v5 }
 0xd4b   :  { %v5023_v26 = vrot.slane %v5022_v10, 1  ;;  %v5105_v44 = vrot.slane %v5095_v48, %v8285_v61  ;;  %v5117_v6 = vrot.slane %v5006_v63, %v8231_v36  ;;  %v5153_v52 = vrot.slane %v5143_v2, %v6955_v27 }
 0xd4c   :  { %v5075_v13 = vmul.f32 %v5070_v20, %v5054_v42  ;;  %v5076_v1 = vmul.f32 %v5074_v45, %v5054_v42  ;;  %v5106_v19 = vmul.f32 %v5101_v49, %v5086_v41  ;;  %v5121_v29 = vrot.slane %v5006_v63, %v8292_v38 }
 0xd4d   :  { %v5024_v21 = vadd.f32 %v5023_v26, %v5022_v10  ;;  %v5107_v32 = vmul.f32 %v5105_v44, %v5086_v41  ;;  %v5127_v18 = vrot.slane %v5117_v6, %v8231_v36  ;;  %v5157_v0 = vrot.slane %v5147_v8, %v6955_v27 }
 0xd4e   :  { %v5082_v43 = vadd.f32 %v5080_v46, %v5075_v13  ;;  %v5083_v57 = vadd.f32 %v5080_v46, %v5076_v1  ;;  %v5131_v56 = vrot.slane %v5121_v29, %v8231_v36  ;;  %v5158_v14 = vmul.f32 %v5153_v52, %v5138_v59 }
 0xd4f   :  { %v5027_v61 = vmul.f32 %v5025_v3, %v5024_v21  ;;  %v5132_v42 = vmul.f32 %v5127_v18, %v5112_v23  ;;  %v5159_v25 = vmul.f32 %v5157_v0, %v5138_v59 }
 0xd50   :  { %v5108_v24 = vadd.f32 %v5106_v19, %v5082_v43  ;;  %v5109_v53 = vadd.f32 %v5107_v32, %v5083_v57  ;;  %v5133_v39 = vmul.f32 %v5131_v56, %v5112_v23 }
 0xd51   :  { %v5030_v33 = vcombine.low %v5026_v12, %v5027_v61 }
 0xd52   :  { %v5134_v15 = vadd.f32 %v5132_v42, %v5108_v24  ;;  %v5135_v17 = vadd.f32 %v5133_v39, %v5109_v53 }
 0xd53   :  { %v5037_v30 = vrot.slane %v5030_v33, %v7215_v34 }
 0xd54   :  { %v5160_v31 = vadd.f32 %v5158_v14, %v5134_v15  ;;  %v5161_v58 = vadd.f32 %v5159_v25, %v5135_v17 }
 0xd55   :  { %v5044_v35 = vrot.slane %v5037_v30, %v7215_v34 }
 0xd56   :  { %v5162_v47 = vadd.f32 1.0, %v5160_v31  ;;  %v5163_v27 = vadd.f32 1.0, %v5161_v58 }
 0xd57   :  { %5683 = vst.msk [vmem:[%s8075_s16 + $0x5] ss:$8 sm:$0x3] %vm7222_vm3, %v5044_v35 }
 0xd58   :  { %v5164_v36 = vmul.f32 0.5, %v5162_v47  ;;  %v5165_v37 = vmul.f32 0.5, %v5163_v27 }
 0xd5a   :  { %v5166_v28 = vmax.f32 %v5164_v36, 0.0  ;;  %v5167_v11 = vmax.f32 %v5165_v37, 0.0 }
 0xd5c   :  { %v5168_v46 = vmin.f32 %v5166_v28, 1.0  ;;  %v5169_v16 = vmin.f32 %v5167_v11, 1.0 }
 0xd5e   :  { %v5170_v4 = vmul.f32 255.0, %v5168_v46  ;;  %v5171_v62 = vmul.f32 255.0, %v5169_v16 }
 0xd60   :  { %v5174_v40 = vcombine.low %v5170_v4, %v5171_v62 }
 0xd62   :  { %5176 = vst [vmem:[%s8074_s15] sm:$0x77] %v5174_v40 }
 0xd63   :  { %5185 = vsyncpa [#allocation4], 1 }
 0xd64   :  { %5186 = vsyncpa [#allocation5], 1 }

</bundles_post_ra>
